<compile_context>
chip_gen: v6e
topology: v6e:2x2x1
jax: 0.10.0
libtpu: 0.0.40
codegen_flags: <defaults>
</compile_context>

<pallas_src>
import functools
from dataclasses import dataclass

import jax
import jax.numpy as jnp
from jax import lax
from jax.experimental import pallas as pl
from jax.experimental.pallas import tpu as pltpu


@dataclass
class FlatArgs:
    w_bits: int = 4
    a_bits: int = 4
    w_asym: bool = False     # -> symmetric weight quant
    a_asym: bool = False     # -> symmetric activation quant
    lwc: bool = True         # learned weight clipping enabled
    lac: bool = False        # learned activation clipping disabled
    a_groupsize: int = -1    # per-token activation quant


# ----------------------------------------------------------------------------
# Small helpers
# ----------------------------------------------------------------------------
def _round_up(x, m):
    return (x + m - 1) // m * m


@functools.lru_cache(maxsize=None)
def _detect_tpu():
    """(use_int8_mxu, physical_vmem_bytes) for the local TPU generation."""
    kind = ""
    try:
        kind = jax.devices()[0].device_kind.lower()
    except Exception:
        pass
    # Integer MXU exists on v4/v5e/v6e; v7x MXU is bf16/fp8 only.
    use_int8 = any(tag in kind for tag in ("v4", "v5", "v6"))
    phys = None
    try:
        phys = int(pltpu.get_tpu_info().vmem_capacity_bytes)
    except Exception:
        phys = None
    if not phys or phys < (16 << 20):
        phys = (64 << 20) if "7" in kind else (128 << 20)
    if "7" in kind:                       # v7x: 64 MiB per TensorCore
        phys = min(phys, 64 << 20)
    return use_int8, phys


def _vmem_request(estimate, cap):
    # 25% headroom over the tile estimate, never below 32 MiB, never above the
    # per-generation scoped cap (review: don't ask for the full 64 MiB on v7x).
    return int(min(max(estimate * 5 // 4, 32 << 20), cap))


def _largest_divisor_tile(total, granule, max_tile):
    """Largest multiple of `granule` that divides `total` and is <= max_tile."""
    best = granule
    t = granule
    while t <= min(total, max_tile):
        if total % t == 0:
            best = t
        t += granule
    return best


def _pick_row_tile(m, granule, max_tile):
    """Smallest-waste row tile <= max_tile (avoid ~2x padded grids on ragged M)."""
    max_tile = max(granule, max_tile // granule * granule)
    if m <= max_tile:
        return _round_up(m, granule)
    n_tiles = -(-m // max_tile)
    return _round_up(-(-m // n_tiles), granule)


# ----------------------------------------------------------------------------
# Shared in-kernel math (deferred dequant: emit small integers + scales)
# ----------------------------------------------------------------------------
def _clip_quant_weight_t(wt, smax, smin, maxq_w, lwc):
    """wt: (K, tn) f32 (W^T tile); smax/smin: (1, tn) sigmoid(clip factors)."""
    if lwc:
        wmin = jnp.min(wt, axis=0, keepdims=True) * smin
        wmax = jnp.max(wt, axis=0, keepdims=True) * smax
        # torch.clamp(x, min=wmin, max=wmax) == min(max(x, wmin), wmax)
        wt = jnp.minimum(jnp.maximum(wt, wmin), wmax)
    # GPTQ WeightQuantizer.find_params (perchannel, sym):
    xmin = jnp.minimum(jnp.min(wt, axis=0, keepdims=True), 0.0)
    xmax = jnp.maximum(jnp.max(wt, axis=0, keepdims=True), 0.0)
    xmax = jnp.maximum(jnp.maximum(jnp.abs(xmin), xmax), 1e-5)
    scale = xmax * (1.0 / maxq_w)                            # (1, tn)
    inv_scale = pl.reciprocal(scale, approx=False)           # exact divide
    q = jnp.clip(jnp.round(wt * inv_scale), -(maxq_w + 1.0), maxq_w)
    return q, scale


def _quant_act(x, maxq_a):
    """x: (tm, K) f32. Per-token symmetric quant; integers + (tm,1) scale."""
    # TODO(synk): verify FlatQuant's exact handling of all-zero tokens (scale floor).
    amax = jnp.max(jnp.abs(x), axis=1, keepdims=True)
    scale = jnp.maximum(amax * (1.0 / maxq_a), 1e-5)
    inv_scale = pl.reciprocal(scale, approx=False)
    q = jnp.clip(jnp.round(x * inv_scale), -(maxq_a + 1.0), maxq_a)
    return q, scale


# ----------------------------------------------------------------------------
# Kernel 1: LWC clip + per-channel symmetric weight quant -> int8 W^T + scales
# ----------------------------------------------------------------------------
def _weight_prep_kernel(w_ref, smax_ref, smin_ref, wq_ref, sw_ref, *, maxq_w, lwc):
    # One f32 transpose per weight element here buys a plain NN matmul in the
    # streaming kernel (no per-(i,j) transpose on the MXU feed).
    wt = w_ref[...].astype(jnp.float32).T                    # (K, tn)
    q, scale = _clip_quant_weight_t(
        wt, smax_ref[...].astype(jnp.float32), smin_ref[...].astype(jnp.float32),
        maxq_w, lwc)
    wq_ref[...] = q.astype(jnp.int32).astype(wq_ref.dtype)   # int8 storage
    sw_ref[...] = scale                                      # (1, tn) f32


def weight_quant_dequant(w_pad, smax_row, smin_row, *, w_bits, lwc, col_tile,
                         vmem_cap):
    O_pad, K = w_pad.shape
    maxq_w = float(2 ** (w_bits - 1) - 1)
    kernel = functools.partial(_weight_prep_kernel, maxq_w=maxq_w, lwc=lwc)
    est = (2 * col_tile * K * 4          # f32 input double buffer
           + 3 * col_tile * K * 4        # transposed / clipped / q temporaries
           + 2 * col_tile * K            # int8 output double buffer
           + 8 * col_tile * 4)
    return pl.pallas_call(
        kernel,
        out_shape=(jax.ShapeDtypeStruct((K, O_pad), jnp.int8),
                   jax.ShapeDtypeStruct((1, O_pad), jnp.float32)),
        grid_spec=pltpu.PrefetchScalarGridSpec(
            num_scalar_prefetch=0,
            grid=(O_pad // col_tile,),
            in_specs=[
                pl.BlockSpec((col_tile, K), lambda i: (i, 0)),
                pl.BlockSpec((1, col_tile), lambda i: (0, i)),
                pl.BlockSpec((1, col_tile), lambda i: (0, i)),
            ],
            out_specs=(pl.BlockSpec((K, col_tile), lambda i: (0, i)),
                       pl.BlockSpec((1, col_tile), lambda i: (0, i))),
        ),
        compiler_params=pltpu.CompilerParams(
            dimension_semantics=("parallel",),
            vmem_limit_bytes=_vmem_request(est, vmem_cap)),
    )(w_pad, smax_row, smin_row)


# ----------------------------------------------------------------------------
# Kernel 2 (streaming / prefill): per-token activation quant fused with matmul
#   grid = (M//tm, O//tn); activation quantized once per row tile (j==0) into
#   an int8/bf16 scratch; int8 MXU on v4/v5e/v6e, bf16 MXU on v7x; deferred
#   dequant + bias in the f32 epilogue.
# ----------------------------------------------------------------------------
def _act_quant_matmul_kernel(*refs, maxq_a, has_bias, int8_dot):
    if has_bias:
        x_ref, wq_ref, sw_ref, b_ref, o_ref, xq_ref, sa_ref = refs
    else:
        x_ref, wq_ref, sw_ref, o_ref, xq_ref, sa_ref = refs
        b_ref = None

    # x's block index depends only on i, so it stays resident across the whole
    # j (output-channel) loop; quantize it exactly once per row tile.
    @pl.when(pl.program_id(1) == 0)
    def _():
        q, scale = _quant_act(x_ref[...].astype(jnp.float32), maxq_a)
        if int8_dot:
            xq_ref[...] = q.astype(jnp.int32).astype(jnp.int8)
        else:
            xq_ref[...] = q.astype(jnp.bfloat16)   # small ints are exact in bf16
        sa_ref[...] = scale

    if int8_dot:
        # int8 x int8 -> int32 on the v4/v5e/v6e integer MXU.
        acc = lax.dot_general(
            xq_ref[...], wq_ref[...],
            dimension_numbers=(((1,), (0,)), ((), ())),
            preferred_element_type=jnp.int32).astype(jnp.float32)
    else:
        # v7x (bf16/fp8 MXU): cast the int8 weights up; products of small
        # integers with f32 accumulation stay exact.
        wq = wq_ref[...].astype(jnp.float32).astype(jnp.bfloat16)
        acc = lax.dot_general(
            xq_ref[...], wq,
            dimension_numbers=(((1,), (0,)), ((), ())),
            preferred_element_type=jnp.float32)

    acc = acc * sa_ref[...] * sw_ref[...]          # deferred dequant
    if has_bias:
        acc = acc + b_ref[...].astype(jnp.float32)
    o_ref[...] = acc.astype(o_ref.dtype)


def act_quant_linear(x2d, wq_t, sw, bias_row, *, a_bits, tm, tn, int8_dot,
                     out_dtype, vmem_cap):
    M_pad, K = x2d.shape
    O_pad = wq_t.shape[1]
    maxq_a = float(2 ** (a_bits - 1) - 1)
    has_bias = bias_row is not None
    kernel = functools.partial(_act_quant_matmul_kernel, maxq_a=maxq_a,
                               has_bias=has_bias, int8_dot=int8_dot)

    in_specs = [
        pl.BlockSpec((tm, K), lambda i, j: (i, 0)),   # activations (resident over j)
        pl.BlockSpec((K, tn), lambda i, j: (0, j)),   # int8 W^T tile
        pl.BlockSpec((1, tn), lambda i, j: (0, j)),   # per-channel weight scale
    ]
    args = [x2d, wq_t, sw]
    if has_bias:
        in_specs.append(pl.BlockSpec((1, tn), lambda i, j: (0, j)))
        args.append(bias_row)

    xq_dtype = jnp.int8 if int8_dot else jnp.bfloat16
    xbytes = x2d.dtype.itemsize
    obytes = jnp.dtype(out_dtype).itemsize
    est = (2 * tm * K * xbytes                        # x double buffer
           + tm * K * jnp.dtype(xq_dtype).itemsize    # quantized-x scratch
           + tm * 4                                   # per-token scale scratch
           + 2 * K * tn + 2 * tn * 4                  # int8 weight + scale buffers
           + 2 * tm * tn * obytes                     # output double buffer
           + (2 * tn * 4 if has_bias else 0))

    return pl.pallas_call(
        kernel,
        out_shape=jax.ShapeDtypeStruct((M_pad, O_pad), out_dtype),
        grid_spec=pltpu.PrefetchScalarGridSpec(
            num_scalar_prefetch=0,
            grid=(M_pad // tm, O_pad // tn),
            in_specs=in_specs,
            out_specs=pl.BlockSpec((tm, tn), lambda i, j: (i, j)),
            scratch_shapes=[pltpu.VMEM((tm, K), xq_dtype),
                            pltpu.VMEM((tm, 1), jnp.float32)],
        ),
        # j must stay sequential ("arbitrary") so the xq scratch written at
        # j==0 is reused across the output-tile loop; i is "parallel" for
        # megacore sharding of row tiles.
        compiler_params=pltpu.CompilerParams(
            dimension_semantics=("parallel", "arbitrary"),
            vmem_limit_bytes=_vmem_request(est, vmem_cap)),
    )(*args)


# ----------------------------------------------------------------------------
# Fused small-M (decode) kernel: weight clip+quant, activation quant and the
# matmul in one pass; 1-D "parallel" grid over output-channel tiles so both
# v7x TensorCores work and the int8 weight round-trip through HBM is skipped.
# ----------------------------------------------------------------------------
def _fused_small_m_kernel(*refs, maxq_w, maxq_a, lwc, has_bias):
    if has_bias:
        x_ref, w_ref, smax_ref, smin_ref, b_ref, o_ref = refs
    else:
        x_ref, w_ref, smax_ref, smin_ref, o_ref = refs
        b_ref = None

    wt = w_ref[...].astype(jnp.float32).T                    # (K, tn)
    qw, sw = _clip_quant_weight_t(
        wt, smax_ref[...].astype(jnp.float32), smin_ref[...].astype(jnp.float32),
        maxq_w, lwc)

    # Recomputed per j tile (cheap at small M); keeps the grid axis parallel.
    qx, sa = _quant_act(x_ref[...].astype(jnp.float32), maxq_a)

    # Small-integer bf16 matmul is exact and runs on every MXU generation; at
    # decode the kernel is bound by the f32 weight read anyway.
    acc = lax.dot_general(
        qx.astype(jnp.bfloat16), qw.astype(jnp.bfloat16),
        dimension_numbers=(((1,), (0,)), ((), ())),
        preferred_element_type=jnp.float32)
    acc = acc * sa * sw
    if has_bias:
        acc = acc + b_ref[...].astype(jnp.float32)
    o_ref[...] = acc.astype(o_ref.dtype)


def fused_quant_linear(x2d, w_pad, smax_row, smin_row, bias_row, *, w_bits,
                       a_bits, lwc, tn, out_dtype, vmem_cap):
    Mp, K = x2d.shape
    O_pad = w_pad.shape[0]
    has_bias = bias_row is not None
    kernel = functools.partial(
        _fused_small_m_kernel,
        maxq_w=float(2 ** (w_bits - 1) - 1),
        maxq_a=float(2 ** (a_bits - 1) - 1),
        lwc=lwc, has_bias=has_bias)

    in_specs = [
        pl.BlockSpec((Mp, K), lambda j: (0, 0)),
        pl.BlockSpec((tn, K), lambda j: (j, 0)),
        pl.BlockSpec((1, tn), lambda j: (0, j)),
        pl.BlockSpec((1, tn), lambda j: (0, j)),
    ]
    args = [x2d, w_pad, smax_row, smin_row]
    if has_bias:
        in_specs.append(pl.BlockSpec((1, tn), lambda j: (0, j)))
        args.append(bias_row)

    obytes = jnp.dtype(out_dtype).itemsize
    est = (5 * Mp * K * 4 + 5 * tn * K * 4 + 2 * Mp * tn * obytes + 10 * tn * 4)

    return pl.pallas_call(
        kernel,
        out_shape=jax.ShapeDtypeStruct((Mp, O_pad), out_dtype),
        grid_spec=pltpu.PrefetchScalarGridSpec(
            num_scalar_prefetch=0,
            grid=(O_pad // tn,),
            in_specs=in_specs,
            out_specs=pl.BlockSpec((Mp, tn), lambda j: (0, j)),
        ),
        compiler_params=pltpu.CompilerParams(
            dimension_semantics=("parallel",),
            vmem_limit_bytes=_vmem_request(est, vmem_cap)),
    )(*args)


# ----------------------------------------------------------------------------
# Module wrapper (train-mode forward of FlatQuantizedLinear)
# ----------------------------------------------------------------------------
class FlatQuantizedLinearPallas:
    def __init__(self, flat_args, weight, bias=None, *, max_row_tile=1024,
                 max_col_tile=256, fused_m_threshold=128, mxu="auto",
                 out_dtype=None):
        self.args = flat_args
        self.weight = weight                              # (out, in), PyTorch layout
        self.bias = bias                                  # (out,) or None
        self.out_dtype = out_dtype                        # None -> x.dtype
        self.max_row_tile = max_row_tile
        self.max_col_tile = max_col_tile
        self.fused_m_threshold = fused_m_threshold

        O, K = weight.shape
        self.O, self.K = O, K

        use_int8, phys_vmem = _detect_tpu()
        if mxu == "int8":
            use_int8 = True
        elif mxu == "bf16":
            use_int8 = False
        self.int8_dot = use_int8
        # ~78% of physical VMEM: ~50 MiB on v7x (64 MiB parts), ~100 MiB on
        # v5e/v6e (128 MiB parts) -- leaves compiler headroom.
        self.vmem_cap = int(phys_vmem * 0.78)

        # "Parameters" in the PyTorch layout (nn.Parameter((O, 1)) * 4.0).
        if flat_args.lwc:
            init_value = 4.0
            self.clip_factor_w_max = jnp.full((O, 1), init_value, jnp.float32)
            self.clip_factor_w_min = jnp.full((O, 1), init_value, jnp.float32)
        else:
            self.clip_factor_w_max = None
            self.clip_factor_w_min = None

        # Kernel-layout copies, padded once at construction (avoids a per-call
        # O*K pad read+write of the weight).
        O_pad = _round_up(O, 128)
        self.O_pad = O_pad
        pad_o = O_pad - O
        self._w_pad = jnp.pad(weight, ((0, pad_o), (0, 0))) if pad_o else weight
        if flat_args.lwc:
            cmax = self.clip_factor_w_max.reshape(1, O)
            cmin = self.clip_factor_w_min.reshape(1, O)
        else:
            cmax = jnp.zeros((1, O), jnp.float32)
            cmin = jnp.zeros((1, O), jnp.float32)
        self._cmax_row = jnp.pad(cmax, ((0, 0), (0, pad_o))) if pad_o else cmax
        self._cmin_row = jnp.pad(cmin, ((0, 0), (0, pad_o))) if pad_o else cmin
        if bias is not None:
            brow = bias.reshape(1, O).astype(jnp.float32)
            self._bias_row = jnp.pad(brow, ((0, 0), (0, pad_o))) if pad_o else brow
        else:
            self._bias_row = None

    # ---- tile selection (per-generation VMEM budgets) ----------------------
    def _stream_col_tile(self):
        # kernel 1 holds a (tn, K) f32 tile plus transposed/quantized copies
        # (~22 B/elem incl. the int8 double-buffered output).
        k1_cap = max(128, int(self.vmem_cap * 0.8) // (22 * self.K))
        return _largest_divisor_tile(self.O_pad, 128,
                                     min(self.max_col_tile, k1_cap))

    def _stream_row_tile(self, M, tn):
        K = self.K
        fixed = 2 * K * tn + 6 * tn * 4                   # weight/scale/bias buffers
        per_row = 2 * K * 4 + K + 2 * tn * 4 + 8          # x dbl buf + scratch + out
        budget = (int(self.vmem_cap * 0.8) - fixed) // per_row
        budget = max(32, min(self.max_row_tile, budget) // 32 * 32)
        return _pick_row_tile(M, 32, budget)

    def _fused_col_tile(self, M):
        Mp = _round_up(max(M, 1), 32)
        K = self.K
        fixed = 5 * Mp * K * 4                            # x buffers + quant temps
        per_col = 5 * K * 4 + 2 * Mp * 4 + 16
        usable = int(self.vmem_cap * 0.8) - fixed
        if usable < per_col * 128:
            return None                                   # fall back to streaming
        return _largest_divisor_tile(self.O_pad, 128, min(512, usable // per_col))

    # ---- forward ------------------------------------------------------------
    def __call__(self, hidden_states, qa_trans=None, out_trans=None):
        # TODO(synk): qa_trans/out_trans Kronecker & decomposed transforms,
        # fp8 weight_dequant(weight.scale) and row-parallel dist.all_reduce are
        # not implemented; the module defaults (None / world_size==1) are kept.
        assert qa_trans is None and out_trans is None
        B, S, K = hidden_states.shape
        assert K == self.K
        out_dtype = self.out_dtype or hidden_states.dtype
        M = B * S
        O, O_pad = self.O, self.O_pad
        cap = self.vmem_cap

        # sigmoid of the clip factors is a tiny (1, O) op; computing it here
        # (outside the kernels) keeps it bit-identical to the reference path.
        if self.args.lwc:
            smax_row = jax.nn.sigmoid(self._cmax_row)
            smin_row = jax.nn.sigmoid(self._cmin_row)
        else:
            smax_row, smin_row = self._cmax_row, self._cmin_row

        x2d = hidden_states.reshape(M, K)
        fused_tn = self._fused_col_tile(M)

        if M <= self.fused_m_threshold and fused_tn is not None:
            # decode / small-M: one fused pass, no int8 weight round-trip.
            Mp = _round_up(M, 32)
            if Mp != M:
                x2d = jnp.pad(x2d, ((0, Mp - M), (0, 0)))
            y = fused_quant_linear(
                x2d, self._w_pad, smax_row, smin_row, self._bias_row,
                w_bits=self.args.w_bits, a_bits=self.args.a_bits,
                lwc=self.args.lwc, tn=fused_tn, out_dtype=out_dtype,
                vmem_cap=cap)
        else:
            # prefill / large-M: int8 W^T prep once, then stream it.
            tn = self._stream_col_tile()
            wq_t, sw = weight_quant_dequant(
                self._w_pad, smax_row, smin_row,
                w_bits=self.args.w_bits, lwc=self.args.lwc,
                col_tile=tn, vmem_cap=cap)
            tm = self._stream_row_tile(M, tn)
            M_pad = _round_up(M, tm)
            if M_pad != M:                 # padded tokens quantize to exactly 0
                x2d = jnp.pad(x2d, ((0, M_pad - M), (0, 0)))
            y = act_quant_linear(
                x2d, wq_t, sw, self._bias_row, a_bits=self.args.a_bits,
                tm=tm, tn=tn, int8_dot=self.int8_dot,
                out_dtype=out_dtype, vmem_cap=cap)

        return y[:M, :O].reshape(B, S, O)


# ----------------------------------------------------------------------------
# Pure-JAX reference (deferred-dequant math: matches both kernel paths, which
# compute the integer matmul exactly and rescale in f32).
# ----------------------------------------------------------------------------
def reference_forward(x, w, b, cmax, cmin, args):
    maxq_w = float(2 ** (args.w_bits - 1) - 1)
    wf = w.astype(jnp.float32)
    if args.lwc:
        wmin = wf.min(1, keepdims=True) * jax.nn.sigmoid(cmin)
        wmax = wf.max(1, keepdims=True) * jax.nn.sigmoid(cmax)
        wf = jnp.minimum(jnp.maximum(wf, wmin), wmax)
    xmin = jnp.minimum(wf.min(1, keepdims=True), 0.0)
    xmax = jnp.maximum(wf.max(1, keepdims=True), 0.0)
    xmax = jnp.maximum(jnp.maximum(jnp.abs(xmin), xmax), 1e-5)
    sw = xmax * (1.0 / maxq_w)                                # (O, 1)
    qw = jnp.clip(jnp.round(wf * (1.0 / sw)), -(maxq_w + 1.0), maxq_w)

    maxq_a = float(2 ** (args.a_bits - 1) - 1)
    amax = jnp.max(jnp.abs(x), axis=-1, keepdims=True)
    sa = jnp.maximum(amax * (1.0 / maxq_a), 1e-5)
    qx = jnp.clip(jnp.round(x * (1.0 / sa)), -(maxq_a + 1.0), maxq_a)

    y = jnp.einsum('bsk,ok->bso', qx, qw) * sa * sw.reshape(-1)
    if b is not None:
        y = y + b
    return y


if __name__ == "__main__":
    args = FlatArgs()
    key = jax.random.PRNGKey(0)
    kx1, kx2, kw, kb = jax.random.split(key, 4)

    IN, OUT = 256, 320                     # ragged O exercises padding / divisor tiles
    w = jax.random.normal(kw, (OUT, IN), jnp.float32) * 0.05
    b = jax.random.normal(kb, (OUT,), jnp.float32) * 0.1

    def check(y, y_ref, tag):
        assert y.shape == y_ref.shape, (tag, y.shape, y_ref.shape)
        err = float(jnp.max(jnp.abs(y - y_ref)))
        assert jnp.allclose(y, y_ref, rtol=5e-3, atol=5e-3), (tag, err)

    # ---- small M (decode-like, M=18): fused single-pass kernel --------------
    x_small = jax.random.normal(kx1, (2, 9, IN), jnp.float32)

    mod = FlatQuantizedLinearPallas(args, w, b)
    y = jax.block_until_ready(mod(x_small))
    check(y, reference_forward(x_small, w, b, mod.clip_factor_w_max,
                               mod.clip_factor_w_min, args), "fused+bias")

    mod_nb = FlatQuantizedLinearPallas(args, w, None)
    y = jax.block_until_ready(mod_nb(x_small))
    check(y, reference_forward(x_small, w, None, mod_nb.clip_factor_w_max,
                               mod_nb.clip_factor_w_min, args), "fused")

    # ---- larger M (prefill-like, M=512): weight-prep + streaming kernels ----
    x_big = jax.random.normal(kx2, (4, 128, IN), jnp.float32)

    mod2 = FlatQuantizedLinearPallas(args, w, b, max_row_tile=256)
    y = jax.block_until_ready(mod2(x_big))
    check(y, reference_forward(x_big, w, b, mod2.clip_factor_w_max,
                               mod2.clip_factor_w_min, args), "stream+bias")

    mod2_nb = FlatQuantizedLinearPallas(args, w, None, max_row_tile=256)
    y = jax.block_until_ready(mod2_nb(x_big))
    check(y, reference_forward(x_big, w, None, mod2_nb.clip_factor_w_max,
                               mod2_nb.clip_factor_w_min, args), "stream")

    print("KERNEL_OK")
</pallas_src>

<mosaic_0001>
module attributes {stable_mosaic.version = 11 : i64} {
  func.func @_fused_small_m_kernel(%arg0: i32, %arg1: memref<32x256xf32, #tpu.memory_space<vmem>>, %arg2: memref<384x256xf32, #tpu.memory_space<vmem>>, %arg3: memref<1x384xf32, #tpu.memory_space<vmem>>, %arg4: memref<1x384xf32, #tpu.memory_space<vmem>>, %arg5: memref<1x384xf32, #tpu.memory_space<vmem>>, %arg6: memref<32x384xf32, #tpu.memory_space<vmem>>) attributes {dimension_semantics = [#tpu.dimension_semantics<parallel>], iteration_bounds = array<i64: 1>, scalar_prefetch = 0 : i64, scratch_operands = 0 : i64, tpu.core_type = #tpu.core_type<tc>, window_params = [{pipeline_mode = #tpu.pipeline_mode<synchronous>, transform_indices = @transform_0, window_bounds = array<i64: 32, 256>}, {transform_indices = @transform_1, window_bounds = array<i64: 384, 256>}, {transform_indices = @transform_2, window_bounds = array<i64: 1, 384>}, {transform_indices = @transform_3, window_bounds = array<i64: 1, 384>}, {transform_indices = @transform_4, window_bounds = array<i64: 1, 384>}, {transform_indices = @transform_5, window_bounds = array<i64: 32, 384>}]} {
    %c0 = arith.constant 0 : index
    %c0_0 = arith.constant 0 : index
    %0 = vector.load %arg2[%c0, %c0_0] : memref<384x256xf32, #tpu.memory_space<vmem>>, vector<384x256xf32>
    %1 = tpu.transpose %0, [1, 0] : vector<384x256xf32> -> vector<256x384xf32>
    %c0_1 = arith.constant 0 : index
    %c0_2 = arith.constant 0 : index
    %2 = vector.load %arg3[%c0_1, %c0_2] : memref<1x384xf32, #tpu.memory_space<vmem>>, vector<1x384xf32>
    %c0_3 = arith.constant 0 : index
    %c0_4 = arith.constant 0 : index
    %3 = vector.load %arg4[%c0_3, %c0_4] : memref<1x384xf32, #tpu.memory_space<vmem>>, vector<1x384xf32>
    %cst = arith.constant dense<0x7F800000> : vector<384xf32>
    %4 = vector.multi_reduction <minimumf>, %1, %cst [0] : vector<256x384xf32> to vector<384xf32>
    %5 = vector.shape_cast %4 : vector<384xf32> to vector<1x384xf32>
    %6 = arith.mulf %5, %3 : vector<1x384xf32>
    %cst_5 = arith.constant dense<0xFF800000> : vector<384xf32>
    %7 = vector.multi_reduction <maximumf>, %1, %cst_5 [0] : vector<256x384xf32> to vector<384xf32>
    %8 = vector.shape_cast %7 : vector<384xf32> to vector<1x384xf32>
    %9 = arith.mulf %8, %2 : vector<1x384xf32>
    %10 = vector.broadcast %6 : vector<1x384xf32> to vector<256x384xf32>
    %11 = arith.maximumf %1, %10 : vector<256x384xf32>
    %12 = vector.broadcast %9 : vector<1x384xf32> to vector<256x384xf32>
    %13 = arith.minimumf %11, %12 : vector<256x384xf32>
    %cst_6 = arith.constant dense<0x7F800000> : vector<384xf32>
    %14 = vector.multi_reduction <minimumf>, %13, %cst_6 [0] : vector<256x384xf32> to vector<384xf32>
    %15 = vector.shape_cast %14 : vector<384xf32> to vector<1x384xf32>
    %cst_7 = arith.constant 0.000000e+00 : f32
    %16 = vector.broadcast %cst_7 : f32 to vector<1x384xf32>
    %17 = arith.minimumf %15, %16 : vector<1x384xf32>
    %cst_8 = arith.constant dense<0xFF800000> : vector<384xf32>
    %18 = vector.multi_reduction <maximumf>, %13, %cst_8 [0] : vector<256x384xf32> to vector<384xf32>
    %19 = vector.shape_cast %18 : vector<384xf32> to vector<1x384xf32>
    %cst_9 = arith.constant 0.000000e+00 : f32
    %20 = vector.broadcast %cst_9 : f32 to vector<1x384xf32>
    %21 = arith.maximumf %19, %20 : vector<1x384xf32>
    %22 = math.absf %17 : vector<1x384xf32>
    %23 = arith.maximumf %22, %21 : vector<1x384xf32>
    %cst_10 = arith.constant 9.99999974E-6 : f32
    %24 = vector.broadcast %cst_10 : f32 to vector<1x384xf32>
    %25 = arith.maximumf %23, %24 : vector<1x384xf32>
    %cst_11 = arith.constant 0.142857149 : f32
    %26 = vector.broadcast %cst_11 : f32 to vector<1x384xf32>
    %27 = arith.mulf %25, %26 : vector<1x384xf32>
    %28 = tpu.reciprocal %27 : vector<1x384xf32> -> vector<1x384xf32>
    %29 = vector.broadcast %28 : vector<1x384xf32> to vector<256x384xf32>
    %30 = arith.mulf %13, %29 : vector<256x384xf32>
    %31 = math.roundeven %30 : vector<256x384xf32>
    %cst_12 = arith.constant -8.000000e+00 : f32
    %cst_13 = arith.constant 7.000000e+00 : f32
    %32 = vector.broadcast %cst_12 : f32 to vector<256x384xf32>
    %33 = arith.maximumf %32, %31 : vector<256x384xf32>
    %34 = vector.broadcast %cst_13 : f32 to vector<256x384xf32>
    %35 = arith.minimumf %34, %33 : vector<256x384xf32>
    %c0_14 = arith.constant 0 : index
    %c0_15 = arith.constant 0 : index
    %36 = vector.load %arg1[%c0_14, %c0_15] : memref<32x256xf32, #tpu.memory_space<vmem>>, vector<32x256xf32>
    %37 = math.absf %36 : vector<32x256xf32>
    %cst_16 = arith.constant dense<0xFF800000> : vector<32xf32>
    %38 = vector.multi_reduction <maximumf>, %37, %cst_16 [1] : vector<32x256xf32> to vector<32xf32>
    %39 = vector.shape_cast %38 : vector<32xf32> to vector<32x1xf32>
    %cst_17 = arith.constant 0.142857149 : f32
    %40 = vector.broadcast %cst_17 : f32 to vector<32x1xf32>
    %41 = arith.mulf %39, %40 : vector<32x1xf32>
    %cst_18 = arith.constant 9.99999974E-6 : f32
    %42 = vector.broadcast %cst_18 : f32 to vector<32x1xf32>
    %43 = arith.maximumf %41, %42 : vector<32x1xf32>
    %44 = tpu.reciprocal %43 : vector<32x1xf32> -> vector<32x1xf32>
    %45 = vector.broadcast %44 : vector<32x1xf32> to vector<32x256xf32>
    %46 = arith.mulf %36, %45 : vector<32x256xf32>
    %47 = math.roundeven %46 : vector<32x256xf32>
    %cst_19 = arith.constant -8.000000e+00 : f32
    %cst_20 = arith.constant 7.000000e+00 : f32
    %48 = vector.broadcast %cst_19 : f32 to vector<32x256xf32>
    %49 = arith.maximumf %48, %47 : vector<32x256xf32>
    %50 = vector.broadcast %cst_20 : f32 to vector<32x256xf32>
    %51 = arith.minimumf %50, %49 : vector<32x256xf32>
    %52 = arith.truncf %51 : vector<32x256xf32> to vector<32x256xbf16>
    %53 = arith.truncf %35 : vector<256x384xf32> to vector<256x384xbf16>
    %cst_21 = arith.constant dense<0.000000e+00> : vector<32x384xf32>
    %54 = tpu.matmul %52, %53, %cst_21 {dimension_numbers = #tpu.dot_dimension_numbers<[1], [0], [0], [1], [0, 0, 1, 1], [], []>} : vector<32x256xbf16>, vector<256x384xbf16>, vector<32x384xf32> -> vector<32x384xf32>
    %55 = vector.broadcast %43 : vector<32x1xf32> to vector<32x384xf32>
    %56 = arith.mulf %54, %55 : vector<32x384xf32>
    %57 = vector.broadcast %27 : vector<1x384xf32> to vector<32x384xf32>
    %58 = arith.mulf %56, %57 : vector<32x384xf32>
    %c0_22 = arith.constant 0 : index
    %c0_23 = arith.constant 0 : index
    %59 = vector.load %arg5[%c0_22, %c0_23] : memref<1x384xf32, #tpu.memory_space<vmem>>, vector<1x384xf32>
    %60 = vector.broadcast %59 : vector<1x384xf32> to vector<32x384xf32>
    %61 = arith.addf %58, %60 : vector<32x384xf32>
    %c0_24 = arith.constant 0 : index
    %c0_25 = arith.constant 0 : index
    %62 = vector.load %arg6[%c0_24, %c0_25] : memref<32x384xf32, #tpu.memory_space<vmem>>, vector<32x384xf32>
    tpu.vector_store %arg6[%c0_24, %c0_25], %61 {strides = array<i32>} : memref<32x384xf32, #tpu.memory_space<vmem>>, vector<32x384xf32>,
    return
  }
  func.func @transform_0(%arg0: i32) -> (i32, i32) {
    %c0_i32 = arith.constant 0 : i32
    %c0_i32_0 = arith.constant 0 : i32
    %c0_i32_1 = arith.constant 0 : i32
    return %c0_i32, %c0_i32_0 : i32, i32
  }
  func.func @transform_1(%arg0: i32) -> (i32, i32) {
    %c0_i32 = arith.constant 0 : i32
    %c0_i32_0 = arith.constant 0 : i32
    return %arg0, %c0_i32 : i32, i32
  }
  func.func @transform_2(%arg0: i32) -> (i32, i32) {
    %c0_i32 = arith.constant 0 : i32
    %c0_i32_0 = arith.constant 0 : i32
    return %c0_i32, %arg0 : i32, i32
  }
  func.func @transform_3(%arg0: i32) -> (i32, i32) {
    %c0_i32 = arith.constant 0 : i32
    %c0_i32_0 = arith.constant 0 : i32
    return %c0_i32, %arg0 : i32, i32
  }
  func.func @transform_4(%arg0: i32) -> (i32, i32) {
    %c0_i32 = arith.constant 0 : i32
    %c0_i32_0 = arith.constant 0 : i32
    return %c0_i32, %arg0 : i32, i32
  }
  func.func @transform_5(%arg0: i32) -> (i32, i32) {
    %c0_i32 = arith.constant 0 : i32
    %c0_i32_0 = arith.constant 0 : i32
    return %c0_i32, %arg0 : i32, i32
  }
}

</mosaic_0001>

<bundles_post_ra>
// kernel: tpu_custom_call.1
= control target key start
LH: loop header
LB: loop body
LE: loop exit
PB: predicated region body
PF: predicated region fallthrough
CT: control target
= control target key end

     0   :  { %10 = vsyncpa [#allocation3], 0  ;;  %s5331_s0 = inlined_call_operand.hbm [shape: f32[32,256], index: 0, kind: input, shape index: {}]   ;;  %s5332_s1 = inlined_call_operand.hbm [shape: f32[384,256], index: 1, kind: input, shape index: {}]   ;;  %s5333_s2 = inlined_call_operand.vmem [shape: f32[1,384], index: 2, kind: input, shape index: {}]   ;;  %s5334_s3 = inlined_call_operand.hbm [shape: f32[1,384], index: 3, kind: input, shape index: {}]   ;;  %s5335_s4 = inlined_call_operand.vmem [shape: f32[1,384], index: 4, kind: input, shape index: {}]   ;;  %s5336_s5 = inlined_call_operand.hbm [shape: f32[32,384], index: 5, kind: output, shape index: {}]  }
   0x1   :  { %11 = vsyncpa [#allocation6], 0 }
   0x2   :  { %12 = vsyncpa [#allocation4], 0  ;;  %s2739_s18 = smov [#allocation5]   ;;  %s2740_s20 = smov [#allocation2]  }
   0x3   :  { %s30_s19 = sshll.u32 %s2739_s18, 4  ;;  %s18_s21 = sshll.u32 %s2740_s20, 4  ;;  %s31_s19 = int_to_ptr.vmem [resolvable:$true] %s30_s19  ;;  %s19_s21 = int_to_ptr.vmem [resolvable:$true] %s18_s21 }
   0x4   :  { %s2661_s22 = scalar_lea.vmem %s31_s19, 12288  ;;  %p2666_p1 = scmp.lt.s32.totalorder %s31_s19, %s31_s19 }
   0x5   :  { %p2662_p0 = scmp.ne.s32.totalorder %s31_s19, %s2661_s22  ;;  %p2667_p2 = scmp.lt.s32.totalorder %s2661_s22, %s2661_s22 }
   0x7   :  { %p2668_p3 = por %p2667_p2, %p2666_p1 }
   0x9   :  { %p2669_p4 = pnand %p2668_p3, %p2662_p0 }
   0xb   :  { %2672 = shalt.err (!%p2669_p4)
}
   0xc   :  { %s2741_s23 = smov 256   ;;  %s2742_s24 = smov 16  }
   0xd   :  { %36 = dma.hbm_to_vmem [thread:$0]  %s5332_s1, 12288, %s31_s19, [#allocation6], %s2741_s23, %s2741_s23, %s2742_s24  }
   0xe   :  { %s2681_s27 = scalar_lea.vmem %s19_s21, 1024  ;;  %p2686_p6 = scmp.lt.s32.totalorder %s19_s21, %s19_s21 }
   0xf   :  { %p2682_p5 = scmp.ne.s32.totalorder %s19_s21, %s2681_s27  ;;  %p2687_p7 = scmp.lt.s32.totalorder %s2681_s27, %s2681_s27 }
  0x11   :  { %p2688_p8 = por %p2687_p7, %p2686_p6 }
  0x13   :  { %p2689_p9 = pnand %p2688_p8, %p2682_p5 }
  0x15   :  { %2692 = shalt.err (!%p2689_p9)
}
  0x16   :  { %24 = dma.hbm_to_vmem [thread:$0]  %s5331_s0, 1024, %s19_s21, [#allocation3], %s2741_s23, %s2741_s23, %s2742_s24  }
  0x17   :  { %s2743_s30 = smov [#allocation7]  }
  0x18   :  { %s45_s6 = sshll.u32 %s2743_s30, 4  ;;  %s46_s6 = int_to_ptr.vmem [resolvable:$true] %s45_s6 }
  0x19   :  { %s2701_s7 = scalar_lea.vmem %s46_s6, 48  ;;  %s2705_s8 = scalar_lea.vmem %s46_s6, 64 }
  0x1a   :  { %p2702_p10 = scmp.ne.s32.totalorder %s46_s6, %s2701_s7  ;;  %p2706_p11 = scmp.lt.s32.totalorder %s46_s6, %s46_s6 }
  0x1b   :  { %p2707_p12 = scmp.lt.s32.totalorder %s2705_s8, %s2701_s7 }
  0x1d   :  { %p2708_p13 = por %p2707_p12, %p2706_p11 }
  0x1f   :  { %p2709_p0 = pnand %p2708_p13, %p2702_p10 }
  0x21   :  { %2712 = shalt.err (!%p2709_p0)
}
  0x22   :  { %48 = dma.hbm_to_vmem [thread:$0]  %s5334_s3, 48, %s46_s6, [#allocation6]  }
  0x23   :  { %2733 = dma.done.wait [#allocation3], 1024  }
  0x24   :  { %2734 = vsyncadd [#allocation3], 4294966272 }
  0x25   :  { %2735 = dma.done.wait [#allocation6], 12336  }
  0x26   :  { %2736 = vsyncadd [#allocation6], 4294954960  ;;  %v93_v0 = vld [vmem:[#allocation5 + $0x100] sm:$0xff]  ;;  %v95_v2 = vld [vmem:[#allocation5 + $0x110] sm:$0xff] }
  0x27   :  { %v61_v1 = vld [vmem:[#allocation5] sm:$0xff]  ;;  %221 = vxpose.xlu0.b32.start [1/16] %v93_v0, 128  ;;  %v63_v3 = vld [vmem:[#allocation5 + $0x10] sm:$0xff]  ;;  %v94_v32 = vld [vmem:[#allocation5 + $0x108] sm:$0xff] }
  0x28   :  { %157 = vxpose.xlu1.b32.start [1/16] %v61_v1, 128  ;;  %v97_v4 = vld [vmem:[#allocation5 + $0x120] sm:$0xff]  ;;  %v99_v6 = vld [vmem:[#allocation5 + $0x130] sm:$0xff]  ;;  %v62_v33 = vld [vmem:[#allocation5 + $0x8] sm:$0xff] }
  0x29   :  { %v65_v5 = vld [vmem:[#allocation5 + $0x20] sm:$0xff]  ;;  %v67_v7 = vld [vmem:[#allocation5 + $0x30] sm:$0xff]  ;;  %v96_v34 = vld [vmem:[#allocation5 + $0x118] sm:$0xff] }
  0x2a   :  { %v101_v8 = vld [vmem:[#allocation5 + $0x140] sm:$0xff]  ;;  %v103_v10 = vld [vmem:[#allocation5 + $0x150] sm:$0xff]  ;;  %v64_v35 = vld [vmem:[#allocation5 + $0x18] sm:$0xff] }
  0x2b   :  { %222 = vxpose.xlu0.b32.cont [2/16] %v95_v2, 128  ;;  %v69_v9 = vld [vmem:[#allocation5 + $0x40] sm:$0xff]  ;;  %v71_v11 = vld [vmem:[#allocation5 + $0x50] sm:$0xff]  ;;  %v98_v36 = vld [vmem:[#allocation5 + $0x128] sm:$0xff] }
  0x2c   :  { %158 = vxpose.xlu1.b32.cont [2/16] %v63_v3, 128  ;;  %v105_v12 = vld [vmem:[#allocation5 + $0x160] sm:$0xff]  ;;  %v107_v14 = vld [vmem:[#allocation5 + $0x170] sm:$0xff]  ;;  %v66_v37 = vld [vmem:[#allocation5 + $0x28] sm:$0xff] }
  0x2d   :  { %v73_v13 = vld [vmem:[#allocation5 + $0x60] sm:$0xff]  ;;  %v75_v15 = vld [vmem:[#allocation5 + $0x70] sm:$0xff]  ;;  %v100_v38 = vld [vmem:[#allocation5 + $0x138] sm:$0xff] }
  0x2e   :  { %v109_v16 = vld [vmem:[#allocation5 + $0x180] sm:$0xff]  ;;  %v111_v18 = vld [vmem:[#allocation5 + $0x190] sm:$0xff]  ;;  %v68_v39 = vld [vmem:[#allocation5 + $0x38] sm:$0xff] }
  0x2f   :  { %223 = vxpose.xlu0.b32.cont [3/16] %v97_v4, 128  ;;  %v77_v17 = vld [vmem:[#allocation5 + $0x80] sm:$0xff]  ;;  %v79_v19 = vld [vmem:[#allocation5 + $0x90] sm:$0xff]  ;;  %v102_v40 = vld [vmem:[#allocation5 + $0x148] sm:$0xff] }
  0x30   :  { %159 = vxpose.xlu1.b32.cont [3/16] %v65_v5, 128  ;;  %v113_v20 = vld [vmem:[#allocation5 + $0x1a0] sm:$0xff]  ;;  %v115_v22 = vld [vmem:[#allocation5 + $0x1b0] sm:$0xff]  ;;  %v70_v41 = vld [vmem:[#allocation5 + $0x48] sm:$0xff] }
  0x31   :  { %v81_v21 = vld [vmem:[#allocation5 + $0xa0] sm:$0xff]  ;;  %v83_v23 = vld [vmem:[#allocation5 + $0xb0] sm:$0xff]  ;;  %v104_v42 = vld [vmem:[#allocation5 + $0x158] sm:$0xff] }
  0x32   :  { %v117_v24 = vld [vmem:[#allocation5 + $0x1c0] sm:$0xff]  ;;  %v119_v26 = vld [vmem:[#allocation5 + $0x1d0] sm:$0xff]  ;;  %v72_v43 = vld [vmem:[#allocation5 + $0x58] sm:$0xff] }
  0x33   :  { %224 = vxpose.xlu0.b32.cont [4/16] %v99_v6, 128  ;;  %v85_v25 = vld [vmem:[#allocation5 + $0xc0] sm:$0xff]  ;;  %v87_v27 = vld [vmem:[#allocation5 + $0xd0] sm:$0xff]  ;;  %v106_v44 = vld [vmem:[#allocation5 + $0x168] sm:$0xff] }
  0x34   :  { %160 = vxpose.xlu1.b32.cont [4/16] %v67_v7, 128  ;;  %v121_v28 = vld [vmem:[#allocation5 + $0x1e0] sm:$0xff]  ;;  %v123_v30 = vld [vmem:[#allocation5 + $0x1f0] sm:$0xff]  ;;  %v74_v45 = vld [vmem:[#allocation5 + $0x68] sm:$0xff] }
  0x35   :  { %v89_v29 = vld [vmem:[#allocation5 + $0xe0] sm:$0xff]  ;;  %v91_v31 = vld [vmem:[#allocation5 + $0xf0] sm:$0xff]  ;;  %v108_v46 = vld [vmem:[#allocation5 + $0x178] sm:$0xff] }
  0x36   :  { %v76_v47 = vld [vmem:[#allocation5 + $0x78] sm:$0xff]  ;;  %v110_v48 = vld [vmem:[#allocation5 + $0x188] sm:$0xff]  ;;  %v125_v2 = vld [vmem:[#allocation5 + $0x200] sm:$0xff] }
  0x37   :  { %225 = vxpose.xlu0.b32.cont [5/16] %v101_v8, 128  ;;  %v78_v49 = vld [vmem:[#allocation5 + $0x88] sm:$0xff]  ;;  %v112_v50 = vld [vmem:[#allocation5 + $0x198] sm:$0xff]  ;;  %v127_v6 = vld [vmem:[#allocation5 + $0x210] sm:$0xff] }
  0x38   :  { %161 = vxpose.xlu1.b32.cont [5/16] %v69_v9, 128  ;;  %v80_v51 = vld [vmem:[#allocation5 + $0x98] sm:$0xff]  ;;  %v114_v52 = vld [vmem:[#allocation5 + $0x1a8] sm:$0xff] }
  0x39   :  { %v82_v53 = vld [vmem:[#allocation5 + $0xa8] sm:$0xff]  ;;  %v116_v54 = vld [vmem:[#allocation5 + $0x1b8] sm:$0xff] }
  0x3a   :  { %v84_v55 = vld [vmem:[#allocation5 + $0xb8] sm:$0xff]  ;;  %v118_v56 = vld [vmem:[#allocation5 + $0x1c8] sm:$0xff] }
  0x3b   :  { %226 = vxpose.xlu0.b32.cont [6/16] %v103_v10, 128  ;;  %v86_v57 = vld [vmem:[#allocation5 + $0xc8] sm:$0xff]  ;;  %v120_v58 = vld [vmem:[#allocation5 + $0x1d8] sm:$0xff]  ;;  %v129_v10 = vld [vmem:[#allocation5 + $0x220] sm:$0xff] }
  0x3c   :  { %162 = vxpose.xlu1.b32.cont [6/16] %v71_v11, 128  ;;  %v88_v59 = vld [vmem:[#allocation5 + $0xd8] sm:$0xff]  ;;  %v122_v60 = vld [vmem:[#allocation5 + $0x1e8] sm:$0xff] }
  0x3d   :  { %v90_v61 = vld [vmem:[#allocation5 + $0xe8] sm:$0xff]  ;;  %v124_v62 = vld [vmem:[#allocation5 + $0x1f8] sm:$0xff] }
  0x3e   :  { %v92_v63 = vld [vmem:[#allocation5 + $0xf8] sm:$0xff]  ;;  %v126_v3 = vld [vmem:[#allocation5 + $0x208] sm:$0xff] }
  0x3f   :  { %227 = vxpose.xlu0.b32.cont [7/16] %v105_v12, 128  ;;  %v128_v7 = vld [vmem:[#allocation5 + $0x218] sm:$0xff]  ;;  %v130_v11 = vld [vmem:[#allocation5 + $0x228] sm:$0xff] }
  0x40   :  { %163 = vxpose.xlu1.b32.cont [7/16] %v73_v13, 128 }
  0x43   :  { %228 = vxpose.xlu0.b32.cont [8/16] %v107_v14, 128  ;;  %v131_v14 = vld [vmem:[#allocation5 + $0x230] sm:$0xff] }
  0x44   :  { %164 = vxpose.xlu1.b32.cont [8/16] %v75_v15, 128  ;;  %v132_v15 = vld [vmem:[#allocation5 + $0x238] sm:$0xff] }
  0x47   :  { %229 = vxpose.xlu0.b32.cont [9/16] %v109_v16, 128 }
  0x48   :  { %165 = vxpose.xlu1.b32.cont [9/16] %v77_v17, 128 }
  0x4b   :  { %230 = vxpose.xlu0.b32.cont [10/16] %v111_v18, 128  ;;  %v133_v18 = vld [vmem:[#allocation5 + $0x240] sm:$0xff] }
  0x4c   :  { %166 = vxpose.xlu1.b32.cont [10/16] %v79_v19, 128  ;;  %v134_v19 = vld [vmem:[#allocation5 + $0x248] sm:$0xff] }
  0x4f   :  { %231 = vxpose.xlu0.b32.cont [11/16] %v113_v20, 128 }
  0x50   :  { %167 = vxpose.xlu1.b32.cont [11/16] %v81_v21, 128 }
  0x53   :  { %232 = vxpose.xlu0.b32.cont [12/16] %v115_v22, 128  ;;  %v135_v22 = vld [vmem:[#allocation5 + $0x250] sm:$0xff] }
  0x54   :  { %168 = vxpose.xlu1.b32.cont [12/16] %v83_v23, 128  ;;  %v136_v23 = vld [vmem:[#allocation5 + $0x258] sm:$0xff] }
  0x57   :  { %233 = vxpose.xlu0.b32.cont [13/16] %v117_v24, 128 }
  0x58   :  { %169 = vxpose.xlu1.b32.cont [13/16] %v85_v25, 128 }
  0x5b   :  { %234 = vxpose.xlu0.b32.cont [14/16] %v119_v26, 128  ;;  %v137_v26 = vld [vmem:[#allocation5 + $0x260] sm:$0xff] }
  0x5c   :  { %170 = vxpose.xlu1.b32.cont [14/16] %v87_v27, 128  ;;  %v138_v27 = vld [vmem:[#allocation5 + $0x268] sm:$0xff] }
  0x5f   :  { %235 = vxpose.xlu0.b32.cont [15/16] %v121_v28, 128 }
  0x60   :  { %171 = vxpose.xlu1.b32.cont [15/16] %v89_v29, 128 }
  0x63   :  { %236 = vxpose.xlu0.b32.end [16/16] %v123_v30, 128  ;;  %v139_v30 = vld [vmem:[#allocation5 + $0x270] sm:$0xff] }
  0x64   :  { %172 = vxpose.xlu1.b32.end [16/16] %v91_v31, 128  ;;  %v140_v31 = vld [vmem:[#allocation5 + $0x278] sm:$0xff] }
  0x67   :  { %253 = vxpose.xlu0.b32.start [1/16] %v94_v32, 128 }
  0x68   :  { %189 = vxpose.xlu1.b32.start [1/16] %v62_v33, 128 }
  0x6b   :  { %254 = vxpose.xlu0.b32.cont [2/16] %v96_v34, 128  ;;  %v141_v34 = vld [vmem:[#allocation5 + $0x280] sm:$0xff] }
  0x6c   :  { %190 = vxpose.xlu1.b32.cont [2/16] %v64_v35, 128  ;;  %v142_v35 = vld [vmem:[#allocation5 + $0x288] sm:$0xff] }
  0x6f   :  { %255 = vxpose.xlu0.b32.cont [3/16] %v98_v36, 128 }
  0x70   :  { %191 = vxpose.xlu1.b32.cont [3/16] %v66_v37, 128 }
  0x73   :  { %256 = vxpose.xlu0.b32.cont [4/16] %v100_v38, 128  ;;  %v143_v38 = vld [vmem:[#allocation5 + $0x290] sm:$0xff] }
  0x74   :  { %192 = vxpose.xlu1.b32.cont [4/16] %v68_v39, 128  ;;  %v144_v39 = vld [vmem:[#allocation5 + $0x298] sm:$0xff] }
  0x77   :  { %257 = vxpose.xlu0.b32.cont [5/16] %v102_v40, 128 }
  0x78   :  { %193 = vxpose.xlu1.b32.cont [5/16] %v70_v41, 128 }
  0x7b   :  { %258 = vxpose.xlu0.b32.cont [6/16] %v104_v42, 128  ;;  %v145_v42 = vld [vmem:[#allocation5 + $0x2a0] sm:$0xff] }
  0x7c   :  { %194 = vxpose.xlu1.b32.cont [6/16] %v72_v43, 128  ;;  %v146_v43 = vld [vmem:[#allocation5 + $0x2a8] sm:$0xff] }
  0x7f   :  { %259 = vxpose.xlu0.b32.cont [7/16] %v106_v44, 128 }
  0x80   :  { %195 = vxpose.xlu1.b32.cont [7/16] %v74_v45, 128 }
  0x83   :  { %260 = vxpose.xlu0.b32.cont [8/16] %v108_v46, 128  ;;  %v147_v46 = vld [vmem:[#allocation5 + $0x2b0] sm:$0xff] }
  0x84   :  { %196 = vxpose.xlu1.b32.cont [8/16] %v76_v47, 128  ;;  %v148_v47 = vld [vmem:[#allocation5 + $0x2b8] sm:$0xff] }
  0x87   :  { %261 = vxpose.xlu0.b32.cont [9/16] %v110_v48, 128 }
  0x88   :  { %197 = vxpose.xlu1.b32.cont [9/16] %v78_v49, 128 }
  0x8b   :  { %262 = vxpose.xlu0.b32.cont [10/16] %v112_v50, 128  ;;  %v149_v50 = vld [vmem:[#allocation5 + $0x2c0] sm:$0xff] }
  0x8c   :  { %198 = vxpose.xlu1.b32.cont [10/16] %v80_v51, 128  ;;  %v150_v51 = vld [vmem:[#allocation5 + $0x2c8] sm:$0xff] }
  0x8f   :  { %263 = vxpose.xlu0.b32.cont [11/16] %v114_v52, 128 }
  0x90   :  { %199 = vxpose.xlu1.b32.cont [11/16] %v82_v53, 128 }
  0x93   :  { %264 = vxpose.xlu0.b32.cont [12/16] %v116_v54, 128  ;;  %v151_v54 = vld [vmem:[#allocation5 + $0x2d0] sm:$0xff] }
  0x94   :  { %200 = vxpose.xlu1.b32.cont [12/16] %v84_v55, 128  ;;  %v152_v55 = vld [vmem:[#allocation5 + $0x2d8] sm:$0xff] }
  0x97   :  { %265 = vxpose.xlu0.b32.cont [13/16] %v118_v56, 128 }
  0x98   :  { %201 = vxpose.xlu1.b32.cont [13/16] %v86_v57, 128 }
  0x9b   :  { %266 = vxpose.xlu0.b32.cont [14/16] %v120_v58, 128  ;;  %v153_v58 = vld [vmem:[#allocation5 + $0x2e0] sm:$0xff] }
  0x9c   :  { %202 = vxpose.xlu1.b32.cont [14/16] %v88_v59, 128  ;;  %v154_v59 = vld [vmem:[#allocation5 + $0x2e8] sm:$0xff] }
  0x9f   :  { %267 = vxpose.xlu0.b32.cont [15/16] %v122_v60, 128 }
  0xa0   :  { %203 = vxpose.xlu1.b32.cont [15/16] %v90_v61, 128 }
  0xa3   :  { %268 = vxpose.xlu0.b32.end [16/16] %v124_v62, 128  ;;  %v2786_v0 = vpop.trf.xlu0  ;;  %v155_v62 = vld [vmem:[#allocation5 + $0x2f0] sm:$0xff] }
  0xa4   :  { %5542 = vst [vmem:[#allocation12_spill] sm:$0xff] %v2786_v0  ;;  %204 = vxpose.xlu1.b32.end [16/16] %v92_v63, 128  ;;  %v2788_v1 = vpop.trf.xlu1  ;;  %v156_v63 = vld [vmem:[#allocation5 + $0x2f8] sm:$0xff] }
  0xa5   :  { %5543 = vst [vmem:[#allocation13_spill] sm:$0xff] %v2788_v1 }
  0xa7   :  { %285 = vxpose.xlu0.b32.start [1/16] %v125_v2, 128  ;;  %v2790_v4 = vpop.trf.xlu0 }
  0xa8   :  { %5544 = vst [vmem:[#allocation14_spill] sm:$0xff] %v2790_v4  ;;  %v2792_v5 = vpop.trf.xlu1  ;;  %317 = vxpose.xlu1.b32.start [1/16] %v126_v3, 128 }
  0xa9   :  { %5545 = vst [vmem:[#allocation15_spill] sm:$0xff] %v2792_v5 }
  0xab   :  { %286 = vxpose.xlu0.b32.cont [2/16] %v127_v6, 128  ;;  %v2794_v8 = vpop.trf.xlu0 }
  0xac   :  { %5546 = vst [vmem:[#allocation16_spill] sm:$0xff] %v2794_v8  ;;  %v2796_v9 = vpop.trf.xlu1  ;;  %318 = vxpose.xlu1.b32.cont [2/16] %v128_v7, 128 }
  0xad   :  { %5547 = vst [vmem:[#allocation17_spill] sm:$0xff] %v2796_v9 }
  0xaf   :  { %287 = vxpose.xlu0.b32.cont [3/16] %v129_v10, 128  ;;  %v2798_v12 = vpop.trf.xlu0 }
  0xb0   :  { %5548 = vst [vmem:[#allocation18_spill] sm:$0xff] %v2798_v12  ;;  %v2800_v13 = vpop.trf.xlu1  ;;  %319 = vxpose.xlu1.b32.cont [3/16] %v130_v11, 128 }
  0xb1   :  { %5549 = vst [vmem:[#allocation19_spill] sm:$0xff] %v2800_v13 }
  0xb3   :  { %288 = vxpose.xlu0.b32.cont [4/16] %v131_v14, 128  ;;  %v2802_v16 = vpop.trf.xlu0 }
  0xb4   :  { %5550 = vst [vmem:[#allocation20_spill] sm:$0xff] %v2802_v16  ;;  %v2804_v17 = vpop.trf.xlu1  ;;  %320 = vxpose.xlu1.b32.cont [4/16] %v132_v15, 128 }
  0xb7   :  { %289 = vxpose.xlu0.b32.cont [5/16] %v133_v18, 128  ;;  %v2806_v20 = vpop.trf.xlu0 }
  0xb8   :  { %v2808_v21 = vpop.trf.xlu1  ;;  %321 = vxpose.xlu1.b32.cont [5/16] %v134_v19, 128 }
  0xb9   :  { %5551 = vst [vmem:[#allocation21_spill] sm:$0xff] %v2808_v21 }
  0xbb   :  { %290 = vxpose.xlu0.b32.cont [6/16] %v135_v22, 128  ;;  %v2810_v24 = vpop.trf.xlu0 }
  0xbc   :  { %v2812_v25 = vpop.trf.xlu1  ;;  %322 = vxpose.xlu1.b32.cont [6/16] %v136_v23, 128 }
  0xbf   :  { %291 = vxpose.xlu0.b32.cont [7/16] %v137_v26, 128  ;;  %v2814_v28 = vpop.trf.xlu0 }
  0xc0   :  { %v2816_v29 = vpop.trf.xlu1  ;;  %323 = vxpose.xlu1.b32.cont [7/16] %v138_v27, 128 }
  0xc1   :  { %5552 = vst [vmem:[#allocation22_spill] sm:$0xff] %v2816_v29 }
  0xc3   :  { %292 = vxpose.xlu0.b32.cont [8/16] %v139_v30, 128  ;;  %v2818_v32 = vpop.trf.xlu0  ;;  %v1454_v30 = vld [vmem:[#allocation2] sm:$0xff] }
  0xc4   :  { %v2820_v33 = vpop.trf.xlu1  ;;  %324 = vxpose.xlu1.b32.cont [8/16] %v140_v31, 128  ;;  %v1455_v31 = vld [vmem:[#allocation2 + $0x8] sm:$0xff] }
  0xc5   :  { %5553 = vst [vmem:[#allocation23_spill] sm:$0xff] %v2820_v33 }
  0xc7   :  { %293 = vxpose.xlu0.b32.cont [9/16] %v141_v34, 128  ;;  %v2822_v36 = vpop.trf.xlu0  ;;  %v351_v34 = vmin.f32 %v2788_v1, %v2796_v9 }
  0xc8   :  { %v2824_v37 = vpop.trf.xlu1  ;;  %325 = vxpose.xlu1.b32.cont [9/16] %v142_v35, 128 }
  0xcb   :  { %294 = vxpose.xlu0.b32.cont [10/16] %v143_v38, 128  ;;  %v2826_v40 = vpop.trf.xlu0 }
  0xcc   :  { %v2828_v41 = vpop.trf.xlu1  ;;  %326 = vxpose.xlu1.b32.cont [10/16] %v144_v39, 128  ;;  %v1462_v39 = vand.u32 2147483647, %v1454_v30 }
  0xcf   :  { %295 = vxpose.xlu0.b32.cont [11/16] %v145_v42, 128  ;;  %v2830_v44 = vpop.trf.xlu0  ;;  %v1463_v42 = vand.u32 2147483647, %v1455_v31 }
  0xd0   :  { %v2832_v45 = vpop.trf.xlu1  ;;  %327 = vxpose.xlu1.b32.cont [11/16] %v146_v43, 128  ;;  %v1456_v43 = vld [vmem:[#allocation2 + $0x10] sm:$0xff] }
  0xd3   :  { %296 = vxpose.xlu0.b32.cont [12/16] %v147_v46, 128  ;;  %v2834_v48 = vpop.trf.xlu0  ;;  %v1457_v46 = vld [vmem:[#allocation2 + $0x18] sm:$0xff] }
  0xd4   :  { %v2836_v49 = vpop.trf.xlu1  ;;  %328 = vxpose.xlu1.b32.cont [12/16] %v148_v47, 128  ;;  %v481_v47 = vmax.f32 %v2788_v1, %v2796_v9  ;;  %v1465_v30 = vand.u32 2147483647, %v1457_v46  ;;  %v353_v1 = vmin.f32 %v351_v34, %v2804_v17 }
  0xd7   :  { %297 = vxpose.xlu0.b32.cont [13/16] %v149_v50, 128  ;;  %v2838_v52 = vpop.trf.xlu0  ;;  %v352_v50 = vmin.f32 %v2792_v5, %v2800_v13 }
  0xd8   :  { %v2840_v53 = vpop.trf.xlu1  ;;  %329 = vxpose.xlu1.b32.cont [13/16] %v150_v51, 128  ;;  %v388_v51 = vmin.f32 %v2786_v0, %v2794_v8 }
  0xd9   :  { %v354_v46 = vmin.f32 %v352_v50, %v2808_v21 }
  0xda   :  { %v390_v31 = vmin.f32 %v388_v51, %v2802_v16 }
  0xdb   :  { %298 = vxpose.xlu0.b32.cont [14/16] %v151_v54, 128  ;;  %v2842_v56 = vpop.trf.xlu0  ;;  %v518_v54 = vmax.f32 %v2786_v0, %v2794_v8  ;;  %v483_v0 = vmax.f32 %v481_v47, %v2804_v17 }
  0xdc   :  { %v2844_v57 = vpop.trf.xlu1  ;;  %330 = vxpose.xlu1.b32.cont [14/16] %v152_v55, 128  ;;  %v482_v55 = vmax.f32 %v2792_v5, %v2800_v13  ;;  %v2905_v13 = vmax.f32.f32 %v1462_v39, %v1463_v42  ;;  %v1459_v5 = vld [vmem:[#allocation2 + $0x28] sm:$0xff]  ;;  %v392_v34 = vmin.f32 %v390_v31, %v2810_v24 }
  0xdd   :  { %v520_v9 = vmax.f32 %v518_v54, %v2802_v16  ;;  %v355_v16 = vmin.f32 %v353_v1, %v2812_v25  ;;  %v485_v39 = vmax.f32 %v483_v0, %v2812_v25 }
  0xde   :  { %v484_v51 = vmax.f32 %v482_v55, %v2808_v21  ;;  %v1461_v21 = vld [vmem:[#allocation2 + $0x38] sm:$0xff]  ;;  %v394_v1 = vmin.f32 %v392_v34, %v2818_v32 }
  0xdf   :  { %299 = vxpose.xlu0.b32.cont [15/16] %v153_v58, 128  ;;  %v2846_v60 = vpop.trf.xlu0  ;;  %v1458_v58 = vld [vmem:[#allocation2 + $0x20] sm:$0xff]  ;;  %v522_v54 = vmax.f32 %v520_v9, %v2810_v24  ;;  %v1460_v9 = vld [vmem:[#allocation2 + $0x30] sm:$0xff]  ;;  %v1469_v34 = vand.u32 2147483647, %v1461_v21 }
  0xe0   :  { %v2848_v61 = vpop.trf.xlu1  ;;  %331 = vxpose.xlu1.b32.cont [15/16] %v154_v59, 128  ;;  %v389_v59 = vmin.f32 %v2790_v4, %v2798_v12  ;;  %v486_v50 = vmax.f32 %v484_v51, %v2816_v29 }
  0xe1   :  { %v524_v0 = vmax.f32 %v522_v54, %v2818_v32 }
  0xe3   :  { %300 = vxpose.xlu0.b32.end [16/16] %v155_v62, 128  ;;  %v2850_v2 = vpop.trf.xlu0  ;;  %v519_v62 = vmax.f32 %v2790_v4, %v2798_v12  ;;  %v391_v12 = vmin.f32 %v389_v59, %v2806_v20  ;;  %v1466_v4 = vand.u32 2147483647, %v1458_v58  ;;  %v526_v54 = vmax.f32 %v524_v0, %v2826_v40 }
  0xe4   :  { %v2852_v3 = vpop.trf.xlu1  ;;  %332 = vxpose.xlu1.b32.end [16/16] %v156_v63, 128  ;;  %v1464_v63 = vand.u32 2147483647, %v1456_v43 }
  0xe5   :  { %5554 = vst [vmem:[#allocation24_spill] sm:$0xff] %v2852_v3  ;;  %v521_v43 = vmax.f32 %v519_v62, %v2806_v20  ;;  %v393_v47 = vmin.f32 %v391_v12, %v2814_v28  ;;  %v356_v62 = vmin.f32 %v354_v46, %v2816_v29  ;;  %v487_v12 = vmax.f32 %v485_v39, %v2820_v33 }
  0xe6   :  { %v1473_v42 = vmax.f32.f32 %v1464_v63, %v1465_v30  ;;  %v396_v46 = vmin.f32 %v394_v1, %v2826_v40  ;;  %v1468_v29 = vand.u32 2147483647, %v1460_v9  ;;  %v528_v21 = vmax.f32 %v526_v54, %v2834_v48 }
  0xe7   :  { %v2854_v6 = vpop.trf.xlu0  ;;  %v523_v59 = vmax.f32 %v521_v43, %v2814_v28  ;;  %v395_v58 = vmin.f32 %v393_v47, %v2822_v36  ;;  %v358_v30 = vmin.f32 %v356_v62, %v2824_v37  ;;  %v488_v43 = vmax.f32 %v486_v50, %v2824_v37 }
  0xe8   :  { %v2856_v7 = vpop.trf.xlu1  ;;  %v489_v39 = vmax.f32 %v487_v12, %v2828_v41 }
  0xe9   :  { %5555 = vst [vmem:[#allocation25_spill] sm:$0xff] %v2856_v7  ;;  %v525_v63 = vmax.f32 %v523_v59, %v2822_v36  ;;  %v397_v47 = vmin.f32 %v395_v58, %v2830_v44  ;;  %v360_v50 = vmin.f32 %v358_v30, %v2832_v45  ;;  %v1479_v58 = vmax.f32.f32 %v1468_v29, %v1469_v34 }
  0xea   :  { %v491_v9 = vmax.f32 %v489_v39, %v2836_v49  ;;  %v530_v30 = vmax.f32 %v528_v21, %v2842_v56 }
  0xeb   :  { %v2858_v10 = vpop.trf.xlu0  ;;  %v527_v62 = vmax.f32 %v525_v63, %v2830_v44  ;;  %v399_v1 = vmin.f32 %v397_v47, %v2838_v52 }
  0xec   :  { %v2860_v11 = vpop.trf.xlu1  ;;  %v532_v34 = vmax.f32 %v530_v30, %v2850_v2 }
  0xed   :  { %5556 = vst [vmem:[#allocation26_spill] sm:$0xff] %v2860_v11  ;;  %v529_v0 = vmax.f32 %v527_v62, %v2838_v52  ;;  %v401_v39 = vmin.f32 %v399_v1, %v2846_v60 }
  0xef   :  { %v2862_v14 = vpop.trf.xlu0  ;;  %v531_v47 = vmax.f32 %v529_v0, %v2846_v60 }
  0xf0   :  { %v2864_v15 = vpop.trf.xlu1 }
  0xf1   :  { %5557 = vst [vmem:[#allocation27_spill] sm:$0xff] %v2864_v15  ;;  %v533_v21 = vmax.f32 %v531_v47, %v2854_v6 }
  0xf3   :  { %v2866_v18 = vpop.trf.xlu0 }
  0xf4   :  { %v2868_v19 = vpop.trf.xlu1 }
  0xf5   :  { %5558 = vst [vmem:[#allocation28_spill] sm:$0xff] %v2868_v19 }
  0xf7   :  { %v2870_v22 = vpop.trf.xlu0 }
  0xf8   :  { %v2872_v23 = vpop.trf.xlu1 }
  0xf9   :  { %5559 = vst [vmem:[#allocation29_spill] sm:$0xff] %v2872_v23 }
  0xfb   :  { %v2874_v26 = vpop.trf.xlu0 }
  0xfc   :  { %v2876_v27 = vpop.trf.xlu1 }
  0xfd   :  { %5560 = vst [vmem:[#allocation30_spill] sm:$0xff] %v2876_v27 }
  0xff   :  { %v2880_v35 = vpop.trf.xlu0 }
 0x100   :  { %v2882_v38 = vpop.trf.xlu1 }
 0x101   :  { %5561 = vst [vmem:[#allocation31_spill] sm:$0xff] %v2882_v38 }
 0x103   :  { %v2901_v38 = vpop.trf.xlu0 }
 0x104   :  { %v2903_v8 = vpop.trf.xlu1 }
 0x105   :  { %5562 = vst [vmem:[#allocation32_spill] sm:$0xff] %v2903_v8  ;;  %v1467_v8 = vand.u32 2147483647, %v1459_v5  ;;  %v357_v5 = vmin.f32 %v355_v16, %v2820_v33 }
 0x107   :  { %v2920_v55 = vpop.trf.xlu0  ;;  %v1476_v51 = vmax.f32.f32 %v1466_v4, %v1467_v8  ;;  %v359_v16 = vmin.f32 %v357_v5, %v2828_v41  ;;  %v490_v4 = vmax.f32 %v488_v43, %v2832_v45  ;;  %v398_v8 = vmin.f32 %v396_v46, %v2834_v48 }
 0x108   :  { %v2922_v31 = vpop.trf.xlu1  ;;  %v362_v5 = vmin.f32 %v360_v50, %v2840_v53  ;;  %v493_v46 = vmax.f32 %v491_v9, %v2844_v57 }
 0x109   :  { %5563 = vst [vmem:[#allocation33_spill] sm:$0xff] %v2922_v31  ;;  %v492_v12 = vmax.f32 %v490_v4, %v2840_v53  ;;  %v400_v63 = vmin.f32 %v398_v8, %v2842_v56  ;;  %v403_v8 = vmin.f32 %v401_v39, %v2854_v6 }
 0x10a   :  { %v364_v62 = vmin.f32 %v362_v5, %v2848_v61  ;;  %v495_v4 = vmax.f32 %v493_v46, %v2852_v3 }
 0x10b   :  { %1474 = vmax.xlane.f32.xlu1 %v1473_v42  ;;  %v2937_v33 = vpop.trf.xlu0  ;;  %v361_v42 = vmin.f32 %v359_v16, %v2836_v49  ;;  %v494_v29 = vmax.f32 %v492_v12, %v2848_v61  ;;  %v405_v30 = vmin.f32 %v403_v8, %v2862_v14 }
 0x10c   :  { %v2939_v59 = vpop.trf.xlu1  ;;  %v497_v5 = vmax.f32 %v495_v4, %v2860_v11 }
 0x10d   :  { %5564 = vst [vmem:[#allocation34_spill] sm:$0xff] %v2939_v59  ;;  %v363_v43 = vmin.f32 %v361_v42, %v2844_v57  ;;  %v366_v42 = vmin.f32 %v364_v62, %v2856_v7  ;;  %v496_v9 = vmax.f32 %v494_v29, %v2856_v7 }
 0x10e   :  { %v499_v29 = vmax.f32 %v497_v5, %v2868_v19 }
 0x10f   :  { %1477 = vmax.xlane.f32.xlu1 %v1476_v51  ;;  %v2956_v54 = vpop.trf.xlu0  ;;  %v402_v51 = vmin.f32 %v400_v63, %v2850_v2  ;;  %v365_v50 = vmin.f32 %v363_v43, %v2852_v3  ;;  %v535_v43 = vmax.f32 %v533_v21, %v2862_v14  ;;  %v368_v46 = vmin.f32 %v366_v42, %v2864_v15 }
 0x110   :  { %v2958_v16 = vpop.trf.xlu1  ;;  %1471 = vmax.xlane.f32.xlu0 %v2905_v13  ;;  %v534_v13 = vmax.f32 %v532_v34, %v2858_v10 }
 0x111   :  { %5565 = vst [vmem:[#allocation35_spill] sm:$0xff] %v2958_v16  ;;  %v404_v1 = vmin.f32 %v402_v51, %v2858_v10  ;;  %v367_v0 = vmin.f32 %v365_v50, %v2860_v11  ;;  %v407_v51 = vmin.f32 %v405_v30, %v2870_v22  ;;  %v537_v34 = vmax.f32 %v535_v43, %v2870_v22  ;;  %v5568_v30 = vld [vmem:[#allocation31_spill] sm:$0xff] }
 0x112   :  { %v536_v47 = vmax.f32 %v534_v13, %v2866_v18  ;;  %v370_v50 = vmin.f32 %v368_v46, %v2872_v23 }
 0x113   :  { %1480 = vmax.xlane.f32.xlu1 %v1479_v58  ;;  %v2977_v12 = vpop.trf.xlu0  ;;  %v498_v58 = vmax.f32 %v496_v9, %v2864_v15  ;;  %v406_v39 = vmin.f32 %v404_v1, %v2866_v18  ;;  %v369_v62 = vmin.f32 %v367_v0, %v2868_v19  ;;  %v501_v9 = vmax.f32 %v499_v29, %v2876_v27 }
 0x114   :  { %v2979_v63 = vpop.trf.xlu1  ;;  %v538_v21 = vmax.f32 %v536_v47, %v2874_v26  ;;  %v409_v0 = vmin.f32 %v407_v51, %v2880_v35  ;;  %v539_v5 = vmax.f32 %v537_v34, %v2880_v35  ;;  %v372_v43 = vmin.f32 %v370_v50, %v5568_v30  ;;  %v5569_v47 = vld [vmem:[#allocation32_spill] sm:$0xff] }
 0x115   :  { %5566 = vst [vmem:[#allocation36_spill] sm:$0xff] %v2979_v63  ;;  %v500_v4 = vmax.f32 %v498_v58, %v2872_v23  ;;  %v408_v8 = vmin.f32 %v406_v39, %v2874_v26  ;;  %v371_v42 = vmin.f32 %v369_v62, %v2876_v27  ;;  %v503_v29 = vmax.f32 %v501_v9, %v5569_v47 }
 0x116   :  { %v540_v39 = vmax.f32 %v538_v21, %v2901_v38  ;;  %v411_v27 = vmin.f32 %v409_v0, %v2920_v55  ;;  %v541_v23 = vmax.f32 %v539_v5, %v2920_v55  ;;  %v374_v51 = vmin.f32 %v372_v43, %v2922_v31 }
 0x117   :  { %v2997_v1 = vpop.trf.xlu0  ;;  %v502_v46 = vmax.f32 %v500_v4, %v5568_v30  ;;  %v410_v58 = vmin.f32 %v408_v8, %v2901_v38  ;;  %v373_v62 = vmin.f32 %v371_v42, %v5569_v47  ;;  %v505_v21 = vmax.f32 %v503_v29, %v2939_v59 }
 0x118   :  { %v2999_v13 = vpop.trf.xlu1  ;;  %v542_v4 = vmax.f32 %v540_v39, %v2937_v33  ;;  %v413_v9 = vmin.f32 %v411_v27, %v2956_v54  ;;  %v543_v0 = vmax.f32 %v541_v23, %v2956_v54  ;;  %v376_v5 = vmin.f32 %v374_v51, %v2958_v16 }
 0x119   :  { %5567 = vst [vmem:[#allocation37_spill] sm:$0xff] %v2999_v13  ;;  %v504_v34 = vmax.f32 %v502_v46, %v2922_v31  ;;  %v412_v50 = vmin.f32 %v410_v58, %v2937_v33  ;;  %v375_v8 = vmin.f32 %v373_v62, %v2939_v59  ;;  %v507_v62 = vmax.f32 %v505_v21, %v2979_v63 }
 0x11a   :  { %v544_v58 = vmax.f32 %v542_v4, %v2977_v12  ;;  %v415_v29 = vmin.f32 %v413_v9, %v2997_v1  ;;  %v545_v59 = vmax.f32 %v543_v0, %v2997_v1  ;;  %v378_v27 = vmin.f32 %v376_v5, %v2999_v13 }
 0x11b   :  { %v3017_v30 = vpop.trf.xlu0  ;;  %v506_v43 = vmax.f32 %v504_v34, %v2958_v16  ;;  %v414_v46 = vmin.f32 %v412_v50, %v2977_v12  ;;  %v377_v39 = vmin.f32 %v375_v8, %v2979_v63  ;;  %v5572_v63 = vlaneseq }
 0x11c   :  { %v3019_v42 = vpop.trf.xlu1  ;;  %v546_v34 = vmax.f32 %v544_v58, %v3017_v30 }
 0x11d   :  { %5570 = vst [vmem:[#allocation38_spill] sm:$0xff] %v3019_v42  ;;  %v508_v23 = vmax.f32 %v506_v43, %v2999_v13  ;;  %v416_v51 = vmin.f32 %v414_v46, %v3017_v30  ;;  %v379_v50 = vmin.f32 %v377_v39, %v3019_v42  ;;  %v509_v4 = vmax.f32 %v507_v62, %v3019_v42 }
 0x11e   :  { %v3046_v39 = vshrl.u32 %v5572_v63, 7 }
 0x11f   :  { %v3037_v16 = vpop.trf.xlu0 }
 0x120   :  { %v3039_v8 = vpop.trf.xlu1  ;;  %v417_v21 = vmin.f32 %v415_v29, %v3037_v16  ;;  %v547_v9 = vmax.f32 %v545_v59, %v3037_v16  ;;  %5573 = vst [vmem:[#allocation40_spill] sm:$0xff] %v3046_v39  ;;  %v3058_v63 = vsub.s32 0, %v3046_v39 }
 0x121   :  { %5571 = vst [vmem:[#allocation39_spill] sm:$0xff] %v3039_v8  ;;  %v380_v0 = vmin.f32 %v378_v27, %v3039_v8  ;;  %v510_v5 = vmax.f32 %v508_v23, %v3039_v8  ;;  %v3055_v23 = vld [vmem:[%s5333_s2] sm:$0x7] }
 0x122   :  { %v418_v43 = vmin.f32 %v416_v51, %v417_v21  ;;  %v548_v46 = vmax.f32 %v546_v34, %v547_v9  ;;  %5575 = vst [vmem:[#allocation42_spill] sm:$0xff] %v3055_v23  ;;  %5576 = vst [vmem:[#allocation43_spill] sm:$0xff] %v3058_v63  ;;  %v3061_v51 = vsub.s32 1, %v3046_v39 }
 0x123   :  { %v381_v13 = vmin.f32 %v379_v50, %v380_v0  ;;  %v511_v58 = vmax.f32 %v509_v4, %v510_v5  ;;  %v3048_v62 = vpop.trf.xlu0  ;;  %v3065_v50 = vld [vmem:[#allocation7] sm:$0x7] }
 0x124   :  { %v419_v42 = vrot.slane %v418_v43, 4  ;;  %v549_v31 = vrot.slane %v548_v46, 4  ;;  %v3050_v29 = vpop.trf.xlu1  ;;  %5577 = vst [vmem:[#allocation44_spill] sm:$0xff] %v3061_v51  ;;  %5579 = vst [vmem:[#allocation46_spill] sm:$0xff] %v3065_v50  ;;  %v470_v0 = vrot.slane %v3065_v50, %v3061_v51  ;;  %v600_v5 = vrot.slane %v3055_v23, %v3061_v51 }
 0x125   :  { %v382_v47 = vrot.slane %v381_v13, 4  ;;  %v512_v19 = vrot.slane %v511_v58, 4  ;;  %5574 = vst [vmem:[#allocation41_spill] sm:$0xff] %v3050_v29 }
 0x126   :  { %v420_v59 = vmin.f32 %v418_v43, %v419_v42  ;;  %v550_v15 = vmax.f32 %v548_v46, %v549_v31  ;;  %v466_v43 = vrot.slane %v3065_v50, %v3058_v63  ;;  %v596_v46 = vrot.slane %v3055_v23, %v3058_v63 }
 0x127   :  { %v383_v27 = vmin.f32 %v381_v13, %v382_v47  ;;  %v513_v11 = vmax.f32 %v511_v58, %v512_v19  ;;  %v3063_v34 = vpop.trf.xlu0 }
 0x128   :  { %5578 = vst [vmem:[#allocation45_spill] sm:$0xff] %v3063_v34  ;;  %v421_v4 = vrot.slane %v420_v59, 2  ;;  %v551_v42 = vrot.slane %v550_v15, 2  ;;  %v3077_v39 = vpop.trf.xlu1  ;;  %v5650_v34 = vld [vmem:[#allocation37_spill] sm:$0xff] }
 0x129   :  { %v384_v31 = vrot.slane %v383_v27, 2  ;;  %v514_v13 = vrot.slane %v513_v11, 2  ;;  %5581 = vst [vmem:[#allocation48_spill] sm:$0xff] %v3077_v39 }
 0x12a   :  { %v422_v19 = vmin.f32 %v420_v59, %v421_v4  ;;  %v552_v47 = vmax.f32 %v550_v15, %v551_v42 }
 0x12b   :  { %v385_v21 = vmin.f32 %v383_v27, %v384_v31  ;;  %v515_v9 = vmax.f32 %v513_v11, %v514_v13  ;;  %v3075_v58 = vpop.trf.xlu0 }
 0x12c   :  { %5580 = vst [vmem:[#allocation47_spill] sm:$0xff] %v3075_v58  ;;  %v423_v59 = vrot.slane %v422_v19, 1  ;;  %v553_v15 = vrot.slane %v552_v47, 1  ;;  %v3081_v3 = vpop.trf.xlu1 }
 0x12d   :  { %v386_v27 = vrot.slane %v385_v21, 1  ;;  %v516_v11 = vrot.slane %v515_v9, 1  ;;  %5583 = vst [vmem:[#allocation50_spill] sm:$0xff] %v3081_v3  ;;  %v5626_v3 = vld [vmem:[#allocation13_spill] sm:$0xff] }
 0x12e   :  { %v424_v4 = vmin.f32 %v422_v19, %v423_v59  ;;  %v554_v42 = vmax.f32 %v552_v47, %v553_v15  ;;  %v5586_v59 = vld [vmem:[#allocation14_spill] sm:$0xff] }
 0x12f   :  { %v387_v31 = vmin.f32 %v385_v21, %v386_v27  ;;  %v517_v13 = vmax.f32 %v515_v9, %v516_v11  ;;  %v3079_v29 = vpop.trf.xlu0  ;;  %v5587_v27 = vld [vmem:[#allocation16_spill] sm:$0xff] }
 0x130   :  { %5582 = vst [vmem:[#allocation49_spill] sm:$0xff] %v3079_v29  ;;  %v479_v51 = vmul.f32 %v470_v0, %v424_v4  ;;  %v609_v8 = vmul.f32 %v600_v5, %v554_v42  ;;  %v5648_v29 = vld [vmem:[#allocation35_spill] sm:$0xff] }
 0x131   :  { %v478_v50 = vmul.f32 %v466_v43, %v387_v31  ;;  %v608_v7 = vmul.f32 %v596_v46, %v517_v13  ;;  %v5585_v43 = vld [vmem:[#allocation12_spill] sm:$0xff] }
 0x132   :  { %v3084_v23 = vrot.slane %v479_v51, %v3058_v63  ;;  %v3095_v9 = vrot.slane %v609_v8, %v3058_v63  ;;  %v5588_v8 = vld [vmem:[#allocation18_spill] sm:$0xff] }
 0x133   :  { %v3092_v21 = vpop.trf.xlu0  ;;  %v3098_v0 = vrot.slane %v478_v50, %v3058_v63  ;;  %v3101_v51 = vrot.slane %v608_v7, %v3058_v63  ;;  %v5589_v50 = vld [vmem:[#allocation20_spill] sm:$0xff] }
 0x134   :  { %5584 = vst [vmem:[#allocation51_spill] sm:$0xff] %v3092_v21  ;;  %v624_v46 = vmax.f32 %v5585_v43, %v3084_v23  ;;  %v627_v15 = vmax.f32 %v5586_v59, %v3084_v23  ;;  %v630_v11 = vmax.f32 %v5587_v27, %v3084_v23  ;;  %v633_v4 = vmax.f32 %v5588_v8, %v3084_v23 }
 0x135   :  { %v636_v42 = vmax.f32 %v5589_v50, %v3084_v23  ;;  %v639_v7 = vmax.f32 %v2806_v20, %v3084_v23  ;;  %v642_v31 = vmax.f32 %v2810_v24, %v3084_v23  ;;  %v645_v13 = vmax.f32 %v2814_v28, %v3084_v23  ;;  %v3131_v20 = vpop.trf.xlu1 }
 0x136   :  { %v648_v43 = vmax.f32 %v2818_v32, %v3084_v23  ;;  %v651_v59 = vmax.f32 %v2822_v36, %v3084_v23  ;;  %v654_v27 = vmax.f32 %v2826_v40, %v3084_v23  ;;  %v657_v8 = vmax.f32 %v2830_v44, %v3084_v23  ;;  %5591 = vst [vmem:[#allocation14_spill] sm:$0xff] %v3131_v20 }
 0x137   :  { %v3129_v50 = vpop.trf.xlu0  ;;  %v660_v24 = vmax.f32 %v2834_v48, %v3084_v23  ;;  %v663_v28 = vmax.f32 %v2838_v52, %v3084_v23  ;;  %v666_v32 = vmax.f32 %v2842_v56, %v3084_v23  ;;  %v669_v36 = vmax.f32 %v2846_v60, %v3084_v23 }
 0x138   :  { %5590 = vst [vmem:[#allocation12_spill] sm:$0xff] %v3129_v50  ;;  %v672_v40 = vmax.f32 %v2850_v2, %v3084_v23  ;;  %v675_v44 = vmax.f32 %v2854_v6, %v3084_v23  ;;  %v678_v5 = vmax.f32 %v2858_v10, %v3084_v23  ;;  %v681_v48 = vmax.f32 %v2862_v14, %v3084_v23 }
 0x139   :  { %v684_v52 = vmax.f32 %v2866_v18, %v3084_v23  ;;  %v687_v56 = vmax.f32 %v2870_v22, %v3084_v23  ;;  %v690_v60 = vmax.f32 %v2874_v26, %v3084_v23  ;;  %v693_v2 = vmax.f32 %v2880_v35, %v3084_v23  ;;  %v3187_v19 = vpop.trf.xlu1 }
 0x13a   :  { %v696_v6 = vmax.f32 %v2901_v38, %v3084_v23  ;;  %v699_v10 = vmax.f32 %v2920_v55, %v3084_v23  ;;  %v702_v14 = vmax.f32 %v2937_v33, %v3084_v23  ;;  %v705_v18 = vmax.f32 %v2956_v54, %v3084_v23  ;;  %5597 = vst [vmem:[#allocation54_spill] sm:$0xff] %v3187_v19 }
 0x13b   :  { %v3165_v47 = vpop.trf.xlu0  ;;  %v708_v22 = vmax.f32 %v2977_v12, %v3084_v23  ;;  %v711_v26 = vmax.f32 %v2997_v1, %v3084_v23  ;;  %v714_v35 = vmax.f32 %v3017_v30, %v3084_v23  ;;  %v717_v38 = vmax.f32 %v3037_v16, %v3084_v23 }
 0x13c   :  { %5592 = vst [vmem:[#allocation16_spill] sm:$0xff] %v3165_v47  ;;  %v3176_v55 = vmin.f32 %v624_v46, %v3095_v9  ;;  %v3179_v33 = vmin.f32 %v627_v15, %v3095_v9  ;;  %v3182_v54 = vmin.f32 %v636_v42, %v3095_v9  ;;  %v3185_v12 = vmin.f32 %v639_v7, %v3095_v9  ;;  %v5647_v47 = vld [vmem:[#allocation34_spill] sm:$0xff] }
 0x13d   :  { %v3190_v1 = vmin.f32 %v630_v11, %v3095_v9  ;;  %v3193_v30 = vmin.f32 %v633_v4, %v3095_v9  ;;  %v3196_v16 = vmin.f32 %v642_v31, %v3095_v9  ;;  %v3199_v23 = vmin.f32 %v645_v13, %v3095_v9  ;;  %v3258_v63 = vpop.trf.xlu1 }
 0x13e   :  { %5593 = vst [vmem:[#allocation18_spill] sm:$0xff] %v3176_v55  ;;  %5594 = vst [vmem:[#allocation20_spill] sm:$0xff] %v3179_v33  ;;  %v980_v46 = vmax.f32 %v3185_v12, %v3182_v54  ;;  %v3204_v15 = vmin.f32 %v648_v43, %v3095_v9  ;;  %v3207_v42 = vmin.f32 %v651_v59, %v3095_v9 }
 0x13f   :  { %5595 = vst [vmem:[#allocation52_spill] sm:$0xff] %v3182_v54  ;;  %5596 = vst [vmem:[#allocation53_spill] sm:$0xff] %v3185_v12  ;;  %v3210_v11 = vmin.f32 %v654_v27, %v3095_v9  ;;  %v3212_v4 = vpop.trf.xlu0  ;;  %v3215_v7 = vmin.f32 %v657_v8, %v3095_v9  ;;  %v3218_v31 = vmin.f32 %v660_v24, %v3095_v9 }
 0x140   :  { %5598 = vst [vmem:[#allocation55_spill] sm:$0xff] %v3190_v1  ;;  %5599 = vst [vmem:[#allocation56_spill] sm:$0xff] %v3193_v30  ;;  %v3221_v13 = vmin.f32 %v663_v28, %v3095_v9  ;;  %v3224_v43 = vmin.f32 %v666_v32, %v3095_v9  ;;  %v981_v59 = vmax.f32 %v3196_v16, %v980_v46 }
 0x141   :  { %5600 = vst [vmem:[#allocation57_spill] sm:$0xff] %v3196_v16  ;;  %5601 = vst [vmem:[#allocation58_spill] sm:$0xff] %v3199_v23  ;;  %v3228_v39 = vmin.f32 %v669_v36, %v3095_v9  ;;  %v3231_v27 = vmin.f32 %v672_v40, %v3095_v9  ;;  %v3234_v8 = vmin.f32 %v675_v44, %v3095_v9 }
 0x142   :  { %5602 = vst [vmem:[#allocation59_spill] sm:$0xff] %v3204_v15  ;;  %5603 = vst [vmem:[#allocation60_spill] sm:$0xff] %v3207_v42  ;;  %v3237_v24 = vmin.f32 %v678_v5, %v3095_v9  ;;  %v3240_v28 = vmin.f32 %v681_v48, %v3095_v9  ;;  %v3243_v32 = vmin.f32 %v684_v52, %v3095_v9 }
 0x143   :  { %5604 = vst [vmem:[#allocation61_spill] sm:$0xff] %v3210_v11  ;;  %5605 = vst [vmem:[#allocation62_spill] sm:$0xff] %v3212_v4  ;;  %v3246_v46 = vmin.f32 %v687_v56, %v3095_v9  ;;  %v982_v36 = vmax.f32 %v3199_v23, %v981_v59  ;;  %v3250_v40 = vmin.f32 %v690_v60, %v3095_v9 }
 0x144   :  { %5606 = vst [vmem:[#allocation63_spill] sm:$0xff] %v3215_v7  ;;  %5607 = vst [vmem:[#allocation64_spill] sm:$0xff] %v3218_v31  ;;  %v3253_v44 = vmin.f32 %v693_v2, %v3095_v9  ;;  %v3256_v5 = vmin.f32 %v696_v6, %v3095_v9  ;;  %v3261_v48 = vmin.f32 %v699_v10, %v3095_v9 }
 0x145   :  { %5608 = vst [vmem:[#allocation65_spill] sm:$0xff] %v3221_v13  ;;  %5609 = vst [vmem:[#allocation66_spill] sm:$0xff] %v3224_v43  ;;  %v3264_v52 = vmin.f32 %v702_v14, %v3095_v9  ;;  %v3267_v56 = vmin.f32 %v705_v18, %v3095_v9  ;;  %v864_v60 = vmin.f32 %v3176_v55, %v3190_v1  ;;  %v5642_v55 = vld [vmem:[#allocation30_spill] sm:$0xff] }
 0x146   :  { %5610 = vst [vmem:[#allocation67_spill] sm:$0xff] %v3228_v39  ;;  %5611 = vst [vmem:[#allocation68_spill] sm:$0xff] %v3231_v27  ;;  %v983_v2 = vmax.f32 %v3204_v15, %v982_v36  ;;  %v3273_v59 = vmin.f32 %v708_v22, %v3095_v9  ;;  %v3276_v6 = vmin.f32 %v711_v26, %v3095_v9  ;;  %v5629_v22 = vld [vmem:[#allocation19_spill] sm:$0xff] }
 0x147   :  { %5612 = vst [vmem:[#allocation69_spill] sm:$0xff] %v3234_v8  ;;  %5613 = vst [vmem:[#allocation70_spill] sm:$0xff] %v3237_v24  ;;  %v865_v10 = vmin.f32 %v3179_v33, %v3193_v30  ;;  %v3283_v14 = vmin.f32 %v714_v35, %v3095_v9  ;;  %v3286_v18 = vmin.f32 %v717_v38, %v3095_v9  ;;  %v5627_v9 = vld [vmem:[#allocation15_spill] sm:$0xff] }
 0x148   :  { %5614 = vst [vmem:[#allocation71_spill] sm:$0xff] %v3240_v28  ;;  %5615 = vst [vmem:[#allocation72_spill] sm:$0xff] %v3243_v32  ;;  %v866_v19 = vmin.f32 %v864_v60, %v3182_v54  ;;  %v984_v36 = vmax.f32 %v3207_v42, %v983_v2  ;;  %v626_v38 = vmax.f32 %v5627_v9, %v3098_v0  ;;  %v5628_v60 = vld [vmem:[#allocation17_spill] sm:$0xff] }
 0x149   :  { %5616 = vst [vmem:[#allocation73_spill] sm:$0xff] %v3246_v46  ;;  %5617 = vst [vmem:[#allocation74_spill] sm:$0xff] %v3250_v40  ;;  %v867_v26 = vmin.f32 %v865_v10, %v3185_v12  ;;  %v629_v54 = vmax.f32 %v5628_v60, %v3098_v0  ;;  %v635_v20 = vmax.f32 %v2804_v17, %v3098_v0 }
 0x14a   :  { %5618 = vst [vmem:[#allocation75_spill] sm:$0xff] %v3253_v44  ;;  %5619 = vst [vmem:[#allocation76_spill] sm:$0xff] %v3256_v5  ;;  %v868_v35 = vmin.f32 %v866_v19, %v3196_v16  ;;  %v985_v2 = vmax.f32 %v3210_v11, %v984_v36  ;;  %v3310_v19 = vpop.trf.xlu1  ;;  %v641_v60 = vmax.f32 %v2812_v25, %v3098_v0  ;;  %v5632_v16 = vld [vmem:[#allocation22_spill] sm:$0xff]  ;;  %v5633_v36 = vld [vmem:[#allocation23_spill] sm:$0xff] }
 0x14b   :  { %5620 = vst [vmem:[#allocation77_spill] sm:$0xff] %v3258_v63  ;;  %5621 = vst [vmem:[#allocation78_spill] sm:$0xff] %v3261_v48  ;;  %v3280_v63 = vpop.trf.xlu0  ;;  %v869_v10 = vmin.f32 %v867_v26, %v3199_v23  ;;  %v644_v1 = vmax.f32 %v5632_v16, %v3098_v0  ;;  %v647_v30 = vmax.f32 %v5633_v36, %v3098_v0 }
 0x14c   :  { %5622 = vst [vmem:[#allocation79_spill] sm:$0xff] %v3264_v52  ;;  %5623 = vst [vmem:[#allocation80_spill] sm:$0xff] %v3276_v6  ;;  %v870_v9 = vmin.f32 %v868_v35, %v3204_v15  ;;  %v986_v26 = vmax.f32 %v3215_v7, %v985_v2  ;;  %v653_v23 = vmax.f32 %v2828_v41, %v3098_v0 }
 0x14d   :  { %5624 = vst [vmem:[#allocation81_spill] sm:$0xff] %v3280_v63  ;;  %5625 = vst [vmem:[#allocation82_spill] sm:$0xff] %v3283_v14  ;;  %v623_v63 = vmax.f32 %v5626_v3, %v3098_v0  ;;  %v5630_v3 = vld [vmem:[#allocation21_spill] sm:$0xff]  ;;  %v871_v17 = vmin.f32 %v869_v10, %v3207_v42  ;;  %v656_v16 = vmax.f32 %v2832_v45, %v3098_v0  ;;  %v5635_v45 = vld [vmem:[#allocation24_spill] sm:$0xff] }
 0x14e   :  { %v638_v12 = vmax.f32 %v5630_v3, %v3098_v0  ;;  %5631 = vst [vmem:[#allocation13_spill] sm:$0xff] %v3310_v19  ;;  %v650_v3 = vmax.f32 %v2824_v37, %v3098_v0  ;;  %v872_v25 = vmin.f32 %v870_v9, %v3210_v11  ;;  %v659_v36 = vmax.f32 %v2836_v49, %v3098_v0  ;;  %v5636_v49 = vld [vmem:[#allocation25_spill] sm:$0xff]  ;;  %v5652_v19 = vld [vmem:[#allocation39_spill] sm:$0xff] }
 0x14f   :  { %v3325_v35 = vpop.trf.xlu0  ;;  %v662_v2 = vmax.f32 %v2840_v53, %v3098_v0  ;;  %v987_v10 = vmax.f32 %v3218_v31, %v986_v26  ;;  %v873_v37 = vmin.f32 %v871_v17, %v3215_v7  ;;  %v665_v41 = vmax.f32 %v2844_v57, %v3098_v0  ;;  %v5637_v53 = vld [vmem:[#allocation26_spill] sm:$0xff]  ;;  %v5638_v57 = vld [vmem:[#allocation27_spill] sm:$0xff] }
 0x150   :  { %5634 = vst [vmem:[#allocation15_spill] sm:$0xff] %v3325_v35  ;;  %v668_v42 = vmax.f32 %v2848_v61, %v3098_v0  ;;  %v874_v9 = vmin.f32 %v872_v25, %v3218_v31  ;;  %v671_v11 = vmax.f32 %v5635_v45, %v3098_v0  ;;  %v674_v15 = vmax.f32 %v5636_v49, %v3098_v0  ;;  %v5639_v61 = vld [vmem:[#allocation28_spill] sm:$0xff]  ;;  %v3353_v25 = vpop.trf.xlu1  ;;  %v5641_v31 = vld [vmem:[#allocation29_spill] sm:$0xff] }
 0x151   :  { %v988_v26 = vmax.f32 %v3221_v13, %v987_v10  ;;  %v875_v17 = vmin.f32 %v873_v37, %v3221_v13  ;;  %v680_v7 = vmax.f32 %v5638_v57, %v3098_v0  ;;  %5640 = vst [vmem:[#allocation17_spill] sm:$0xff] %v3353_v25  ;;  %v5643_v10 = vld [vmem:[#allocation31_spill] sm:$0xff]  ;;  %v5644_v13 = vld [vmem:[#allocation32_spill] sm:$0xff]  ;;  %v5645_v25 = vld [vmem:[#allocation33_spill] sm:$0xff]  ;;  %v3387_v35 = vmin.f32 %v635_v20, %v3101_v51 }
 0x152   :  { %v876_v45 = vmin.f32 %v874_v9, %v3224_v43  ;;  %v3395_v4 = vmin.f32 %v623_v63, %v3101_v51  ;;  %v3398_v50 = vmin.f32 %v626_v38, %v3101_v51  ;;  %v3404_v20 = vmin.f32 %v629_v54, %v3101_v51 }
 0x153   :  { %v989_v37 = vmax.f32 %v3224_v43, %v988_v26  ;;  %v877_v57 = vmin.f32 %v875_v17, %v3228_v39  ;;  %v3368_v9 = vpop.trf.xlu0  ;;  %v5649_v26 = vld [vmem:[#allocation36_spill] sm:$0xff]  ;;  %5653 = vst [vmem:[#allocation21_spill] sm:$0xff] %v3387_v35  ;;  %v3390_v43 = vmin.f32 %v638_v12, %v3101_v51  ;;  %v5658_v38 = vmax.f32 %v5629_v22, %v3098_v0 }
 0x154   :  { %5646 = vst [vmem:[#allocation19_spill] sm:$0xff] %v3368_v9  ;;  %v878_v49 = vmin.f32 %v876_v45, %v3231_v27  ;;  %v5651_v9 = vld [vmem:[#allocation38_spill] sm:$0xff]  ;;  %5655 = vst [vmem:[#allocation23_spill] sm:$0xff] %v3398_v50 }
 0x155   :  { %v990_v17 = vmax.f32 %v3228_v39, %v989_v37  ;;  %v879_v33 = vmin.f32 %v877_v57, %v3234_v8  ;;  %5654 = vst [vmem:[#allocation22_spill] sm:$0xff] %v3390_v43  ;;  %v943_v12 = vmax.f32 %v3390_v43, %v3387_v35 }
 0x156   :  { %v880_v45 = vmin.f32 %v878_v49, %v3237_v24  ;;  %v3400_v49 = vpop.trf.xlu1 }
 0x157   :  { %v991_v37 = vmax.f32 %v3231_v27, %v990_v17  ;;  %v881_v57 = vmin.f32 %v879_v33, %v3240_v28  ;;  %5656 = vst [vmem:[#allocation24_spill] sm:$0xff] %v3400_v49  ;;  %v3409_v17 = vmin.f32 %v641_v60, %v3101_v51  ;;  %v3417_v27 = vmin.f32 %v5658_v38, %v3101_v51  ;;  %v3422_v54 = vpop.trf.xlu0 }
 0x158   :  { %v882_v58 = vmin.f32 %v880_v45, %v3243_v32  ;;  %v3420_v45 = vmin.f32 %v644_v1, %v3101_v51  ;;  %v3427_v49 = vmin.f32 %v647_v30, %v3101_v51  ;;  %v3435_v38 = vmin.f32 %v653_v23, %v3101_v51 }
 0x159   :  { %5657 = vst [vmem:[#allocation25_spill] sm:$0xff] %v3409_v17  ;;  %v992_v33 = vmax.f32 %v3234_v8, %v991_v37  ;;  %v883_v63 = vmin.f32 %v881_v57, %v3246_v46  ;;  %v944_v60 = vmax.f32 %v3409_v17, %v943_v12  ;;  %v3430_v37 = vmin.f32 %v650_v3, %v3101_v51 }
 0x15a   :  { %5659 = vst [vmem:[#allocation26_spill] sm:$0xff] %v3420_v45  ;;  %v884_v39 = vmin.f32 %v882_v58, %v3250_v40  ;;  %5660 = vst [vmem:[#allocation27_spill] sm:$0xff] %v3427_v49  ;;  %v3438_v1 = vmin.f32 %v656_v16, %v3101_v51  ;;  %v3443_v30 = vmin.f32 %v659_v36, %v3101_v51 }
 0x15b   :  { %5661 = vst [vmem:[#allocation28_spill] sm:$0xff] %v3430_v37  ;;  %v993_v57 = vmax.f32 %v3237_v24, %v992_v33  ;;  %v885_v22 = vmin.f32 %v883_v63, %v3253_v44  ;;  %5662 = vst [vmem:[#allocation29_spill] sm:$0xff] %v3435_v38  ;;  %v945_v12 = vmax.f32 %v3420_v45, %v944_v60  ;;  %v3456_v24 = vpop.trf.xlu1 }
 0x15c   :  { %5663 = vst [vmem:[#allocation30_spill] sm:$0xff] %v3438_v1  ;;  %v886_v58 = vmin.f32 %v884_v39, %v3256_v5  ;;  %5664 = vst [vmem:[#allocation31_spill] sm:$0xff] %v3443_v30  ;;  %v3446_v3 = vmin.f32 %v662_v2, %v3101_v51  ;;  %v3451_v23 = vmin.f32 %v665_v41, %v3101_v51 }
 0x15d   :  { %v994_v33 = vmax.f32 %v3240_v28, %v993_v57  ;;  %v887_v63 = vmin.f32 %v885_v22, %v3261_v48  ;;  %v3454_v16 = vmin.f32 %v668_v42, %v3101_v51  ;;  %v946_v36 = vmax.f32 %v3427_v49, %v945_v12  ;;  %v3477_v12 = vpop.trf.xlu0 }
 0x15e   :  { %5665 = vst [vmem:[#allocation32_spill] sm:$0xff] %v3446_v3  ;;  %5666 = vst [vmem:[#allocation33_spill] sm:$0xff] %v3451_v23  ;;  %v888_v39 = vmin.f32 %v886_v58, %v3264_v52  ;;  %v3461_v60 = vmin.f32 %v671_v11, %v3101_v51  ;;  %v3464_v2 = vmin.f32 %v674_v15, %v3101_v51 }
 0x15f   :  { %5667 = vst [vmem:[#allocation34_spill] sm:$0xff] %v3454_v16  ;;  %v995_v57 = vmax.f32 %v3243_v32, %v994_v33  ;;  %v889_v41 = vmin.f32 %v887_v63, %v3267_v56  ;;  %v5670_v42 = vmax.f32 %v5637_v53, %v3098_v0  ;;  %v3475_v58 = vmin.f32 %v680_v7, %v3101_v51 }
 0x160   :  { %5668 = vst [vmem:[#allocation35_spill] sm:$0xff] %v3461_v60  ;;  %5669 = vst [vmem:[#allocation36_spill] sm:$0xff] %v3464_v2  ;;  %v890_v11 = vmin.f32 %v888_v39, %v3273_v59  ;;  %v947_v15 = vmax.f32 %v3430_v37, %v946_v36  ;;  %v5673_v33 = vmax.f32 %v5639_v61, %v3098_v0 }
 0x161   :  { %v3472_v22 = vmin.f32 %v5670_v42, %v3101_v51  ;;  %5672 = vst [vmem:[#allocation38_spill] sm:$0xff] %v3475_v58  ;;  %v5675_v53 = vmax.f32 %v5641_v31, %v3098_v0  ;;  %v996_v7 = vmax.f32 %v3246_v46, %v995_v57  ;;  %v891_v32 = vmin.f32 %v889_v41, %v3276_v6  ;;  %v3535_v46 = vpop.trf.xlu1 }
 0x162   :  { %v3485_v63 = vmin.f32 %v5673_v33, %v3101_v51  ;;  %v5677_v39 = vmax.f32 %v5642_v55, %v3098_v0  ;;  %v5679_v61 = vmax.f32 %v5643_v10, %v3098_v0  ;;  %v892_v31 = vmin.f32 %v890_v11, %v3283_v14 }
 0x163   :  { %5671 = vst [vmem:[#allocation37_spill] sm:$0xff] %v3472_v22  ;;  %v3491_v42 = vmin.f32 %v5675_v53, %v3101_v51  ;;  %v948_v53 = vmax.f32 %v3435_v38, %v947_v15  ;;  %v5681_v57 = vmax.f32 %v5644_v13, %v3098_v0  ;;  %v5683_v55 = vmax.f32 %v5645_v25, %v3098_v0 }
 0x164   :  { %5674 = vst [vmem:[#allocation39_spill] sm:$0xff] %v3485_v63  ;;  %v3499_v36 = vmin.f32 %v5677_v39, %v3101_v51  ;;  %v3505_v33 = vmin.f32 %v5679_v61, %v3101_v51  ;;  %v997_v10 = vmax.f32 %v3250_v40, %v996_v7  ;;  %v893_v61 = vmin.f32 %v891_v32, %v3286_v18  ;;  %v3561_v40 = vpop.trf.xlu0 }
 0x165   :  { %5676 = vst [vmem:[#allocation83_spill] sm:$0xff] %v3491_v42  ;;  %v3513_v41 = vmin.f32 %v5681_v57, %v3101_v51  ;;  %v3519_v39 = vmin.f32 %v5683_v55, %v3101_v51  ;;  %v5685_v11 = vmax.f32 %v5647_v47, %v3098_v0  ;;  %v5687_v13 = vmax.f32 %v5648_v29, %v3098_v0 }
 0x166   :  { %5678 = vst [vmem:[#allocation84_spill] sm:$0xff] %v3499_v36  ;;  %5680 = vst [vmem:[#allocation85_spill] sm:$0xff] %v3505_v33  ;;  %v949_v25 = vmax.f32 %v3438_v1, %v948_v53  ;;  %v5689_v32 = vmax.f32 %v5649_v26, %v3098_v0  ;;  %v827_v47 = vmin.f32 %v3395_v4, %v3404_v20 }
 0x167   :  { %5682 = vst [vmem:[#allocation86_spill] sm:$0xff] %v3513_v41  ;;  %5684 = vst [vmem:[#allocation87_spill] sm:$0xff] %v3519_v39  ;;  %v3527_v15 = vmin.f32 %v5685_v11, %v3101_v51  ;;  %v3533_v57 = vmin.f32 %v5687_v13, %v3101_v51  ;;  %v828_v55 = vmin.f32 %v3398_v50, %v3417_v27 }
 0x168   :  { %v3542_v7 = vmin.f32 %v5689_v32, %v3101_v51  ;;  %v998_v29 = vmax.f32 %v3253_v44, %v997_v10  ;;  %v894_v11 = vmin.f32 %v892_v31, %v893_v61  ;;  %v5691_v13 = vmax.f32 %v5650_v34, %v3098_v0 }
 0x169   :  { %5686 = vst [vmem:[#allocation88_spill] sm:$0xff] %v3527_v15  ;;  %5688 = vst [vmem:[#allocation89_spill] sm:$0xff] %v3533_v57  ;;  %v5693_v26 = vmax.f32 %v5651_v9, %v3098_v0  ;;  %v950_v28 = vmax.f32 %v3443_v30, %v949_v25  ;;  %v5695_v31 = vmax.f32 %v5652_v19, %v3098_v0  ;;  %v5696_v9 = vld [vmem:[#allocation47_spill] sm:$0xff] }
 0x16a   :  { %5690 = vst [vmem:[#allocation90_spill] sm:$0xff] %v3542_v7  ;;  %v3553_v53 = vmin.f32 %v5691_v13, %v3101_v51  ;;  %v829_v34 = vmin.f32 %v827_v47, %v3387_v35  ;;  %v830_v61 = vmin.f32 %v828_v55, %v3390_v43  ;;  %v999_v13 = vmax.f32 %v3256_v5, %v998_v29  ;;  %v5699_v47 = vld [vmem:[#allocation12_spill] sm:$0xff]  ;;  %v5700_v55 = vld [vmem:[#allocation45_spill] sm:$0xff] }
 0x16b   :  { %v3559_v32 = vmin.f32 %v5693_v26, %v3101_v51  ;;  %v3568_v10 = vmin.f32 %v5695_v31, %v3101_v51  ;;  %v895_v44 = vrot.slane %v894_v11, 4  ;;  %v5697_v26 = vmin.f32 %v3048_v62, %v5696_v9  ;;  %v5701_v29 = vld [vmem:[#allocation49_spill] sm:$0xff] }
 0x16c   :  { %5692 = vst [vmem:[#allocation91_spill] sm:$0xff] %v3553_v53  ;;  %v5698_v25 = vmax.f32 %v3048_v62, %v5696_v9  ;;  %v951_v0 = vmax.f32 %v3446_v3, %v950_v28  ;;  %v831_v51 = vmin.f32 %v829_v34, %v3409_v17  ;;  %v832_v19 = vmin.f32 %v830_v61, %v3420_v45  ;;  %v3594_v28 = vpop.trf.xlu1 }
 0x16d   :  { %5694 = vst [vmem:[#allocation92_spill] sm:$0xff] %v3559_v32  ;;  %v427_v8 = vmin.f32 %v5697_v26, %v3092_v21  ;;  %v5702_v31 = vmin.f32 %v5700_v55, %v5701_v29  ;;  %v1000_v35 = vmax.f32 %v3261_v48, %v999_v13  ;;  %v896_v5 = vmin.f32 %v894_v11, %v895_v44  ;;  %v5705_v11 = vld [vmem:[#allocation62_spill] sm:$0xff] }
 0x16e   :  { %v557_v50 = vmax.f32 %v5698_v25, %v3092_v21  ;;  %v5703_v26 = vmax.f32 %v5700_v55, %v5701_v29  ;;  %v5704_v25 = vld [vmem:[#allocation16_spill] sm:$0xff]  ;;  %v952_v34 = vmax.f32 %v3451_v23, %v951_v0  ;;  %v833_v61 = vmin.f32 %v831_v51, %v3427_v49  ;;  %v5706_v51 = vld [vmem:[#allocation81_spill] sm:$0xff] }
 0x16f   :  { %v428_v43 = vmin.f32 %v5702_v31, %v5699_v47  ;;  %v429_v21 = vmin.f32 %v427_v8, %v5704_v25  ;;  %v834_v45 = vmin.f32 %v832_v19, %v3430_v37  ;;  %v1001_v13 = vmax.f32 %v3264_v52, %v1000_v35  ;;  %v5707_v37 = vld [vmem:[#allocation15_spill] sm:$0xff] }
 0x170   :  { %v558_v9 = vmax.f32 %v5703_v26, %v5699_v47  ;;  %v559_v31 = vmax.f32 %v557_v50, %v5704_v25  ;;  %v897_v44 = vrot.slane %v896_v5, 2  ;;  %v3603_v26 = vpop.trf.xlu0  ;;  %v953_v8 = vmax.f32 %v3454_v16, %v952_v34 }
 0x171   :  { %v430_v17 = vmin.f32 %v428_v43, %v5705_v11  ;;  %v835_v47 = vmin.f32 %v833_v61, %v3435_v38  ;;  %v836_v0 = vmin.f32 %v834_v45, %v3438_v1  ;;  %v431_v49 = vmin.f32 %v429_v21, %v5706_v51  ;;  %v5708_v1 = vld [vmem:[#allocation19_spill] sm:$0xff] }
 0x172   :  { %v560_v48 = vmax.f32 %v558_v9, %v5705_v11  ;;  %v1002_v19 = vmax.f32 %v3267_v56, %v1001_v13  ;;  %v898_v50 = vmin.f32 %v896_v5, %v897_v44  ;;  %v561_v35 = vmax.f32 %v559_v31, %v5706_v51  ;;  %v3619_v5 = vpop.trf.xlu1 }
 0x173   :  { %v432_v52 = vmin.f32 %v430_v17, %v5707_v37  ;;  %v954_v43 = vmax.f32 %v3461_v60, %v953_v8  ;;  %v837_v9 = vmin.f32 %v835_v47, %v3443_v30  ;;  %v838_v11 = vmin.f32 %v836_v0, %v3446_v3  ;;  %v5716_v3 = vld [vmem:[#allocation20_spill] sm:$0xff] }
 0x174   :  { %v562_v34 = vmax.f32 %v560_v48, %v5707_v37  ;;  %v1003_v61 = vmax.f32 %v3273_v59, %v1002_v19  ;;  %v899_v45 = vrot.slane %v898_v50, 1  ;;  %v433_v21 = vmin.f32 %v431_v49, %v5708_v1  ;;  %v3629_v19 = vpop.trf.xlu0 }
 0x175   :  { %v563_v13 = vmax.f32 %v561_v35, %v5708_v1  ;;  %v955_v31 = vmax.f32 %v3464_v2, %v954_v43  ;;  %v839_v17 = vmin.f32 %v837_v9, %v3451_v23  ;;  %v840_v44 = vmin.f32 %v838_v11, %v3454_v16 }
 0x176   :  { %v434_v47 = vmin.f32 %v432_v52, %v3422_v54  ;;  %v1004_v8 = vmax.f32 %v3276_v6, %v1003_v61  ;;  %v564_v48 = vmax.f32 %v562_v34, %v3422_v54  ;;  %v435_v0 = vmin.f32 %v433_v21, %v3477_v12 }
 0x177   :  { %v565_v49 = vmax.f32 %v563_v13, %v3477_v12  ;;  %v956_v35 = vmax.f32 %v3472_v22, %v955_v31  ;;  %v841_v43 = vmin.f32 %v839_v17, %v3461_v60  ;;  %v842_v9 = vmin.f32 %v840_v44, %v3464_v2  ;;  %v5709_v2 = vld [vmem:[#allocation41_spill] sm:$0xff]  ;;  %v5714_v60 = vld [vmem:[#allocation50_spill] sm:$0xff] }
 0x178   :  { %v436_v11 = vmin.f32 %v434_v47, %v3561_v40  ;;  %v1005_v52 = vmax.f32 %v3283_v14, %v1004_v8  ;;  %v3636_v16 = vmin.f32 %v898_v50, %v899_v45  ;;  %v437_v34 = vmin.f32 %v435_v0, %v3603_v26  ;;  %v3648_v45 = vpop.trf.xlu1  ;;  %v5719_v14 = vld [vmem:[#allocation54_spill] sm:$0xff] }
 0x179   :  { %v567_v61 = vmax.f32 %v565_v49, %v3603_v26  ;;  %v957_v21 = vmax.f32 %v3475_v58, %v956_v35  ;;  %v843_v13 = vmin.f32 %v841_v43, %v3472_v22  ;;  %v844_v31 = vmin.f32 %v842_v9, %v3475_v58  ;;  %v5710_v43 = vld [vmem:[#allocation48_spill] sm:$0xff]  ;;  %v5711_v58 = vld [vmem:[#allocation18_spill] sm:$0xff] }
 0x17a   :  { %v438_v17 = vmin.f32 %v436_v11, %v3629_v19  ;;  %v1006_v44 = vmax.f32 %v3286_v18, %v1005_v52  ;;  %v566_v47 = vmax.f32 %v564_v48, %v3561_v40  ;;  %v439_v8 = vmin.f32 %v437_v34, %v5709_v2  ;;  %v5712_v11 = vld [vmem:[#allocation55_spill] sm:$0xff] }
 0x17b   :  { %v569_v50 = vmax.f32 %v567_v61, %v5709_v2  ;;  %v958_v0 = vmax.f32 %v3485_v63, %v957_v21  ;;  %v845_v49 = vmin.f32 %v843_v13, %v3485_v63  ;;  %v846_v35 = vmin.f32 %v844_v31, %v3491_v42  ;;  %v5715_v63 = vld [vmem:[#allocation14_spill] sm:$0xff] }
 0x17c   :  { %v440_v9 = vmin.f32 %v438_v17, %v5710_v43  ;;  %v5713_v22 = vmax.f32 %v5711_v58, %v5712_v11  ;;  %v441_v48 = vmin.f32 %v439_v8, %v5714_v60  ;;  %v568_v61 = vmax.f32 %v566_v47, %v3629_v19  ;;  %v5717_v17 = vld [vmem:[#allocation56_spill] sm:$0xff] }
 0x17d   :  { %v571_v34 = vmax.f32 %v569_v50, %v5714_v60  ;;  %v959_v23 = vmax.f32 %v3491_v42, %v958_v0  ;;  %v847_v21 = vmin.f32 %v845_v49, %v3499_v36  ;;  %v848_v13 = vmin.f32 %v846_v35, %v3505_v33  ;;  %v5720_v49 = vld [vmem:[#allocation77_spill] sm:$0xff] }
 0x17e   :  { %v1007_v52 = vmax.f32 %v5713_v22, %v1006_v44  ;;  %v442_v31 = vmin.f32 %v440_v9, %v5715_v63  ;;  %v5718_v30 = vmax.f32 %v5716_v3, %v5717_v17  ;;  %v443_v22 = vmin.f32 %v441_v48, %v5719_v14  ;;  %v5721_v9 = vld [vmem:[#allocation13_spill] sm:$0xff] }
 0x17f   :  { %v573_v44 = vmax.f32 %v571_v34, %v5719_v14  ;;  %v570_v8 = vmax.f32 %v568_v61, %v5710_v43  ;;  %v960_v47 = vmax.f32 %v3499_v36, %v959_v23  ;;  %v849_v50 = vmin.f32 %v847_v21, %v3513_v41  ;;  %v5722_v61 = vld [vmem:[#allocation17_spill] sm:$0xff]  ;;  %v5723_v36 = vld [vmem:[#allocation24_spill] sm:$0xff] }
 0x180   :  { %v1008_v38 = vmax.f32 %v5718_v30, %v1007_v52  ;;  %v850_v0 = vmin.f32 %v848_v13, %v3519_v39  ;;  %v444_v35 = vmin.f32 %v442_v31, %v5720_v49  ;;  %v445_v60 = vmin.f32 %v443_v22, %v5721_v9  ;;  %v3677_v52 = vpop.trf.xlu1 }
 0x181   :  { %v575_v6 = vmax.f32 %v573_v44, %v5721_v9  ;;  %v572_v30 = vmax.f32 %v570_v8, %v5715_v63  ;;  %v961_v48 = vmax.f32 %v3505_v33, %v960_v47  ;;  %v851_v34 = vmin.f32 %v849_v50, %v3527_v15 }
 0x182   :  { %v1009_v42 = vrot.slane %v1008_v38, 4  ;;  %v852_v23 = vmin.f32 %v850_v0, %v3533_v57  ;;  %v446_v21 = vmin.f32 %v444_v35, %v5722_v61  ;;  %v447_v31 = vmin.f32 %v445_v60, %v5723_v36 }
 0x183   :  { %v577_v14 = vmax.f32 %v575_v6, %v5723_v36  ;;  %v574_v22 = vmax.f32 %v572_v30, %v5720_v49  ;;  %v962_v44 = vmax.f32 %v3513_v41, %v961_v48  ;;  %v853_v8 = vmin.f32 %v851_v34, %v3542_v7 }
 0x184   :  { %v1010_v13 = vmax.f32 %v1008_v38, %v1009_v42  ;;  %v854_v9 = vmin.f32 %v852_v23, %v3553_v53  ;;  %v448_v47 = vmin.f32 %v446_v21, %v3456_v24  ;;  %v449_v0 = vmin.f32 %v447_v31, %v3535_v46  ;;  %v3699_v21 = vpop.trf.xlu1 }
 0x185   :  { %v579_v35 = vmax.f32 %v577_v14, %v3535_v46  ;;  %v576_v38 = vmax.f32 %v574_v22, %v5722_v61  ;;  %v963_v60 = vmax.f32 %v3519_v39, %v962_v44  ;;  %v855_v6 = vmin.f32 %v853_v8, %v3559_v32 }
 0x186   :  { %v1011_v50 = vrot.slane %v1010_v13, 2  ;;  %v856_v42 = vmin.f32 %v854_v9, %v3568_v10  ;;  %v450_v30 = vmin.f32 %v448_v47, %v3594_v28  ;;  %v451_v23 = vmin.f32 %v449_v0, %v3619_v5 }
 0x187   :  { %v578_v34 = vmax.f32 %v576_v38, %v3456_v24  ;;  %v964_v31 = vmax.f32 %v3527_v15, %v963_v60  ;;  %v939_v44 = vmin.f32 %v3636_v16, 0.0  ;;  %v581_v9 = vmax.f32 %v579_v35, %v3619_v5 }
 0x188   :  { %v1012_v48 = vmax.f32 %v1010_v13, %v1011_v50  ;;  %v857_v14 = vmin.f32 %v855_v6, %v856_v42  ;;  %v452_v22 = vmin.f32 %v450_v30, %v3648_v45  ;;  %v453_v50 = vmin.f32 %v451_v23, %v3677_v52 }
 0x189   :  { %v580_v8 = vmax.f32 %v578_v34, %v3594_v28  ;;  %v965_v13 = vmax.f32 %v3533_v57, %v964_v31  ;;  %v1056_v15 = vand.u32 2147483647, %v939_v44  ;;  %v583_v34 = vmax.f32 %v581_v9, %v3677_v52  ;;  %v5724_v9 = vld [vmem:[#allocation40_spill] sm:$0xff] }
 0x18a   :  { %v1013_v39 = vrot.slane %v1012_v48, 1  ;;  %v858_v47 = vrot.slane %v857_v14, 4  ;;  %v454_v0 = vmin.f32 %v452_v22, %v3699_v21  ;;  %v941_v44 = vmax.f32 %v3395_v4, %v3404_v20 }
 0x18b   :  { %v582_v60 = vmax.f32 %v580_v8, %v3648_v45  ;;  %v966_v6 = vmax.f32 %v3542_v7, %v965_v13 }
 0x18c   :  { %v1014_v38 = vmax.f32 %v1012_v48, %v1013_v39  ;;  %v859_v42 = vmin.f32 %v857_v14, %v858_v47  ;;  %v455_v30 = vmin.f32 %v453_v50, %v454_v0  ;;  %v3719_v47 = vsub.s32 2, %v5724_v9 }
 0x18d   :  { %v584_v35 = vmax.f32 %v582_v60, %v3699_v21  ;;  %v967_v31 = vmax.f32 %v3553_v53, %v966_v6  ;;  %v5727_v6 = vld [vmem:[#allocation23_spill] sm:$0xff] }
 0x18e   :  { %v1053_v16 = vmax.f32 %v1014_v38, 0.0  ;;  %v860_v57 = vrot.slane %v859_v42, 2  ;;  %v456_v41 = vrot.slane %v455_v30, 4  ;;  %5725 = vst [vmem:[#allocation45_spill] sm:$0xff] %v3719_v47 }
 0x18f   :  { %v585_v33 = vmax.f32 %v583_v34, %v584_v35  ;;  %v968_v39 = vmax.f32 %v3559_v32, %v967_v31 }
 0x190   :  { %v1059_v23 = vmax.f32 %v1056_v15, %v1053_v16  ;;  %v861_v48 = vmin.f32 %v859_v42, %v860_v57  ;;  %v457_v22 = vmin.f32 %v455_v30, %v456_v41  ;;  %v942_v57 = vmax.f32 %v5727_v6, %v3417_v27  ;;  %v5728_v16 = vld [vmem:[#allocation46_spill] sm:$0xff] }
 0x191   :  { %v586_v13 = vrot.slane %v585_v33, 4  ;;  %v969_v14 = vmax.f32 %v3568_v10, %v968_v39  ;;  %v474_v34 = vrot.slane %v5728_v16, %v3719_v47 }
 0x192   :  { %v1062_v8 = vmax.f32 %v1059_v23, 1e-05  ;;  %v458_v50 = vrot.slane %v457_v22, 2  ;;  %v862_v38 = vrot.slane %v861_v48, 1 }
 0x193   :  { %v587_v15 = vmax.f32 %v585_v33, %v586_v13  ;;  %v970_v60 = vmax.f32 %v941_v44, %v969_v14  ;;  %v5729_v44 = vld [vmem:[#allocation42_spill] sm:$0xff] }
 0x194   :  { %v3721_v0 = vmul.f32 0.14285715, %v1062_v8  ;;  %v459_v41 = vmin.f32 %v457_v22, %v458_v50  ;;  %v863_v31 = vmin.f32 %v861_v48, %v862_v38  ;;  %v604_v22 = vrot.slane %v5729_v44, %v3719_v47  ;;  %v5749_v38 = vld [vmem:[#allocation60_spill] sm:$0xff] }
 0x195   :  { %v588_v42 = vrot.slane %v587_v15, 2  ;;  %v971_v30 = vmax.f32 %v942_v57, %v970_v60 }
 0x196   :  { %5726 = vst [vmem:[#allocation49_spill] sm:$0xff] %v3721_v0  ;;  %2631 = vrcp.f32 %v3721_v0  ;;  %v460_v35 = vrot.slane %v459_v41, 1  ;;  %v938_v13 = vmin.f32 %v863_v31, 0.0  ;;  %v5730_v0 = vld [vmem:[#allocation43_spill] sm:$0xff] }
 0x197   :  { %v589_v23 = vmax.f32 %v587_v15, %v588_v42  ;;  %v972_v39 = vrot.slane %v971_v30, 4  ;;  %v5731_v15 = vld [vmem:[#allocation47_spill] sm:$0xff] }
 0x198   :  { %v461_v8 = vmin.f32 %v459_v41, %v460_v35  ;;  %v1055_v57 = vand.u32 2147483647, %v938_v13 }
 0x199   :  { %v590_v9 = vrot.slane %v589_v23, 1  ;;  %v973_v32 = vmax.f32 %v971_v30, %v972_v39  ;;  %v5732_v30 = vld [vmem:[#allocation51_spill] sm:$0xff]  ;;  %v5734_v39 = vld [vmem:[#allocation62_spill] sm:$0xff] }
 0x19a   :  { %v480_v33 = vmul.f32 %v474_v34, %v461_v8  ;;  %v5740_v8 = vld [vmem:[#allocation52_spill] sm:$0xff] }
 0x19b   :  { %v974_v14 = vrot.slane %v973_v32, 2  ;;  %v591_v50 = vmax.f32 %v589_v23, %v590_v9 }
 0x19c   :  { %v3731_v53 = vrot.slane %v480_v33, %v5730_v0 }
 0x19d   :  { %v975_v60 = vmax.f32 %v973_v32, %v974_v14  ;;  %v3733_v7 = vmul.f32 %v604_v22, %v591_v50  ;;  %v5733_v32 = vld [vmem:[#allocation12_spill] sm:$0xff]  ;;  %v5742_v22 = vld [vmem:[#allocation53_spill] sm:$0xff] }
 0x19f   :  { %v976_v16 = vrot.slane %v975_v60, 1 }
 0x1a1   :  { %v977_v50 = vmax.f32 %v975_v60, %v976_v16 }
 0x1a3   :  { %v2632_v31 = vpop.eup %2631 }
 0x1a4   :  { %v3756_v13 = vmul.f32 %v2632_v31, %v3286_v18  ;;  %v3771_v33 = vmul.f32 %v2632_v31, %v5711_v58  ;;  %v3774_v14 = vmul.f32 %v2632_v31, %v5716_v3  ;;  %v3777_v44 = vmul.f32 %v2632_v31, %v5712_v11  ;;  %v5744_v58 = vld [vmem:[#allocation57_spill] sm:$0xff]  ;;  %v5746_v3 = vld [vmem:[#allocation58_spill] sm:$0xff]  ;;  %v5748_v11 = vld [vmem:[#allocation59_spill] sm:$0xff] }
 0x1a5   :  { %v3782_v16 = vmul.f32 %v2632_v31, %v5717_v17  ;;  %v3785_v9 = vmul.f32 %v2632_v31, %v5740_v8  ;;  %v3788_v18 = vmul.f32 %v2632_v31, %v5742_v22  ;;  %v3791_v42 = vmul.f32 %v2632_v31, %v5744_v58  ;;  %v5751_v17 = vld [vmem:[#allocation61_spill] sm:$0xff]  ;;  %v5752_v8 = vld [vmem:[#allocation63_spill] sm:$0xff]  ;;  %v5753_v22 = vld [vmem:[#allocation64_spill] sm:$0xff] }
 0x1a6   :  { %5735 = vst [vmem:[#allocation16_spill] sm:$0xff] %v3756_v13  ;;  %5736 = vst [vmem:[#allocation81_spill] sm:$0xff] %v3771_v33  ;;  %v3794_v41 = vmul.f32 %v2632_v31, %v5746_v3  ;;  %v3797_v23 = vmul.f32 %v2632_v31, %v5748_v11  ;;  %v3800_v60 = vmul.f32 %v2632_v31, %v5749_v38  ;;  %v5754_v58 = vld [vmem:[#allocation65_spill] sm:$0xff]  ;;  %v5755_v3 = vld [vmem:[#allocation66_spill] sm:$0xff] }
 0x1a7   :  { %5737 = vst [vmem:[#allocation15_spill] sm:$0xff] %v3774_v14  ;;  %5738 = vst [vmem:[#allocation19_spill] sm:$0xff] %v3777_v44  ;;  %v3803_v48 = vmul.f32 %v2632_v31, %v5751_v17  ;;  %v3806_v35 = vmul.f32 %v2632_v31, %v5752_v8  ;;  %v3809_v34 = vmul.f32 %v2632_v31, %v5753_v22  ;;  %v5756_v11 = vld [vmem:[#allocation67_spill] sm:$0xff]  ;;  %v5757_v38 = vld [vmem:[#allocation68_spill] sm:$0xff] }
 0x1a8   :  { %5739 = vst [vmem:[#allocation41_spill] sm:$0xff] %v3782_v16  ;;  %5741 = vst [vmem:[#allocation48_spill] sm:$0xff] %v3785_v9  ;;  %v3812_v47 = vmul.f32 %v2632_v31, %v5754_v58  ;;  %v3815_v13 = vmul.f32 %v2632_v31, %v5755_v3  ;;  %v3818_v14 = vmul.f32 %v2632_v31, %v5756_v11  ;;  %v5759_v17 = vld [vmem:[#allocation69_spill] sm:$0xff]  ;;  %v5761_v8 = vld [vmem:[#allocation70_spill] sm:$0xff] }
 0x1a9   :  { %5743 = vst [vmem:[#allocation18_spill] sm:$0xff] %v3788_v18  ;;  %5745 = vst [vmem:[#allocation55_spill] sm:$0xff] %v3791_v42  ;;  %v3821_v33 = vmul.f32 %v2632_v31, %v5757_v38  ;;  %v3824_v16 = vmul.f32 %v2632_v31, %v5759_v17  ;;  %v3827_v44 = vmul.f32 %v2632_v31, %v5761_v8  ;;  %v5763_v22 = vld [vmem:[#allocation71_spill] sm:$0xff]  ;;  %v5765_v58 = vld [vmem:[#allocation72_spill] sm:$0xff] }
 0x1aa   :  { %5747 = vst [vmem:[#allocation14_spill] sm:$0xff] %v3794_v41  ;;  %5750 = vst [vmem:[#allocation20_spill] sm:$0xff] %v3800_v60  ;;  %v3830_v18 = vmul.f32 %v2632_v31, %v5763_v22  ;;  %v3833_v9 = vmul.f32 %v2632_v31, %v5765_v58  ;;  %v5767_v3 = vld [vmem:[#allocation73_spill] sm:$0xff]  ;;  %v5769_v11 = vld [vmem:[#allocation74_spill] sm:$0xff]  ;;  %v1052_v22 = vmax.f32 %v977_v50, 0.0  ;;  %v3854_v58 = vmul.f32 %v2632_v31, %v3267_v56 }
 0x1ab   :  { %5758 = vst [vmem:[#allocation56_spill] sm:$0xff] %v3821_v33  ;;  %5760 = vst [vmem:[#allocation77_spill] sm:$0xff] %v3824_v16  ;;  %v3836_v41 = vmul.f32 %v2632_v31, %v5767_v3  ;;  %v3839_v42 = vmul.f32 %v2632_v31, %v5769_v11  ;;  %v5771_v38 = vld [vmem:[#allocation75_spill] sm:$0xff]  ;;  %v5773_v17 = vld [vmem:[#allocation76_spill] sm:$0xff]  ;;  %v3857_v3 = vmul.f32 %v2632_v31, %v3273_v59 }
 0x1ac   :  { %5762 = vst [vmem:[#allocation17_spill] sm:$0xff] %v3827_v44  ;;  %5764 = vst [vmem:[#allocation24_spill] sm:$0xff] %v3830_v18  ;;  %v3842_v33 = vmul.f32 %v2632_v31, %v5771_v38  ;;  %v3845_v16 = vmul.f32 %v2632_v31, %v5773_v17  ;;  %v5775_v8 = vld [vmem:[#allocation78_spill] sm:$0xff]  ;;  %v5777_v18 = vld [vmem:[#allocation79_spill] sm:$0xff]  ;;  %v1058_v17 = vmax.f32 %v1055_v57, %v1052_v22 }
 0x1ad   :  { %5766 = vst [vmem:[#allocation40_spill] sm:$0xff] %v3833_v9  ;;  %5768 = vst [vmem:[#allocation23_spill] sm:$0xff] %v3836_v41  ;;  %v3848_v44 = vmul.f32 %v2632_v31, %v5775_v8  ;;  %v3851_v60 = vmul.f32 %v2632_v31, %v5777_v18  ;;  %v5781_v11 = vld [vmem:[#allocation80_spill] sm:$0xff]  ;;  %v5783_v38 = vld [vmem:[#allocation82_spill] sm:$0xff]  ;;  %v676_v8 = vmax.f32 %v5710_v43, %v3731_v53 }
 0x1ae   :  { %5770 = vst [vmem:[#allocation46_spill] sm:$0xff] %v3839_v42  ;;  %5772 = vst [vmem:[#allocation42_spill] sm:$0xff] %v3842_v33  ;;  %v3860_v41 = vmul.f32 %v2632_v31, %v5781_v11  ;;  %v3863_v9 = vmul.f32 %v2632_v31, %v5783_v38  ;;  %v5785_v50 = vld [vmem:[#allocation50_spill] sm:$0xff]  ;;  %v682_v56 = vmax.f32 %v5715_v63, %v3731_v53  ;;  %v5787_v42 = vld [vmem:[#allocation13_spill] sm:$0xff]  ;;  %v1061_v38 = vmax.f32 %v1058_v17, 1e-05 }
 0x1af   :  { %5774 = vst [vmem:[#allocation47_spill] sm:$0xff] %v3845_v16  ;;  %5776 = vst [vmem:[#allocation51_spill] sm:$0xff] %v3848_v44  ;;  %v679_v18 = vmax.f32 %v5785_v50, %v3731_v53  ;;  %v5786_v33 = vld [vmem:[#allocation54_spill] sm:$0xff]  ;;  %v688_v11 = vmax.f32 %v5720_v49, %v3731_v53  ;;  %v691_v31 = vmax.f32 %v5787_v42, %v3731_v53  ;;  %v2135_v50 = vand.u32 2147483647, %v3815_v13 }
 0x1b0   :  { %5778 = vst [vmem:[#allocation12_spill] sm:$0xff] %v3851_v60  ;;  %5779 = vst [vmem:[#allocation62_spill] sm:$0xff] %v3854_v58  ;;  %v685_v59 = vmax.f32 %v5786_v33, %v3731_v53  ;;  %v694_v57 = vmax.f32 %v5722_v61, %v3731_v53  ;;  %v697_v43 = vmax.f32 %v5723_v36, %v3731_v53  ;;  %v3891_v17 = vmul.f32 0.14285715, %v1061_v38 }
 0x1b1   :  { %5780 = vst [vmem:[#allocation52_spill] sm:$0xff] %v3857_v3  ;;  %5782 = vst [vmem:[#allocation53_spill] sm:$0xff] %v3860_v41  ;;  %v700_v22 = vmax.f32 %v3456_v24, %v3731_v53  ;;  %v703_v63 = vmax.f32 %v3535_v46, %v3731_v53  ;;  %v706_v33 = vmax.f32 %v3594_v28, %v3731_v53  ;;  %v2161_v38 = vcvt.f32.s32 %v3818_v14 }
 0x1b2   :  { %5784 = vst [vmem:[#allocation57_spill] sm:$0xff] %v3863_v9  ;;  %v709_v49 = vmax.f32 %v3619_v5, %v3731_v53  ;;  %v730_v42 = vrot.slane %v3733_v7, %v5730_v0  ;;  %5788 = vst [vmem:[#allocation58_spill] sm:$0xff] %v3891_v17  ;;  %v712_v36 = vmax.f32 %v3648_v45, %v3731_v53  ;;  %v2137_v45 = vcvt.f32.s32 %v3815_v13 }
 0x1b3   :  { %v715_v24 = vmax.f32 %v3677_v52, %v3731_v53  ;;  %v718_v46 = vmax.f32 %v3699_v21, %v3731_v53  ;;  %v5789_v28 = vmax.f32 %v5732_v30, %v3731_v53  ;;  %v5791_v5 = vmax.f32 %v5733_v32, %v3731_v53 }
 0x1b4   :  { %2633 = vrcp.f32 %v3891_v17  ;;  %v2140_v52 = vand.u32 2147483648, %v3815_v13  ;;  %v5793_v30 = vmax.f32 %v3048_v62, %v3731_v53  ;;  %v5794_v32 = vmax.f32 %v5700_v55, %v3731_v53 }
 0x1b5   :  { %v3902_v61 = vmin.f32 %v5789_v28, %v730_v42  ;;  %v3907_v7 = vmin.f32 %v5791_v5, %v730_v42  ;;  %v5796_v17 = vmax.f32 %v5704_v25, %v3731_v53  ;;  %v5798_v21 = vmax.f32 %v5731_v15, %v3731_v53 }
 0x1b6   :  { %v3918_v28 = vmin.f32 %v5793_v30, %v730_v42  ;;  %v3923_v5 = vmin.f32 %v5794_v32, %v730_v42  ;;  %v5799_v62 = vmax.f32 %v5701_v29, %v3731_v53  ;;  %v5800_v55 = vmax.f32 %v5734_v39, %v3731_v53 }
 0x1b7   :  { %5790 = vst [vmem:[#allocation59_spill] sm:$0xff] %v3902_v61  ;;  %5792 = vst [vmem:[#allocation60_spill] sm:$0xff] %v3907_v7  ;;  %v1017_v0 = vmax.f32 %v3907_v7, %v3902_v61  ;;  %v3930_v44 = vmin.f32 %v5796_v17, %v730_v42  ;;  %v3935_v16 = vmin.f32 %v5798_v21, %v730_v42  ;;  %vm4042_vm0 = vcmp.lt.f32.partialorder %v2135_v50, 8388608.0 }
 0x1b8   :  { %5795 = vst [vmem:[#allocation61_spill] sm:$0xff] %v3923_v5  ;;  %v3940_v30 = vmin.f32 %v5799_v62, %v730_v42  ;;  %v3945_v32 = vmin.f32 %v5800_v55, %v730_v42  ;;  %v5802_v25 = vmax.f32 %v5706_v51, %v3731_v53  ;;  %v5804_v15 = vmax.f32 %v5707_v37, %v3731_v53 }
 0x1b9   :  { %5797 = vst [vmem:[#allocation63_spill] sm:$0xff] %v3930_v44  ;;  %v1018_v58 = vmax.f32 %v3930_v44, %v1017_v0  ;;  %v5806_v29 = vmax.f32 %v5708_v1, %v3731_v53  ;;  %v5807_v39 = vmax.f32 %v3422_v54, %v3731_v53  ;;  %v5808_v51 = vmax.f32 %v3477_v12, %v3731_v53 }
 0x1ba   :  { %5801 = vst [vmem:[#allocation64_spill] sm:$0xff] %v3945_v32  ;;  %v3950_v17 = vmin.f32 %v5802_v25, %v730_v42  ;;  %v3956_v21 = vmin.f32 %v5804_v15, %v730_v42  ;;  %v5809_v37 = vmax.f32 %v3561_v40, %v3731_v53  ;;  %v5810_v1 = vmax.f32 %v3603_v26, %v3731_v53 }
 0x1bb   :  { %v3961_v62 = vmin.f32 %v5806_v29, %v730_v42  ;;  %v3966_v55 = vmin.f32 %v5807_v39, %v730_v42  ;;  %v3971_v25 = vmin.f32 %v5808_v51, %v730_v42  ;;  %v5811_v54 = vmax.f32 %v3629_v19, %v3731_v53 }
 0x1bc   :  { %5803 = vst [vmem:[#allocation65_spill] sm:$0xff] %v3950_v17  ;;  %5805 = vst [vmem:[#allocation66_spill] sm:$0xff] %v3956_v21  ;;  %v3976_v0 = vmin.f32 %v5809_v37, %v730_v42  ;;  %v3981_v15 = vmin.f32 %v5810_v1, %v730_v42  ;;  %v1019_v39 = vmax.f32 %v3945_v32, %v1018_v58 }
 0x1bd   :  { %v3986_v29 = vmin.f32 %v5811_v54, %v730_v42  ;;  %v5812_v12 = vmax.f32 %v5709_v2, %v3731_v53  ;;  %v3994_v40 = vmin.f32 %v676_v8, %v730_v42  ;;  %v3996_v37 = vmin.f32 %v679_v18, %v730_v42 }
 0x1be   :  { %v3998_v60 = vmin.f32 %v682_v56, %v730_v42  ;;  %v4000_v26 = vmin.f32 %v685_v59, %v730_v42  ;;  %v4002_v1 = vmin.f32 %v688_v11, %v730_v42  ;;  %v4004_v19 = vmin.f32 %v691_v31, %v730_v42 }
 0x1bf   :  { %v3992_v51 = vmin.f32 %v5812_v12, %v730_v42  ;;  %v1020_v54 = vmax.f32 %v3950_v17, %v1019_v39  ;;  %v4007_v58 = vmin.f32 %v694_v57, %v730_v42  ;;  %v901_v2 = vmin.f32 %v3918_v28, %v3935_v16 }
 0x1c0   :  { %v902_v53 = vmin.f32 %v3923_v5, %v3940_v30  ;;  %v4013_v8 = vmin.f32 %v697_v43, %v730_v42  ;;  %v4015_v18 = vmin.f32 %v700_v22, %v730_v42  ;;  %v4017_v56 = vmin.f32 %v703_v63, %v730_v42 }
 0x1c1   :  { %v2138_v59 = vcvt.s32.f32 %v2137_v45  ;;  %v1021_v11 = vmax.f32 %v3956_v21, %v1020_v54  ;;  %v4020_v31 = vmin.f32 %v706_v33, %v730_v42  ;;  %v903_v57 = vmin.f32 %v901_v2, %v3902_v61  ;;  %v4040_v2 = vpop.eup %2633 }
 0x1c2   :  { %v904_v39 = vmin.f32 %v902_v53, %v3907_v7  ;;  %v4024_v12 = vmin.f32 %v709_v49, %v730_v42  ;;  %v4026_v41 = vmin.f32 %v712_v36, %v730_v42  ;;  %v2162_v43 = vcvt.s32.f32 %v2161_v38  ;;  %v5861_v38 = vld [vmem:[#allocation88_spill] sm:$0xff] }
 0x1c3   :  { %v2139_v3 = vand.u32 2147483647, %v2138_v59  ;;  %v1022_v22 = vmax.f32 %v3961_v62, %v1021_v11  ;;  %v905_v63 = vmin.f32 %v903_v57, %v3930_v44  ;;  %v2089_v54 = vcvt.f32.s32 %v3809_v34  ;;  %v5838_v44 = vld [vmem:[#allocation34_spill] sm:$0xff] }
 0x1c4   :  { %v906_v45 = vmin.f32 %v904_v39, %v3945_v32  ;;  %v4032_v33 = vmin.f32 %v715_v24, %v730_v42  ;;  %v4034_v9 = vmin.f32 %v718_v46, %v730_v42  ;;  %v2164_v59 = vand.u32 2147483648, %v3818_v14  ;;  %v5837_v32 = vld [vmem:[#allocation33_spill] sm:$0xff] }
 0x1c5   :  { %v2141_v53 = vor.u32 %v2140_v52, %v2139_v3  ;;  %v2087_v24 = vand.u32 2147483647, %v3809_v34  ;;  %v4050_v42 = vmul.f32 %v4040_v2, %v3568_v10  ;;  %v1023_v46 = vmax.f32 %v3966_v55, %v1022_v22 }
 0x1c6   :  { %v2163_v11 = vand.u32 2147483647, %v2162_v43  ;;  %v4056_v50 = vmul.f32 %v4040_v2, %v3395_v4  ;;  %v907_v39 = vmin.f32 %v905_v63, %v3950_v17  ;;  %v908_v3 = vmin.f32 %v906_v45, %v3956_v21  ;;  %v5820_v4 = vld [vmem:[#allocation21_spill] sm:$0xff]  ;;  %v5835_v21 = vld [vmem:[#allocation31_spill] sm:$0xff]  ;;  %v5836_v17 = vld [vmem:[#allocation32_spill] sm:$0xff] }
 0x1c7   :  { %5815 = vst [vmem:[#allocation67_spill] sm:$0xff] %v4050_v42  ;;  %v4060_v52 = vcvt.s32.f32 %v2089_v54  ;;  %v4064_v36 = vmul.f32 %v4040_v2, %v5727_v6  ;;  %v4068_v10 = vmul.f32 %v4040_v2, %v3404_v20  ;;  %v4072_v43 = vmul.f32 %v4040_v2, %v3417_v27  ;;  %v5825_v6 = vld [vmem:[#allocation22_spill] sm:$0xff]  ;;  %v5827_v20 = vld [vmem:[#allocation25_spill] sm:$0xff] }
 0x1c8   :  { %5816 = vst [vmem:[#allocation68_spill] sm:$0xff] %v4056_v50  ;;  %v4076_v22 = vmul.f32 %v4040_v2, %v5820_v4  ;;  %v5822_v63 = vand.u32 2147483647, %v3818_v14  ;;  %v4086_v54 = vmul.f32 %v4040_v2, %v5825_v6  ;;  %v4090_v49 = vmul.f32 %v4040_v2, %v5827_v20  ;;  %v5829_v27 = vld [vmem:[#allocation26_spill] sm:$0xff]  ;;  %v5831_v4 = vld [vmem:[#allocation27_spill] sm:$0xff]  ;;  %v5833_v50 = vld [vmem:[#allocation29_spill] sm:$0xff] }
 0x1c9   :  { %5817 = vst [vmem:[#allocation69_spill] sm:$0xff] %v4064_v36  ;;  %5818 = vst [vmem:[#allocation70_spill] sm:$0xff] %v4068_v10  ;;  %v4094_v57 = vmul.f32 %v4040_v2, %v5829_v27  ;;  %v4098_v42 = vmul.f32 %v4040_v2, %v5831_v4  ;;  %v4106_v6 = vmul.f32 %v4040_v2, %v5833_v50  ;;  %v5839_v50 = vld [vmem:[#allocation35_spill] sm:$0xff]  ;;  %vm4175_vm2 = vcmp.lt.f32.partialorder %v2087_v24, 8388608.0 }
 0x1ca   :  { %5819 = vst [vmem:[#allocation71_spill] sm:$0xff] %v4072_v43  ;;  %5821 = vst [vmem:[#allocation72_spill] sm:$0xff] %v4076_v22  ;;  %vm4080_vm1 = vcmp.lt.f32.partialorder %v5822_v63, 8388608.0  ;;  %v5832_v63 = vld [vmem:[#allocation28_spill] sm:$0xff]  ;;  %v5834_v43 = vld [vmem:[#allocation30_spill] sm:$0xff]  ;;  %v4114_v27 = vmul.f32 %v4040_v2, %v5835_v21  ;;  %v4118_v4 = vmul.f32 %v4040_v2, %v5836_v17  ;;  %v4124_v7 = vmul.f32 %v4040_v2, %v5838_v44 }
 0x1cb   :  { %5826 = vst [vmem:[#allocation73_spill] sm:$0xff] %v4086_v54  ;;  %5828 = vst [vmem:[#allocation74_spill] sm:$0xff] %v4090_v49  ;;  %v4102_v36 = vmul.f32 %v4040_v2, %v5832_v63  ;;  %v4110_v20 = vmul.f32 %v4040_v2, %v5834_v43  ;;  %v1112_v63 = vmul.f32 %v4040_v2, %v5837_v32  ;;  %v5841_v43 = vld [vmem:[#allocation36_spill] sm:$0xff]  ;;  %v5843_v21 = vld [vmem:[#allocation37_spill] sm:$0xff] }
 0x1cc   :  { %5830 = vst [vmem:[#allocation75_spill] sm:$0xff] %v4094_v57  ;;  %v4128_v61 = vmul.f32 %v4040_v2, %v5839_v50  ;;  %v4132_v10 = vmul.f32 %v4040_v2, %v5841_v43  ;;  %v4136_v54 = vmul.f32 %v4040_v2, %v5843_v21  ;;  %v5845_v17 = vld [vmem:[#allocation38_spill] sm:$0xff]  ;;  %v5847_v32 = vld [vmem:[#allocation39_spill] sm:$0xff] }
 0x1cd   :  { %v4140_v22 = vmul.f32 %v4040_v2, %v5845_v17  ;;  %v4144_v44 = vmul.f32 %v4040_v2, %v5847_v32  ;;  %v5849_v57 = vld [vmem:[#allocation83_spill] sm:$0xff]  ;;  %v909_v32 = vmin.f32 %v907_v39, %v3961_v62  ;;  %v2129_v49 = vcvt.f32.s32 %v1112_v63 }
 0x1ce   :  { %5840 = vst [vmem:[#allocation76_spill] sm:$0xff] %v4128_v61  ;;  %5842 = vst [vmem:[#allocation78_spill] sm:$0xff] %v4132_v10  ;;  %v4148_v50 = vmul.f32 %v4040_v2, %v5849_v57  ;;  %v5851_v61 = vld [vmem:[#allocation84_spill] sm:$0xff]  ;;  %v5853_v10 = vld [vmem:[#allocation85_spill] sm:$0xff]  ;;  %v2142_v57 = vsel %vm4042_vm0, %v2141_v53, %v3815_v13  ;;  %v4181_v13 = vmul.f32 %v4040_v2, %v5861_v38  ;;  %v2132_v38 = vand.u32 2147483648, %v1112_v63 }
 0x1cf   :  { %5844 = vst [vmem:[#allocation79_spill] sm:$0xff] %v4136_v54  ;;  %5846 = vst [vmem:[#allocation80_spill] sm:$0xff] %v4140_v22  ;;  %v4152_v43 = vmul.f32 %v4040_v2, %v5851_v61  ;;  %v4156_v21 = vmul.f32 %v4040_v2, %v5853_v10  ;;  %v5855_v54 = vld [vmem:[#allocation86_spill] sm:$0xff]  ;;  %v1024_v22 = vmax.f32 %v3971_v25, %v1023_v46  ;;  %v5857_v10 = vld [vmem:[#allocation87_spill] sm:$0xff] }
 0x1d0   :  { %5848 = vst [vmem:[#allocation82_spill] sm:$0xff] %v4144_v44  ;;  %5850 = vst [vmem:[#allocation50_spill] sm:$0xff] %v4148_v50  ;;  %v4160_v17 = vmul.f32 %v4040_v2, %v5855_v54  ;;  %v910_v44 = vmin.f32 %v908_v3, %v3966_v55  ;;  %v2165_v61 = vor.u32 %v2164_v59, %v2163_v11  ;;  %v1305_v50 = vmax.f32 %v2142_v57, -8.0 }
 0x1d1   :  { %5852 = vst [vmem:[#allocation54_spill] sm:$0xff] %v4152_v43  ;;  %5854 = vst [vmem:[#allocation13_spill] sm:$0xff] %v4156_v21  ;;  %v2127_v43 = vand.u32 2147483647, %v1112_v63  ;;  %v4170_v21 = vmul.f32 %v4040_v2, %v5857_v10  ;;  %v1025_v54 = vmax.f32 %v3976_v0, %v1024_v22  ;;  %v911_v46 = vmin.f32 %v909_v32, %v3971_v25 }
 0x1d2   :  { %5856 = vst [vmem:[#allocation21_spill] sm:$0xff] %v4160_v17  ;;  %v912_v39 = vmin.f32 %v910_v44, %v3976_v0  ;;  %v2166_v53 = vsel %vm4080_vm1, %v2165_v61, %v3818_v14  ;;  %v1401_v59 = vmin.f32 %v1305_v50, 7.0  ;;  %v2130_v11 = vcvt.s32.f32 %v2129_v49 }
 0x1d3   :  { %5858 = vst [vmem:[#allocation22_spill] sm:$0xff] %v4170_v21  ;;  %v1026_v22 = vmax.f32 %v3981_v15, %v1025_v54  ;;  %v913_v32 = vmin.f32 %v911_v46, %v3981_v15  ;;  %v1308_v24 = vmax.f32 %v2166_v53, -8.0  ;;  %vm4189_vm3 = vcmp.lt.f32.partialorder %v2127_v43, 8388608.0 }
 0x1d4   :  { %v914_v44 = vmin.f32 %v912_v39, %v3986_v29  ;;  %v2131_v10 = vand.u32 2147483647, %v2130_v11  ;;  %v2153_v21 = vcvt.f32.s32 %v4124_v7  ;;  %v2151_v54 = vand.u32 2147483647, %v4124_v7 }
 0x1d5   :  { %v1027_v45 = vmax.f32 %v3986_v29, %v1026_v22  ;;  %v915_v14 = vmin.f32 %v913_v32, %v3992_v51  ;;  %v1404_v50 = vmin.f32 %v1308_v24, 7.0  ;;  %v2091_v43 = vand.u32 2147483647, %v4060_v52 }
 0x1d6   :  { %v916_v49 = vmin.f32 %v914_v44, %v3994_v40  ;;  %v2133_v61 = vor.u32 %v2132_v38, %v2131_v10  ;;  %v2154_v46 = vcvt.s32.f32 %v2153_v21  ;;  %v2156_v44 = vand.u32 2147483648, %v4124_v7 }
 0x1d7   :  { %v1028_v39 = vmax.f32 %v3992_v51, %v1027_v45  ;;  %v917_v53 = vmin.f32 %v915_v14, %v3996_v37  ;;  %v1552_v17 = vpack.c.bf16 %v1404_v50, %v1401_v59  ;;  %v5864_v24 = vand.u32 2147483648, %v3809_v34 }
 0x1d8   :  { %v918_v11 = vmin.f32 %v916_v49, %v3998_v60  ;;  %v2134_v22 = vsel %vm4189_vm3, %v2133_v61, %v1112_v63  ;;  %v2155_v32 = vand.u32 2147483647, %v2154_v46  ;;  %v2111_v63 = vand.u32 2147483647, %v3812_v47 }
 0x1d9   :  { %v2093_v10 = vor.u32 %v5864_v24, %v2091_v43  ;;  %v1029_v21 = vmax.f32 %v3994_v40, %v1028_v39  ;;  %v919_v52 = vmin.f32 %v917_v53, %v4000_v26  ;;  %1578 = vmatprep.subr.bf16.mxu0 %v1552_v17  ;;  %v1304_v45 = vmax.f32 %v2134_v22, -8.0 }
 0x1da   :  { %v920_v38 = vmin.f32 %v918_v11, %v4002_v1  ;;  %v2157_v14 = vor.u32 %v2156_v44, %v2155_v32  ;;  %v2113_v57 = vcvt.f32.s32 %v3812_v47  ;;  %vm2152_vm4 = vcmp.lt.f32.partialorder %v2151_v54, 8388608.0 }
 0x1db   :  { %v2094_v59 = vsel %vm4175_vm2, %v2093_v10, %v3809_v34  ;;  %v1030_v49 = vmax.f32 %v3996_v37, %v1029_v21  ;;  %v921_v50 = vmin.f32 %v919_v52, %v4004_v19  ;;  %v1400_v17 = vmin.f32 %v1304_v45, 7.0 }
 0x1dc   :  { %v922_v61 = vmin.f32 %v920_v38, %v4007_v58  ;;  %v2158_v46 = vsel %vm2152_vm4, %v2157_v14, %v4124_v7  ;;  %v2114_v43 = vcvt.s32.f32 %v2113_v57  ;;  %v1299_v39 = vmax.f32 %v2094_v59, -8.0 }
 0x1dd   :  { %v1031_v53 = vmax.f32 %v3998_v60, %v1030_v49  ;;  %v923_v34 = vmin.f32 %v921_v50, %v4013_v8  ;;  %v1307_v11 = vmax.f32 %v2158_v46, -8.0  ;;  %vm4222_vm5 = vcmp.lt.f32.partialorder %v2111_v63, 8388608.0 }
 0x1de   :  { %v924_v3 = vmin.f32 %v922_v61, %v4015_v18  ;;  %v2115_v32 = vand.u32 2147483647, %v2114_v43  ;;  %v2116_v44 = vand.u32 2147483648, %v3812_v47  ;;  %v2081_v54 = vcvt.f32.s32 %v4114_v27 }
 0x1df   :  { %v1032_v7 = vmax.f32 %v4000_v26, %v1031_v53  ;;  %v925_v24 = vmin.f32 %v923_v34, %v4017_v56  ;;  %v1403_v21 = vmin.f32 %v1307_v11, 7.0  ;;  %v1395_v38 = vmin.f32 %v1299_v39, 7.0 }
 0x1e0   :  { %v926_v10 = vmin.f32 %v924_v3, %v4020_v31  ;;  %v2117_v52 = vor.u32 %v2116_v44, %v2115_v32  ;;  %v2079_v45 = vand.u32 2147483647, %v4114_v27  ;;  %v2082_v14 = vcvt.s32.f32 %v2081_v54 }
 0x1e1   :  { %v1033_v59 = vmax.f32 %v4002_v1, %v1032_v7  ;;  %v927_v63 = vmin.f32 %v925_v24, %v4024_v12  ;;  %v1551_v49 = vpack.c.bf16 %v1403_v21, %v1400_v17  ;;  %v2084_v46 = vand.u32 2147483648, %v4114_v27 }
 0x1e2   :  { %v928_v57 = vmin.f32 %v926_v10, %v4026_v41  ;;  %v2118_v50 = vsel %vm4222_vm5, %v2117_v52, %v3812_v47  ;;  %v2083_v61 = vand.u32 2147483647, %v2082_v14  ;;  %v2105_v43 = vcvt.f32.s32 %v4118_v4 }
 0x1e3   :  { %v1034_v39 = vmax.f32 %v4004_v19, %v1033_v59  ;;  %v929_v53 = vmin.f32 %v927_v63, %v4032_v33  ;;  %1579 = vmatpush1.bf16.msra.mxu0 %v1551_v49  ;;  %v1302_v3 = vmax.f32 %v2118_v50, -8.0  ;;  %vm2080_vm6 = vcmp.lt.f32.partialorder %v2079_v45, 8388608.0 }
 0x1e4   :  { %v930_v34 = vmin.f32 %v928_v57, %v4034_v9  ;;  %v2085_v11 = vor.u32 %v2084_v46, %v2083_v61  ;;  %v2103_v17 = vand.u32 2147483647, %v4118_v4  ;;  %v2106_v32 = vcvt.s32.f32 %v2105_v43 }
 0x1e5   :  { %v1035_v47 = vmax.f32 %v4007_v58, %v1034_v39  ;;  %v1398_v44 = vmin.f32 %v1302_v3, 7.0  ;;  %v2039_v54 = vand.u32 2147483647, %v3803_v48  ;;  %v2108_v10 = vand.u32 2147483648, %v4118_v4 }
 0x1e6   :  { %v931_v22 = vmin.f32 %v929_v53, %v930_v34  ;;  %v2086_v7 = vsel %vm2080_vm6, %v2085_v11, %v4114_v27  ;;  %v2107_v24 = vand.u32 2147483647, %v2106_v32  ;;  %v2041_v21 = vcvt.f32.s32 %v3803_v48 }
 0x1e7   :  { %v1036_v52 = vmax.f32 %v4013_v8, %v1035_v47  ;;  %v1549_v14 = vpack.c.bf16 %v1398_v44, %v1395_v38  ;;  %v1298_v59 = vmax.f32 %v2086_v7, -8.0  ;;  %vm2104_vm7 = vcmp.lt.f32.partialorder %v2103_v17, 8388608.0 }
 0x1e8   :  { %v932_v45 = vrot.slane %v931_v22, 4  ;;  %v2109_v63 = vor.u32 %v2108_v10, %v2107_v24  ;;  %v2042_v57 = vcvt.s32.f32 %v2041_v21  ;;  %v2044_v49 = vand.u32 2147483648, %v3803_v48 }
 0x1e9   :  { %v1037_v50 = vmax.f32 %v4015_v18, %v1036_v52  ;;  %1580 = vmatprep.subr.bf16.mxu0 %v1549_v14  ;;  %vm4252_vm8 = vcmp.lt.f32.partialorder %v2039_v54, 8388608.0  ;;  %v2065_v46 = vcvt.f32.s32 %v3806_v35  ;;  %v1394_v39 = vmin.f32 %v1298_v59, 7.0 }
 0x1ea   :  { %v933_v61 = vmin.f32 %v931_v22, %v932_v45  ;;  %v2110_v43 = vsel %vm2104_vm7, %v2109_v63, %v4118_v4  ;;  %v2043_v38 = vand.u32 2147483647, %v2042_v57  ;;  %v2063_v53 = vand.u32 2147483647, %v3806_v35 }
 0x1eb   :  { %v1038_v34 = vmax.f32 %v4017_v56, %v1037_v50  ;;  %v1301_v11 = vmax.f32 %v2110_v43, -8.0  ;;  %v2066_v17 = vcvt.s32.f32 %v2065_v46  ;;  %v2068_v47 = vand.u32 2147483648, %v3806_v35 }
 0x1ec   :  { %v934_v3 = vrot.slane %v933_v61, 2  ;;  %v2045_v32 = vor.u32 %v2044_v49, %v2043_v38  ;;  %v2031_v22 = vand.u32 2147483647, %v4106_v6  ;;  %v2033_v44 = vcvt.f32.s32 %v4106_v6 }
 0x1ed   :  { %v1039_v54 = vmax.f32 %v4020_v31, %v1038_v34  ;;  %v1397_v4 = vmin.f32 %v1301_v11, 7.0  ;;  %v2067_v24 = vand.u32 2147483647, %v2066_v17  ;;  %vm4267_vm9 = vcmp.lt.f32.partialorder %v2063_v53, 8388608.0 }
 0x1ee   :  { %v935_v7 = vmin.f32 %v933_v61, %v934_v3  ;;  %v2046_v10 = vsel %vm4252_vm8, %v2045_v32, %v3803_v48  ;;  %v2034_v52 = vcvt.s32.f32 %v2033_v44  ;;  %v2036_v45 = vand.u32 2147483648, %v4106_v6 }
 0x1ef   :  { %v1040_v14 = vmax.f32 %v4024_v12, %v1039_v54  ;;  %v1548_v63 = vpack.c.bf16 %v1397_v4, %v1394_v39  ;;  %v2069_v57 = vor.u32 %v2068_v47, %v2067_v24  ;;  %v1293_v49 = vmax.f32 %v2046_v10, -8.0 }
 0x1f0   :  { %v936_v59 = vrot.slane %v935_v7, 1  ;;  %vm4273_vm10 = vcmp.lt.f32.partialorder %v2031_v22, 8388608.0  ;;  %v2035_v61 = vand.u32 2147483647, %v2034_v52  ;;  %v2057_v48 = vcvt.f32.s32 %v4110_v20 }
 0x1f1   :  { %v1041_v27 = vmax.f32 %v4026_v41, %v1040_v14  ;;  %1581 = vmatpush1.bf16.msra.mxu0 %v1548_v63  ;;  %v2070_v43 = vsel %vm4267_vm9, %v2069_v57, %v3806_v35  ;;  %v2055_v38 = vand.u32 2147483647, %v4110_v20  ;;  %v1389_v53 = vmin.f32 %v1293_v49, 7.0  ;;  %v5875_v14 = vld [vmem:[#allocation20_spill] sm:$0xff] }
 0x1f2   :  { %v937_v46 = vmin.f32 %v935_v7, %v936_v59  ;;  %v1296_v39 = vmax.f32 %v2070_v43, -8.0  ;;  %v2037_v34 = vor.u32 %v2036_v45, %v2035_v61  ;;  %v2058_v3 = vcvt.s32.f32 %v2057_v48 }
 0x1f3   :  { %v1042_v11 = vmax.f32 %v4032_v33, %v1041_v27  ;;  %v1991_v32 = vand.u32 2147483647, %v3797_v23  ;;  %v1993_v47 = vcvt.f32.s32 %v3797_v23  ;;  %v2060_v35 = vand.u32 2147483648, %v4110_v20 }
 0x1f4   :  { %v940_v17 = vmin.f32 %v937_v46, 0.0  ;;  %v1392_v22 = vmin.f32 %v1296_v39, 7.0  ;;  %v2038_v44 = vsel %vm4273_vm10, %v2037_v34, %v4106_v6  ;;  %v2059_v54 = vand.u32 2147483647, %v2058_v3 }
 0x1f5   :  { %v1043_v7 = vmax.f32 %v4034_v9, %v1042_v11  ;;  %vm4291_vm11 = vcmp.lt.f32.partialorder %v2055_v38, 8388608.0  ;;  %v1292_v24 = vmax.f32 %v2038_v44, -8.0  ;;  %v1996_v10 = vand.u32 2147483648, %v3797_v23 }
 0x1f6   :  { %v1546_v21 = vpack.c.bf16 %v1392_v22, %v1389_v53  ;;  %v2061_v52 = vor.u32 %v2060_v35, %v2059_v54  ;;  %v1994_v45 = vcvt.s32.f32 %v1993_v47  ;;  %v2015_v59 = vand.u32 2147483647, %v5875_v14 }
 0x1f7   :  { %v5876_v6 = vmax.f32 %v3918_v28, %v3935_v16  ;;  %v4300_v57 = vand.u32 2147483647, %v940_v17  ;;  %vm4302_vm12 = vcmp.lt.f32.partialorder %v1991_v32, 8388608.0  ;;  %v2017_v50 = vcvt.f32.s32 %v5875_v14 }
 0x1f8   :  { %1582 = vmatprep.subr.bf16.mxu0 %v1546_v21  ;;  %v2062_v61 = vsel %vm4291_vm11, %v2061_v52, %v4110_v20  ;;  %v1388_v48 = vmin.f32 %v1292_v24, 7.0  ;;  %v1995_v27 = vand.u32 2147483647, %v1994_v45  ;;  %v1983_v46 = vand.u32 2147483647, %v4098_v42 }
 0x1f9   :  { %v1044_v63 = vmax.f32 %v5876_v6, %v1043_v7  ;;  %v5879_v43 = vmax.f32 %v3923_v5, %v3940_v30  ;;  %v1295_v39 = vmax.f32 %v2062_v61, -8.0  ;;  %v2018_v53 = vcvt.s32.f32 %v2017_v50 }
 0x1fa   :  { %v1985_v34 = vcvt.f32.s32 %v4098_v42  ;;  %v1997_v3 = vor.u32 %v1996_v10, %v1995_v27  ;;  %vm4315_vm13 = vcmp.lt.f32.partialorder %v2015_v59, 8388608.0  ;;  %v2020_v17 = vand.u32 2147483648, %v5875_v14 }
 0x1fb   :  { %v1045_v38 = vmax.f32 %v5879_v43, %v1044_v63  ;;  %v2007_v20 = vand.u32 2147483647, %v4102_v36  ;;  %v1391_v47 = vmin.f32 %v1295_v39, 7.0  ;;  %v2019_v22 = vand.u32 2147483647, %v2018_v53  ;;  %v5886_v63 = vld [vmem:[#allocation55_spill] sm:$0xff] }
 0x1fc   :  { %v1986_v44 = vcvt.s32.f32 %v1985_v34  ;;  %v1998_v54 = vsel %vm4302_vm12, %v1997_v3, %v3797_v23  ;;  %vm4324_vm14 = vcmp.lt.f32.partialorder %v1983_v46, 8388608.0  ;;  %v1988_v7 = vand.u32 2147483648, %v4098_v42  ;;  %v5887_v3 = vld [vmem:[#allocation14_spill] sm:$0xff] }
 0x1fd   :  { %v1046_v32 = vrot.slane %v1045_v38, 4  ;;  %v2009_v4 = vcvt.f32.s32 %v4102_v36  ;;  %v1545_v10 = vpack.c.bf16 %v1391_v47, %v1388_v48  ;;  %v2021_v21 = vor.u32 %v2020_v17, %v2019_v22 }
 0x1fe   :  { %v1287_v52 = vmax.f32 %v1998_v54, -8.0  ;;  %v1987_v45 = vand.u32 2147483647, %v1986_v44  ;;  %vm4330_vm15 = vcmp.lt.f32.partialorder %v2007_v20, 8388608.0  ;;  %v1945_v23 = vcvt.f32.s32 %v5886_v63  ;;  %v5898_v44 = vld [vmem:[#allocation48_spill] sm:$0xff] }
 0x1ff   :  { %v1047_v24 = vmax.f32 %v1045_v38, %v1046_v32  ;;  %v2010_v6 = vcvt.s32.f32 %v2009_v4  ;;  %1583 = vmatpush1.bf16.msra.mxu0 %v1545_v10  ;;  %v2022_v50 = vsel %vm4315_vm13, %v2021_v21, %v5875_v14  ;;  %v2012_v61 = vand.u32 2147483648, %v4102_v36  ;;  %v5890_v10 = vld [vmem:[#allocation74_spill] sm:$0xff] }
 0x200   :  { %v1943_v48 = vand.u32 2147483647, %v5886_v63  ;;  %v1290_v27 = vmax.f32 %v2022_v50, -8.0  ;;  %v1383_v46 = vmin.f32 %v1287_v52, 7.0  ;;  %v1989_v43 = vor.u32 %v1988_v7, %v1987_v45 }
 0x201   :  { %v1048_v49 = vrot.slane %v1047_v24, 2  ;;  %v2011_v38 = vand.u32 2147483647, %v2010_v6  ;;  %v1946_v53 = vcvt.s32.f32 %v1945_v23  ;;  %v1948_v34 = vand.u32 2147483648, %v5886_v63 }
 0x202   :  { %v1969_v17 = vcvt.f32.s32 %v5887_v3  ;;  %v1386_v20 = vmin.f32 %v1290_v27, 7.0  ;;  %v1990_v11 = vsel %vm4324_vm14, %v1989_v43, %v4098_v42  ;;  %v1967_v32 = vand.u32 2147483647, %v5887_v3 }
 0x203   :  { %v1049_v39 = vmax.f32 %v1047_v24, %v1048_v49  ;;  %v2013_v14 = vor.u32 %v2012_v61, %v2011_v38  ;;  %v1286_v22 = vmax.f32 %v1990_v11, -8.0  ;;  %vm4346_vm0 = vcmp.lt.f32.partialorder %v1943_v48, 8388608.0  ;;  %v5893_v48 = vld [vmem:[#allocation75_spill] sm:$0xff] }
 0x204   :  { %v1947_v54 = vand.u32 2147483647, %v1946_v53  ;;  %v1543_v7 = vpack.c.bf16 %v1386_v20, %v1383_v46  ;;  %v1970_v24 = vcvt.s32.f32 %v1969_v17  ;;  %v1935_v21 = vand.u32 2147483647, %v5890_v10 }
 0x205   :  { %v1050_v47 = vrot.slane %v1049_v39, 1  ;;  %v2014_v4 = vsel %vm4330_vm15, %v2013_v14, %v4102_v36  ;;  %v1382_v52 = vmin.f32 %v1286_v22, 7.0  ;;  %vm4354_vm1 = vcmp.lt.f32.partialorder %v1967_v32, 8388608.0 }
 0x206   :  { %v1289_v42 = vmax.f32 %v2014_v4, -8.0  ;;  %v1949_v45 = vor.u32 %v1948_v34, %v1947_v54  ;;  %1584 = vmatprep.subr.bf16.mxu0 %v1543_v7  ;;  %v1971_v23 = vand.u32 2147483647, %v1970_v24  ;;  %v1972_v49 = vand.u32 2147483648, %v5887_v3 }
 0x207   :  { %v1051_v35 = vmax.f32 %v1049_v39, %v1050_v47  ;;  %v1937_v50 = vcvt.f32.s32 %v5890_v10  ;;  %v1959_v27 = vand.u32 2147483647, %v5893_v48  ;;  %v1961_v39 = vcvt.f32.s32 %v5893_v48 }
 0x208   :  { %v1385_v59 = vmin.f32 %v1289_v42, 7.0  ;;  %v1950_v36 = vsel %vm4346_vm0, %v1949_v45, %v5886_v63  ;;  %v1973_v46 = vor.u32 %v1972_v49, %v1971_v23  ;;  %vm4366_vm2 = vcmp.lt.f32.partialorder %v1935_v21, 8388608.0  ;;  %v5900_v23 = vld [vmem:[#allocation18_spill] sm:$0xff] }
 0x209   :  { %v1054_v61 = vmax.f32 %v1051_v35, 0.0  ;;  %v1281_v43 = vmax.f32 %v1950_v36, -8.0  ;;  %v1938_v38 = vcvt.s32.f32 %v1937_v50  ;;  %v1940_v20 = vand.u32 2147483648, %v5890_v10 }
 0x20a   :  { %v1542_v34 = vpack.c.bf16 %v1385_v59, %v1382_v52  ;;  %v1974_v63 = vsel %vm4354_vm1, %v1973_v46, %v5887_v3  ;;  %vm4374_vm3 = vcmp.lt.f32.partialorder %v1959_v27, 8388608.0  ;;  %v1962_v32 = vcvt.s32.f32 %v1961_v39  ;;  %v5901_v27 = vld [vmem:[#allocation89_spill] sm:$0xff] }
 0x20b   :  { %v1060_v53 = vmax.f32 %v4300_v57, %v1054_v61  ;;  %v1939_v11 = vand.u32 2147483647, %v1938_v38  ;;  %v1284_v57 = vmax.f32 %v1974_v63, -8.0  ;;  %v1377_v22 = vmin.f32 %v1281_v43, 7.0  ;;  %v5902_v43 = vld [vmem:[#allocation90_spill] sm:$0xff] }
 0x20c   :  { %1585 = vmatpush1.bf16.msra.mxu0 %v1542_v34  ;;  %v1897_v54 = vcvt.f32.s32 %v5898_v44  ;;  %v1963_v4 = vand.u32 2147483647, %v1962_v32  ;;  %v1964_v24 = vand.u32 2147483648, %v5893_v48  ;;  %v1895_v21 = vand.u32 2147483647, %v5898_v44 }
 0x20d   :  { %v1063_v47 = vmax.f32 %v1060_v53, 1e-05  ;;  %v1941_v7 = vor.u32 %v1940_v20, %v1939_v11  ;;  %v1380_v3 = vmin.f32 %v1284_v57, 7.0  ;;  %v1900_v52 = vand.u32 2147483648, %v5898_v44  ;;  %v5903_v20 = vld [vmem:[#allocation72_spill] sm:$0xff] }
 0x20e   :  { %v1898_v42 = vcvt.s32.f32 %v1897_v54  ;;  %v1965_v6 = vor.u32 %v1964_v24, %v1963_v4  ;;  %v1919_v49 = vand.u32 2147483647, %v5900_v23  ;;  %v1921_v50 = vcvt.f32.s32 %v5900_v23 }
 0x20f   :  { %v4381_v35 = vmul.f32 0.14285715, %v1063_v47  ;;  %v1942_v45 = vsel %vm4366_vm2, %v1941_v7, %v5890_v10  ;;  %v1540_v61 = vpack.c.bf16 %v1380_v3, %v1377_v22  ;;  %v4392_v46 = vmul.f32 %v4040_v2, %v5901_v27 }
 0x210   :  { %v1280_v59 = vmax.f32 %v1942_v45, -8.0  ;;  %v1899_v36 = vand.u32 2147483647, %v1898_v42  ;;  %v4396_v38 = vmul.f32 %v4040_v2, %v5902_v43  ;;  %v1966_v10 = vsel %vm4374_vm3, %v1965_v6, %v5893_v48  ;;  %v5906_v48 = vld [vmem:[#allocation73_spill] sm:$0xff]  ;;  %v5907_v6 = vld [vmem:[#allocation91_spill] sm:$0xff] }
 0x211   :  { %5899 = vst [vmem:[#allocation25_spill] sm:$0xff] %v4381_v35  ;;  %2635 = vrcp.f32 %v4381_v35  ;;  %v1922_v39 = vcvt.s32.f32 %v1921_v50  ;;  %1586 = vmatprep.subr.bf16.mxu0 %v1540_v61  ;;  %v1283_v53 = vmax.f32 %v1966_v10, -8.0  ;;  %v1889_v63 = vcvt.f32.s32 %v5903_v20  ;;  %v5908_v61 = vld [vmem:[#allocation19_spill] sm:$0xff] }
 0x212   :  { %v1376_v34 = vmin.f32 %v1280_v59, 7.0  ;;  %v1901_v17 = vor.u32 %v1900_v52, %v1899_v36  ;;  %vm1896_vm4 = vcmp.lt.f32.partialorder %v1895_v21, 8388608.0  ;;  %vm4402_vm5 = vcmp.lt.f32.partialorder %v1919_v49, 8388608.0 }
 0x213   :  { %v1923_v32 = vand.u32 2147483647, %v1922_v39  ;;  %v1924_v47 = vand.u32 2147483648, %v5900_v23  ;;  %v1379_v57 = vmin.f32 %v1283_v53, 7.0  ;;  %v1890_v14 = vcvt.s32.f32 %v1889_v63 }
 0x214   :  { %v1902_v22 = vsel %vm1896_vm4, %v1901_v17, %v5898_v44  ;;  %v1913_v54 = vcvt.f32.s32 %v5906_v48  ;;  %v1887_v24 = vand.u32 2147483647, %v5903_v20  ;;  %v1892_v3 = vand.u32 2147483648, %v5903_v20 }
 0x215   :  { %v1925_v7 = vor.u32 %v1924_v47, %v1923_v32  ;;  %v1275_v4 = vmax.f32 %v1902_v22, -8.0  ;;  %v1539_v21 = vpack.c.bf16 %v1379_v57, %v1376_v34  ;;  %v1891_v42 = vand.u32 2147483647, %v1890_v14  ;;  %v5909_v34 = vld [vmem:[#allocation41_spill] sm:$0xff] }
 0x216   :  { %v1911_v52 = vand.u32 2147483647, %v5906_v48  ;;  %v1914_v45 = vcvt.s32.f32 %v1913_v54  ;;  %v4414_v49 = vmul.f32 %v4040_v2, %v5907_v6  ;;  %v1916_v50 = vand.u32 2147483648, %v5906_v48  ;;  %v5912_v54 = vld [vmem:[#allocation92_spill] sm:$0xff] }
 0x217   :  { %v1926_v44 = vsel %vm4402_vm5, %v1925_v7, %v5900_v23  ;;  %v1849_v59 = vcvt.f32.s32 %v5908_v61  ;;  %1587 = vmatpush1.bf16.msra.mxu0 %v1539_v21  ;;  %v1371_v27 = vmin.f32 %v1275_v4, 7.0  ;;  %v1893_v43 = vor.u32 %v1892_v3, %v1891_v42 }
 0x218   :  { %v1278_v36 = vmax.f32 %v1926_v44, -8.0  ;;  %v1915_v10 = vand.u32 2147483647, %v1914_v45  ;;  %vm1888_vm6 = vcmp.lt.f32.partialorder %v1887_v24, 8388608.0  ;;  %v1847_v39 = vand.u32 2147483647, %v5908_v61 }
 0x219   :  { %v1850_v53 = vcvt.s32.f32 %v1849_v59  ;;  %v1873_v17 = vcvt.f32.s32 %v5909_v34  ;;  %v1894_v32 = vsel %vm1888_vm6, %v1893_v43, %v5903_v20  ;;  %vm4424_vm7 = vcmp.lt.f32.partialorder %v1911_v52, 8388608.0  ;;  %v5915_v52 = vld [vmem:[#allocation70_spill] sm:$0xff] }
 0x21a   :  { %v1374_v63 = vmin.f32 %v1278_v36, 7.0  ;;  %v1917_v11 = vor.u32 %v1916_v50, %v1915_v10  ;;  %v1274_v47 = vmax.f32 %v1894_v32, -8.0  ;;  %v1871_v22 = vand.u32 2147483647, %v5909_v34  ;;  %v5924_v32 = vld [vmem:[#allocation65_spill] sm:$0xff] }
 0x21b   :  { %v1851_v57 = vand.u32 2147483647, %v1850_v53  ;;  %v1874_v14 = vcvt.s32.f32 %v1873_v17  ;;  %v4431_v7 = vmul.f32 %v4040_v2, %v5912_v54  ;;  %v1852_v20 = vand.u32 2147483648, %v5908_v61  ;;  %v5921_v53 = vld [vmem:[#allocation60_spill] sm:$0xff]  ;;  %v5922_v17 = vld [vmem:[#allocation63_spill] sm:$0xff] }
 0x21c   :  { %v1537_v4 = vpack.c.bf16 %v1374_v63, %v1371_v27  ;;  %v1918_v24 = vsel %vm4424_vm7, %v1917_v11, %v5906_v48  ;;  %vm4439_vm8 = vcmp.lt.f32.partialorder %v1847_v39, 8388608.0  ;;  %v1876_v42 = vand.u32 2147483648, %v5909_v34  ;;  %v5920_v39 = vld [vmem:[#allocation59_spill] sm:$0xff]  ;;  %v5923_v63 = vld [vmem:[#allocation64_spill] sm:$0xff]  ;;  %v5925_v11 = vld [vmem:[#allocation66_spill] sm:$0xff] }
 0x21d   :  { %v1839_v45 = vand.u32 2147483647, %v5915_v52  ;;  %v1841_v2 = vcvt.f32.s32 %v5915_v52  ;;  %v1277_v6 = vmax.f32 %v1918_v24, -8.0  ;;  %v1370_v44 = vmin.f32 %v1274_v47, 7.0 }
 0x21e   :  { %v4437_v3 = vpop.eup %2635  ;;  %1588 = vmatprep.subr.bf16.mxu0 %v1537_v4  ;;  %v1853_v50 = vor.u32 %v1852_v20, %v1851_v57  ;;  %v1875_v59 = vand.u32 2147483647, %v1874_v14  ;;  %vm4462_vm9 = vcmp.lt.f32.partialorder %v1871_v22, 8388608.0  ;;  %v1844_v21 = vand.u32 2147483648, %v5915_v52 }
 0x21f   :  { %v4448_v48 = vmul.f32 %v4437_v3, %v4034_v9  ;;  %v4452_v36 = vmul.f32 %v4437_v3, %v3918_v28  ;;  %v4456_v27 = vmul.f32 %v4437_v3, %v3935_v16  ;;  %v4460_v43 = vmul.f32 %v4437_v3, %v3940_v30 }
 0x220   :  { %v4468_v9 = vmul.f32 %v4437_v3, %v5920_v39  ;;  %v4472_v28 = vmul.f32 %v4437_v3, %v5921_v53  ;;  %v4476_v16 = vmul.f32 %v4437_v3, %v5922_v17  ;;  %v4480_v30 = vmul.f32 %v4437_v3, %v5923_v63  ;;  %v5929_v53 = vld [vmem:[#allocation71_spill] sm:$0xff] }
 0x221   :  { %5916 = vst [vmem:[#allocation26_spill] sm:$0xff] %v4452_v36  ;;  %5917 = vst [vmem:[#allocation27_spill] sm:$0xff] %v4460_v43  ;;  %v4484_v23 = vmul.f32 %v4437_v3, %v5924_v32  ;;  %v4488_v47 = vmul.f32 %v4437_v3, %v5925_v11  ;;  %v4492_v57 = vmul.f32 %v4437_v3, %v3961_v62  ;;  %vm4530_vm10 = vcmp.lt.f32.partialorder %v1839_v45, 8388608.0  ;;  %v5932_v32 = vld [vmem:[#allocation81_spill] sm:$0xff] }
 0x222   :  { %v4496_v22 = vmul.f32 %v4437_v3, %v3966_v55  ;;  %v4500_v14 = vmul.f32 %v4437_v3, %v3971_v25  ;;  %v4504_v54 = vmul.f32 %v4437_v3, %v3976_v0  ;;  %v4508_v4 = vmul.f32 %v4437_v3, %v3981_v15 }
 0x223   :  { %v4512_v62 = vmul.f32 %v4437_v3, %v3986_v29  ;;  %v4516_v55 = vmul.f32 %v4437_v3, %v3992_v51  ;;  %v4520_v25 = vmul.f32 %v4437_v3, %v3996_v37  ;;  %v4524_v0 = vmul.f32 %v4437_v3, %v3998_v60 }
 0x224   :  { %v4528_v15 = vmul.f32 %v4437_v3, %v4000_v26  ;;  %v4536_v29 = vmul.f32 %v4437_v3, %v4002_v1  ;;  %v4540_v51 = vmul.f32 %v4437_v3, %v4004_v19  ;;  %v4544_v60 = vmul.f32 %v4437_v3, %v4007_v58 }
 0x225   :  { %5926 = vst [vmem:[#allocation28_spill] sm:$0xff] %v4516_v55  ;;  %v4548_v37 = vmul.f32 %v4437_v3, %v4013_v8  ;;  %v4552_v26 = vmul.f32 %v4437_v3, %v4015_v18  ;;  %v4556_v1 = vmul.f32 %v4437_v3, %v4017_v56  ;;  %v4560_v19 = vmul.f32 %v4437_v3, %v4020_v31 }
 0x226   :  { %v4564_v58 = vmul.f32 %v4437_v3, %v4024_v12  ;;  %v1373_v20 = vmin.f32 %v1277_v6, 7.0  ;;  %v1854_v8 = vsel %vm4439_vm8, %v1853_v50, %v5908_v61  ;;  %v1877_v45 = vor.u32 %v1876_v42, %v1875_v59 }
 0x227   :  { %v1842_v18 = vcvt.s32.f32 %v1841_v2  ;;  %v4571_v39 = vmul.f32 %v4437_v3, %v4026_v41  ;;  %v1269_v56 = vmax.f32 %v1854_v8, -8.0  ;;  %v1863_v17 = vand.u32 2147483647, %v5929_v53  ;;  %v5933_v8 = vld [vmem:[#allocation15_spill] sm:$0xff] }
 0x228   :  { %v1865_v31 = vcvt.f32.s32 %v5929_v53  ;;  %v1536_v63 = vpack.c.bf16 %v1373_v20, %v1370_v44  ;;  %v1878_v12 = vsel %vm4462_vm9, %v1877_v45, %v5909_v34  ;;  %v1868_v50 = vand.u32 2147483648, %v5929_v53 }
 0x229   :  { %v1843_v6 = vand.u32 2147483647, %v1842_v18  ;;  %v1272_v61 = vmax.f32 %v1878_v12, -8.0  ;;  %v1365_v42 = vmin.f32 %v1269_v56, 7.0  ;;  %vm4580_vm11 = vcmp.lt.f32.partialorder %v1863_v17, 8388608.0  ;;  %v1472_v18 = vpop.xlane.xlu0 %1471  ;;  %v1475_v56 = vpop.xlane.xlu1 %1474 }
 0x22a   :  { %v1866_v2 = vcvt.s32.f32 %v1865_v31  ;;  %1589 = vmatpush1.bf16.msra.mxu0 %v1536_v63  ;;  %v1799_v44 = vand.u32 2147483647, %v5932_v32  ;;  %v1801_v11 = vcvt.f32.s32 %v5932_v32  ;;  %v1804_v20 = vand.u32 2147483648, %v5932_v32 }
 0x22b   :  { %v1845_v41 = vor.u32 %v1844_v21, %v1843_v6  ;;  %v1368_v10 = vmin.f32 %v1272_v61, 7.0  ;;  %v1825_v45 = vcvt.f32.s32 %v5933_v8  ;;  %v1823_v12 = vand.u32 2147483647, %v5933_v8 }
 0x22c   :  { %v1867_v34 = vand.u32 2147483647, %v1866_v2  ;;  %vm4591_vm12 = vcmp.lt.f32.partialorder %v1799_v44, 8388608.0  ;;  %v1802_v63 = vcvt.s32.f32 %v1801_v11  ;;  %v1828_v2 = vand.u32 2147483648, %v5933_v8 }
 0x22d   :  { %v1846_v31 = vsel %vm4530_vm10, %v1845_v41, %v5915_v52  ;;  %v1534_v6 = vpack.c.bf16 %v1368_v10, %v1365_v42  ;;  %v1826_v36 = vcvt.s32.f32 %v1825_v45  ;;  %v1482_v55 = vmul.f32 0.14285715, %v1472_v18  ;;  %v5936_v41 = vld [vmem:[#allocation68_spill] sm:$0xff] }
 0x22e   :  { %v1869_v21 = vor.u32 %v1868_v50, %v1867_v34  ;;  %v1268_v61 = vmax.f32 %v1846_v31, -8.0  ;;  %v1803_v35 = vand.u32 2147483647, %v1802_v63  ;;  %v1483_v5 = vmul.f32 0.14285715, %v1475_v56  ;;  %v5941_v31 = vld [vmem:[#allocation69_spill] sm:$0xff] }
 0x22f   :  { %1590 = vmatprep.subr.bf16.mxu0 %v1534_v6  ;;  %v1791_v44 = vand.u32 2147483647, %v5936_v41  ;;  %v1793_v11 = vcvt.f32.s32 %v5936_v41  ;;  %v1827_v50 = vand.u32 2147483647, %v1826_v36  ;;  %v4602_v10 = vmax.f32 %v1482_v55, 1e-05 }
 0x230   :  { %v1870_v52 = vsel %vm4580_vm11, %v1869_v21, %v5929_v53  ;;  %v1364_v24 = vmin.f32 %v1268_v61, 7.0  ;;  %v1805_v42 = vor.u32 %v1804_v20, %v1803_v35  ;;  %vm4604_vm13 = vcmp.lt.f32.partialorder %v1823_v12, 8388608.0 }
 0x231   :  { %v1271_v43 = vmax.f32 %v1870_v52, -8.0  ;;  %v4608_v45 = vmax.f32 %v1483_v5, 1e-05  ;;  %vm4610_vm14 = vcmp.lt.f32.partialorder %v1791_v44, 8388608.0  ;;  %v1794_v53 = vcvt.s32.f32 %v1793_v11  ;;  %v5944_v52 = vld [vmem:[#allocation57_spill] sm:$0xff] }
 0x232   :  { %v1806_v56 = vsel %vm4591_vm12, %v1805_v42, %v5932_v32  ;;  %v1829_v35 = vor.u32 %v1828_v2, %v1827_v50  ;;  %v1796_v36 = vand.u32 2147483648, %v5936_v41  ;;  %2637 = vrcp.f32 %v4602_v10  ;;  %v5945_v42 = vld [vmem:[#allocation16_spill] sm:$0xff] }
 0x233   :  { %v1367_v59 = vmin.f32 %v1271_v43, 7.0  ;;  %v1263_v55 = vmax.f32 %v1806_v56, -8.0  ;;  %v1795_v20 = vand.u32 2147483647, %v1794_v53  ;;  %v1815_v5 = vand.u32 2147483647, %v5941_v31 }
 0x234   :  { %v1830_v12 = vsel %vm4604_vm13, %v1829_v35, %v5933_v8  ;;  %2639 = vrcp.f32 %v4608_v45  ;;  %v1817_v43 = vcvt.f32.s32 %v5941_v31  ;;  %v1820_v21 = vand.u32 2147483648, %v5941_v31 }
 0x235   :  { %v1533_v63 = vpack.c.bf16 %v1367_v59, %v1364_v24  ;;  %v1266_v17 = vmax.f32 %v1830_v12, -8.0  ;;  %v1359_v32 = vmin.f32 %v1263_v55, 7.0  ;;  %v1797_v6 = vor.u32 %v1796_v36, %v1795_v20 }
 0x236   :  { %vm4626_vm15 = vcmp.lt.f32.partialorder %v1815_v5, 8388608.0  ;;  %v1818_v2 = vcvt.s32.f32 %v1817_v43  ;;  %v2519_v24 = vand.u32 2147483647, %v5944_v52  ;;  %v2521_v44 = vcvt.f32.s32 %v5944_v52 }
 0x237   :  { %1591 = vmatpush1.bf16.msra.mxu0 %v1533_v63  ;;  %v1362_v8 = vmin.f32 %v1266_v17, 7.0  ;;  %v1798_v11 = vsel %vm4610_vm14, %v1797_v6, %v5936_v41  ;;  %v2543_v50 = vand.u32 2147483647, %v5945_v42  ;;  %v2545_v34 = vcvt.f32.s32 %v5945_v42  ;;  %v1478_v41 = vpop.xlane.xlu1 %1477 }
 0x238   :  { %v1819_v53 = vand.u32 2147483647, %v1818_v2  ;;  %v1262_v59 = vmax.f32 %v1798_v11, -8.0  ;;  %v2522_v56 = vcvt.s32.f32 %v2521_v44  ;;  %v2524_v35 = vand.u32 2147483648, %v5944_v52  ;;  %v5951_v11 = vld [vmem:[#allocation67_spill] sm:$0xff] }
 0x239   :  { %v1531_v36 = vpack.c.bf16 %v1362_v8, %v1359_v32  ;;  %vm4638_vm0 = vcmp.lt.f32.partialorder %v2519_v24, 8388608.0  ;;  %vm4642_vm1 = vcmp.lt.f32.partialorder %v2543_v50, 8388608.0  ;;  %v2546_v18 = vcvt.s32.f32 %v2545_v34 }
 0x23a   :  { %v1821_v5 = vor.u32 %v1820_v21, %v1819_v53  ;;  %v2523_v63 = vand.u32 2147483647, %v2522_v56  ;;  %v2548_v12 = vand.u32 2147483648, %v5945_v42  ;;  %v1484_v43 = vmul.f32 0.14285715, %v1478_v41 }
 0x23b   :  { %1592 = vmatprep.subr.bf16.mxu0 %v1531_v36  ;;  %v1358_v17 = vmin.f32 %v1262_v59, 7.0  ;;  %v2547_v6 = vand.u32 2147483647, %v2546_v18  ;;  %v2511_v32 = vand.u32 2147483647, %v4431_v7  ;;  %v2513_v2 = vcvt.f32.s32 %v4431_v7 }
 0x23c   :  { %v1822_v24 = vsel %vm4626_vm15, %v1821_v5, %v5941_v31  ;;  %v2525_v44 = vor.u32 %v2524_v35, %v2523_v63  ;;  %v4652_v8 = vmax.f32 %v1484_v43, 1e-05  ;;  %v2535_v21 = vand.u32 2147483647, %v5951_v11 }
 0x23d   :  { %v1265_v50 = vmax.f32 %v1822_v24, -8.0  ;;  %v2549_v34 = vor.u32 %v2548_v12, %v2547_v6  ;;  %v2514_v53 = vcvt.s32.f32 %v2513_v2  ;;  %v2516_v56 = vand.u32 2147483648, %v4431_v7  ;;  %v5956_v12 = vld [vmem:[#allocation52_spill] sm:$0xff] }
 0x23e   :  { %5950 = vst [vmem:[#allocation29_spill] sm:$0xff] %v4652_v8  ;;  %v2526_v59 = vsel %vm4638_vm0, %v2525_v44, %v5944_v52  ;;  %2641 = vrcp.f32 %v4652_v8  ;;  %vm4660_vm2 = vcmp.lt.f32.partialorder %v2511_v32, 8388608.0  ;;  %v2537_v31 = vcvt.f32.s32 %v5951_v11 }
 0x23f   :  { %v1361_v61 = vmin.f32 %v1265_v50, 7.0  ;;  %v2550_v35 = vsel %vm4642_vm1, %v2549_v34, %v5945_v42  ;;  %v1353_v18 = vmax.f32 %v2526_v59, -8.0  ;;  %v2515_v41 = vand.u32 2147483647, %v2514_v53  ;;  %v4668_v5 = vpop.eup %2637 }
 0x240   :  { %v1356_v63 = vmax.f32 %v2550_v35, -8.0  ;;  %vm4670_vm3 = vcmp.lt.f32.partialorder %v2535_v21, 8388608.0  ;;  %v2538_v55 = vcvt.s32.f32 %v2537_v31  ;;  %v2471_v43 = vand.u32 2147483647, %v5956_v12  ;;  %v1481_v21 = vpop.xlane.xlu1 %1480 }
 0x241   :  { %v4675_v6 = vpop.eup %2639  ;;  %v1530_v32 = vpack.c.bf16 %v1361_v61, %v1358_v17  ;;  %v1449_v2 = vmin.f32 %v1353_v18, 7.0  ;;  %v2517_v24 = vor.u32 %v2516_v56, %v2515_v41  ;;  %v2473_v20 = vcvt.f32.s32 %v5956_v12  ;;  %v5959_v56 = vld [vmem:[#allocation53_spill] sm:$0xff] }
 0x242   :  { %v1452_v42 = vmin.f32 %v1356_v63, 7.0  ;;  %v2539_v44 = vand.u32 2147483647, %v2538_v55  ;;  %v2540_v50 = vand.u32 2147483648, %v5951_v11  ;;  %vm4679_vm4 = vcmp.lt.f32.partialorder %v2471_v43, 8388608.0 }
 0x243   :  { %1593 = vmatpush1.bf16.msra.mxu0 %v1530_v32  ;;  %v2518_v53 = vsel %vm4660_vm2, %v2517_v24, %v4431_v7  ;;  %v2474_v59 = vcvt.s32.f32 %v2473_v20  ;;  %v2476_v17 = vand.u32 2147483648, %v5956_v12  ;;  %v2497_v31 = vcvt.f32.s32 %v5959_v56 }
 0x244   :  { %v1576_v61 = vpack.c.bf16 %v1452_v42, %v1449_v2  ;;  %v2541_v35 = vor.u32 %v2540_v50, %v2539_v44  ;;  %v1352_v18 = vmax.f32 %v2518_v53, -8.0  ;;  %v2495_v41 = vand.u32 2147483647, %v5959_v56 }
 0x245   :  { %v2475_v63 = vand.u32 2147483647, %v2474_v59  ;;  %v2498_v55 = vcvt.s32.f32 %v2497_v31  ;;  %v2500_v43 = vand.u32 2147483648, %v5959_v56  ;;  %v1485_v8 = vmul.f32 0.14285715, %v1481_v21 }
 0x246   :  { %1594 = vmatprep.subr.bf16.mxu0 %v1576_v61  ;;  %v2542_v7 = vsel %vm4670_vm3, %v2541_v35, %v5951_v11  ;;  %v1448_v36 = vmin.f32 %v1352_v18, 7.0  ;;  %v2463_v32 = vand.u32 2147483647, %v4396_v38  ;;  %v2465_v24 = vcvt.f32.s32 %v4396_v38 }
 0x247   :  { %v1355_v2 = vmax.f32 %v2542_v7, -8.0  ;;  %v2477_v20 = vor.u32 %v2476_v17, %v2475_v63  ;;  %v2499_v42 = vand.u32 2147483647, %v2498_v55  ;;  %v4695_v44 = vmax.f32 %v1485_v8, 1e-05 }
 0x248   :  { %vm4697_vm5 = vcmp.lt.f32.partialorder %v2495_v41, 8388608.0  ;;  %vm4701_vm6 = vcmp.lt.f32.partialorder %v2463_v32, 8388608.0  ;;  %v2466_v52 = vcvt.s32.f32 %v2465_v24  ;;  %v2487_v11 = vand.u32 2147483647, %v4414_v49 }
 0x249   :  { %5960 = vst [vmem:[#allocation30_spill] sm:$0xff] %v4695_v44  ;;  %v1451_v53 = vmin.f32 %v1355_v2, 7.0  ;;  %v2478_v59 = vsel %vm4679_vm4, %v2477_v20, %v5956_v12  ;;  %v2501_v17 = vor.u32 %v2500_v43, %v2499_v42  ;;  %v2468_v8 = vand.u32 2147483648, %v4396_v38  ;;  %v5967_v12 = vld [vmem:[#allocation12_spill] sm:$0xff] }
 0x24a   :  { %v1347_v31 = vmax.f32 %v2478_v59, -8.0  ;;  %2643 = vrcp.f32 %v4695_v44  ;;  %v2467_v61 = vand.u32 2147483647, %v2466_v52  ;;  %v2489_v35 = vcvt.f32.s32 %v4414_v49 }
 0x24b   :  { %v4712_v18 = vpop.eup %2641  ;;  %v1575_v41 = vpack.c.bf16 %v1451_v53, %v1448_v36  ;;  %v2502_v63 = vsel %vm4697_vm5, %v2501_v17, %v5959_v56  ;;  %vm4717_vm7 = vcmp.lt.f32.partialorder %v2487_v11, 8388608.0  ;;  %v2423_v34 = vand.u32 2147483647, %v5967_v12  ;;  %v5970_v56 = vld [vmem:[#allocation62_spill] sm:$0xff] }
 0x24c   :  { %v1350_v43 = vmax.f32 %v2502_v63, -8.0  ;;  %v1443_v7 = vmin.f32 %v1347_v31, 7.0  ;;  %v2469_v32 = vor.u32 %v2468_v8, %v2467_v61  ;;  %v2490_v24 = vcvt.s32.f32 %v2489_v35 }
 0x24d   :  { %1595 = vmatpush2.bf16.msra.mxu0 %v1575_v41  ;;  %v2492_v2 = vand.u32 2147483648, %v4414_v49  ;;  %vm4723_vm8 = vcmp.lt.f32.partialorder %v2423_v34, 8388608.0  ;;  %v2425_v36 = vcvt.f32.s32 %v5967_v12  ;;  %v2447_v42 = vand.u32 2147483647, %v5970_v56 }
 0x24e   :  { %v1446_v50 = vmin.f32 %v1350_v43, 7.0  ;;  %v2470_v52 = vsel %vm4701_vm6, %v2469_v32, %v4396_v38  ;;  %v2491_v11 = vand.u32 2147483647, %v2490_v24  ;;  %v2449_v53 = vcvt.f32.s32 %v5970_v56 }
 0x24f   :  { %v1346_v59 = vmax.f32 %v2470_v52, -8.0  ;;  %v2426_v17 = vcvt.s32.f32 %v2425_v36  ;;  %v2428_v8 = vand.u32 2147483648, %v5967_v12  ;;  %vm4734_vm9 = vcmp.lt.f32.partialorder %v2447_v42, 8388608.0 }
 0x250   :  { %v1573_v61 = vpack.c.bf16 %v1446_v50, %v1443_v7  ;;  %v2493_v35 = vor.u32 %v2492_v2, %v2491_v11  ;;  %v2450_v41 = vcvt.s32.f32 %v2449_v53  ;;  %v2415_v63 = vand.u32 2147483647, %v4181_v13 }
 0x251   :  { %v1442_v34 = vmin.f32 %v1346_v59, 7.0  ;;  %v2427_v43 = vand.u32 2147483647, %v2426_v17  ;;  %v2452_v38 = vand.u32 2147483648, %v5970_v56  ;;  %v2417_v21 = vcvt.f32.s32 %v4181_v13 }
 0x252   :  { %1596 = vmatprep.subr.bf16.mxu0 %v1573_v61  ;;  %v2494_v32 = vsel %vm4717_vm7, %v2493_v35, %v4414_v49  ;;  %v2451_v24 = vand.u32 2147483647, %v2450_v41  ;;  %v2420_v36 = vand.u32 2147483648, %v4181_v13  ;;  %v2439_v7 = vand.u32 2147483647, %v4392_v46  ;;  %v5977_v49 = vld [vmem:[#allocation47_spill] sm:$0xff] }
 0x253   :  { %v1349_v2 = vmax.f32 %v2494_v32, -8.0  ;;  %v2429_v42 = vor.u32 %v2428_v8, %v2427_v43  ;;  %v2418_v50 = vcvt.s32.f32 %v2417_v21  ;;  %v2441_v52 = vcvt.f32.s32 %v4392_v46 }
 0x254   :  { %v2453_v11 = vor.u32 %v2452_v38, %v2451_v24  ;;  %vm4747_vm10 = vcmp.lt.f32.partialorder %v2415_v63, 8388608.0  ;;  %vm4751_vm11 = vcmp.lt.f32.partialorder %v2439_v7, 8388608.0  ;;  %v2375_v55 = vand.u32 2147483647, %v5977_v49 }
 0x255   :  { %v1445_v17 = vmin.f32 %v1349_v2, 7.0  ;;  %v2430_v61 = vsel %vm4723_vm8, %v2429_v42, %v5967_v12  ;;  %v2419_v8 = vand.u32 2147483647, %v2418_v50  ;;  %v2442_v35 = vcvt.s32.f32 %v2441_v52  ;;  %v5980_v42 = vld [vmem:[#allocation51_spill] sm:$0xff] }
 0x256   :  { %v2454_v41 = vsel %vm4734_vm9, %v2453_v11, %v5970_v56  ;;  %v1341_v63 = vmax.f32 %v2430_v61, -8.0  ;;  %v2444_v43 = vand.u32 2147483648, %v4392_v46  ;;  %v2377_v38 = vcvt.f32.s32 %v5977_v49 }
 0x257   :  { %v4764_v21 = vpop.eup %2643  ;;  %v1572_v32 = vpack.c.bf16 %v1445_v17, %v1442_v34  ;;  %v1344_v24 = vmax.f32 %v2454_v41, -8.0  ;;  %v2421_v7 = vor.u32 %v2420_v36, %v2419_v8  ;;  %v2443_v2 = vand.u32 2147483647, %v2442_v35  ;;  %v5983_v41 = vld [vmem:[#allocation21_spill] sm:$0xff] }
 0x258   :  { %v1437_v44 = vmin.f32 %v1341_v63, 7.0  ;;  %vm4766_vm12 = vcmp.lt.f32.partialorder %v2375_v55, 8388608.0  ;;  %v2378_v20 = vcvt.s32.f32 %v2377_v38  ;;  %v2399_v31 = vand.u32 2147483647, %v5980_v42 }
 0x259   :  { %1597 = vmatpush2.bf16.msra.mxu0 %v1572_v32  ;;  %v1440_v56 = vmin.f32 %v1344_v24, 7.0  ;;  %v2422_v50 = vsel %vm4747_vm10, %v2421_v7, %v4181_v13  ;;  %v2445_v52 = vor.u32 %v2444_v43, %v2443_v2  ;;  %v2401_v34 = vcvt.f32.s32 %v5980_v42 }
 0x25a   :  { %v1340_v11 = vmax.f32 %v2422_v50, -8.0  ;;  %v2379_v36 = vand.u32 2147483647, %v2378_v20  ;;  %v2380_v17 = vand.u32 2147483648, %v5977_v49  ;;  %vm4776_vm13 = vcmp.lt.f32.partialorder %v2399_v31, 8388608.0 }
 0x25b   :  { %v1570_v61 = vpack.c.bf16 %v1440_v56, %v1437_v44  ;;  %v2446_v8 = vsel %vm4751_vm11, %v2445_v52, %v4392_v46  ;;  %v2402_v35 = vcvt.s32.f32 %v2401_v34  ;;  %v2367_v53 = vand.u32 2147483647, %v5983_v41  ;;  %v5986_v44 = vld [vmem:[#allocation22_spill] sm:$0xff]  ;;  %v5998_v34 = vld [vmem:[#allocation13_spill] sm:$0xff] }
 0x25c   :  { %v1343_v13 = vmax.f32 %v2446_v8, -8.0  ;;  %v1436_v63 = vmin.f32 %v1340_v11, 7.0  ;;  %v2381_v43 = vor.u32 %v2380_v17, %v2379_v36  ;;  %v2369_v38 = vcvt.f32.s32 %v5983_v41 }
 0x25d   :  { %1598 = vmatprep.subr.bf16.mxu0 %v1570_v61  ;;  %v2403_v32 = vand.u32 2147483647, %v2402_v35  ;;  %v2404_v24 = vand.u32 2147483648, %v5980_v42  ;;  %vm4786_vm14 = vcmp.lt.f32.partialorder %v2367_v53, 8388608.0  ;;  %v2391_v2 = vand.u32 2147483647, %v5986_v44 }
 0x25e   :  { %v1439_v59 = vmin.f32 %v1343_v13, 7.0  ;;  %v2382_v46 = vsel %vm4766_vm12, %v2381_v43, %v5977_v49  ;;  %v2370_v20 = vcvt.s32.f32 %v2369_v38  ;;  %v2393_v31 = vcvt.f32.s32 %v5986_v44  ;;  %v5989_v61 = vld [vmem:[#allocation46_spill] sm:$0xff] }
 0x25f   :  { %v2405_v56 = vor.u32 %v2404_v24, %v2403_v32  ;;  %v1335_v50 = vmax.f32 %v2382_v46, -8.0  ;;  %v2372_v52 = vand.u32 2147483648, %v5983_v41  ;;  %vm4796_vm15 = vcmp.lt.f32.partialorder %v2391_v2, 8388608.0  ;;  %v5992_v2 = vld [vmem:[#allocation42_spill] sm:$0xff] }
 0x260   :  { %v1569_v11 = vpack.c.bf16 %v1439_v59, %v1436_v63  ;;  %v2371_v36 = vand.u32 2147483647, %v2370_v20  ;;  %v2394_v17 = vcvt.s32.f32 %v2393_v31  ;;  %v2327_v8 = vand.u32 2147483647, %v5989_v61  ;;  %v5993_v31 = vld [vmem:[#allocation54_spill] sm:$0xff] }
 0x261   :  { %v2406_v49 = vsel %vm4776_vm13, %v2405_v56, %v5980_v42  ;;  %v1431_v12 = vmin.f32 %v1335_v50, 7.0  ;;  %v2396_v35 = vand.u32 2147483648, %v5986_v44  ;;  %v2329_v53 = vcvt.f32.s32 %v5989_v61 }
 0x262   :  { %1599 = vmatpush2.bf16.msra.mxu0 %v1569_v11  ;;  %v1338_v13 = vmax.f32 %v2406_v49, -8.0  ;;  %v2373_v43 = vor.u32 %v2372_v52, %v2371_v36  ;;  %v2395_v38 = vand.u32 2147483647, %v2394_v17  ;;  %v2332_v32 = vand.u32 2147483648, %v5989_v61  ;;  %v6004_v49 = vld [vmem:[#allocation23_spill] sm:$0xff] }
 0x263   :  { %vm4807_vm0 = vcmp.lt.f32.partialorder %v2327_v8, 8388608.0  ;;  %v2330_v24 = vcvt.s32.f32 %v2329_v53  ;;  %v2351_v59 = vand.u32 2147483647, %v5992_v2  ;;  %v2353_v42 = vcvt.f32.s32 %v5992_v2 }
 0x264   :  { %v1434_v55 = vmin.f32 %v1338_v13, 7.0  ;;  %v2374_v46 = vsel %vm4786_vm14, %v2373_v43, %v5983_v41  ;;  %v2397_v20 = vor.u32 %v2396_v35, %v2395_v38  ;;  %v2319_v56 = vand.u32 2147483647, %v5993_v31 }
 0x265   :  { %v1334_v50 = vmax.f32 %v2374_v46, -8.0  ;;  %v2331_v52 = vand.u32 2147483647, %v2330_v24  ;;  %v2354_v11 = vcvt.s32.f32 %v2353_v42  ;;  %v2356_v36 = vand.u32 2147483648, %v5992_v2 }
 0x266   :  { %v1567_v17 = vpack.c.bf16 %v1434_v55, %v1431_v12  ;;  %v2398_v8 = vsel %vm4796_vm15, %v2397_v20, %v5986_v44  ;;  %vm4821_vm1 = vcmp.lt.f32.partialorder %v2351_v59, 8388608.0  ;;  %v2321_v7 = vcvt.f32.s32 %v5993_v31 }
 0x267   :  { %v1337_v41 = vmax.f32 %v2398_v8, -8.0  ;;  %v1430_v35 = vmin.f32 %v1334_v50, 7.0  ;;  %v2333_v53 = vor.u32 %v2332_v32, %v2331_v52  ;;  %v2355_v13 = vand.u32 2147483647, %v2354_v11  ;;  %v5999_v11 = vld [vmem:[#allocation40_spill] sm:$0xff] }
 0x268   :  { %1600 = vmatprep.subr.bf16.mxu0 %v1567_v17  ;;  %vm4826_vm2 = vcmp.lt.f32.partialorder %v2319_v56, 8388608.0  ;;  %v2322_v12 = vcvt.s32.f32 %v2321_v7  ;;  %v2324_v38 = vand.u32 2147483648, %v5993_v31  ;;  %v2345_v44 = vcvt.f32.s32 %v5998_v34 }
 0x269   :  { %v1433_v24 = vmin.f32 %v1337_v41, 7.0  ;;  %v2334_v59 = vsel %vm4807_vm0, %v2333_v53, %v5989_v61  ;;  %v2357_v42 = vor.u32 %v2356_v36, %v2355_v13  ;;  %v2343_v55 = vand.u32 2147483647, %v5998_v34 }
 0x26a   :  { %v1329_v32 = vmax.f32 %v2334_v59, -8.0  ;;  %v2323_v46 = vand.u32 2147483647, %v2322_v12  ;;  %v2346_v20 = vcvt.s32.f32 %v2345_v44  ;;  %v2348_v56 = vand.u32 2147483648, %v5998_v34 }
 0x26b   :  { %v1566_v50 = vpack.c.bf16 %v1433_v24, %v1430_v35  ;;  %v2358_v52 = vsel %vm4821_vm1, %v2357_v42, %v5992_v2  ;;  %v2279_v17 = vand.u32 2147483647, %v5999_v11  ;;  %v2281_v8 = vcvt.f32.s32 %v5999_v11 }
 0x26c   :  { %v1332_v7 = vmax.f32 %v2358_v52, -8.0  ;;  %v1425_v63 = vmin.f32 %v1329_v32, 7.0  ;;  %v2325_v61 = vor.u32 %v2324_v38, %v2323_v46  ;;  %v2347_v36 = vand.u32 2147483647, %v2346_v20 }
 0x26d   :  { %1601 = vmatpush2.bf16.msra.mxu0 %v1566_v50  ;;  %vm4842_vm3 = vcmp.lt.f32.partialorder %v2343_v55, 8388608.0  ;;  %vm4846_vm4 = vcmp.lt.f32.partialorder %v2279_v17, 8388608.0  ;;  %v2282_v35 = vcvt.s32.f32 %v2281_v8  ;;  %v2303_v2 = vand.u32 2147483647, %v6004_v49  ;;  %v6007_v50 = vld [vmem:[#allocation82_spill] sm:$0xff] }
 0x26e   :  { %v1428_v13 = vmin.f32 %v1332_v7, 7.0  ;;  %v2326_v12 = vsel %vm4826_vm2, %v2325_v61, %v5993_v31  ;;  %v2349_v44 = vor.u32 %v2348_v56, %v2347_v36  ;;  %v2305_v38 = vcvt.f32.s32 %v6004_v49 }
 0x26f   :  { %v1328_v24 = vmax.f32 %v2326_v12, -8.0  ;;  %v2283_v59 = vand.u32 2147483647, %v2282_v35  ;;  %v2284_v42 = vand.u32 2147483648, %v5999_v11  ;;  %vm4856_vm5 = vcmp.lt.f32.partialorder %v2303_v2, 8388608.0 }
 0x270   :  { %v1564_v32 = vpack.c.bf16 %v1428_v13, %v1425_v63  ;;  %v2350_v46 = vsel %vm4842_vm3, %v2349_v44, %v5998_v34  ;;  %v2306_v20 = vcvt.s32.f32 %v2305_v38  ;;  %v2271_v43 = vand.u32 2147483647, %v6007_v50  ;;  %v6010_v63 = vld [vmem:[#allocation50_spill] sm:$0xff]  ;;  %v6022_v38 = vld [vmem:[#allocation80_spill] sm:$0xff] }
 0x271   :  { %v1331_v31 = vmax.f32 %v2350_v46, -8.0  ;;  %v1424_v56 = vmin.f32 %v1328_v24, 7.0  ;;  %v2285_v52 = vor.u32 %v2284_v42, %v2283_v59  ;;  %v2273_v17 = vcvt.f32.s32 %v6007_v50 }
 0x272   :  { %1602 = vmatprep.subr.bf16.mxu0 %v1564_v32  ;;  %v2307_v8 = vand.u32 2147483647, %v2306_v20  ;;  %v2308_v7 = vand.u32 2147483648, %v6004_v49  ;;  %vm4866_vm6 = vcmp.lt.f32.partialorder %v2271_v43, 8388608.0  ;;  %v2295_v36 = vand.u32 2147483647, %v6010_v63 }
 0x273   :  { %v1427_v41 = vmin.f32 %v1331_v31, 7.0  ;;  %v2286_v34 = vsel %vm4846_vm4, %v2285_v52, %v5999_v11  ;;  %v2274_v35 = vcvt.s32.f32 %v2273_v17  ;;  %v2297_v2 = vcvt.f32.s32 %v6010_v63  ;;  %v6013_v32 = vld [vmem:[#allocation17_spill] sm:$0xff] }
 0x274   :  { %v2309_v13 = vor.u32 %v2308_v7, %v2307_v8  ;;  %v1323_v12 = vmax.f32 %v2286_v34, -8.0  ;;  %v2276_v44 = vand.u32 2147483648, %v6007_v50  ;;  %vm4876_vm7 = vcmp.lt.f32.partialorder %v2295_v36, 8388608.0  ;;  %v6016_v36 = vld [vmem:[#allocation24_spill] sm:$0xff] }
 0x275   :  { %v1563_v24 = vpack.c.bf16 %v1427_v41, %v1424_v56  ;;  %v2275_v59 = vand.u32 2147483647, %v2274_v35  ;;  %v2298_v42 = vcvt.s32.f32 %v2297_v2  ;;  %v2231_v46 = vand.u32 2147483647, %v6013_v32  ;;  %v6017_v2 = vld [vmem:[#allocation79_spill] sm:$0xff] }
 0x276   :  { %v2310_v11 = vsel %vm4856_vm5, %v2309_v13, %v6004_v49  ;;  %v1419_v53 = vmin.f32 %v1323_v12, 7.0  ;;  %v2300_v20 = vand.u32 2147483648, %v6010_v63  ;;  %v2233_v43 = vcvt.f32.s32 %v6013_v32 }
 0x277   :  { %1603 = vmatpush2.bf16.msra.mxu0 %v1563_v24  ;;  %v1326_v31 = vmax.f32 %v2310_v11, -8.0  ;;  %v2277_v52 = vor.u32 %v2276_v44, %v2275_v59  ;;  %v2299_v17 = vand.u32 2147483647, %v2298_v42  ;;  %v2236_v8 = vand.u32 2147483648, %v6013_v32  ;;  %v6028_v11 = vld [vmem:[#allocation77_spill] sm:$0xff] }
 0x278   :  { %vm4887_vm8 = vcmp.lt.f32.partialorder %v2231_v46, 8388608.0  ;;  %v2234_v7 = vcvt.s32.f32 %v2233_v43  ;;  %v2255_v41 = vand.u32 2147483647, %v6016_v36  ;;  %v2257_v49 = vcvt.f32.s32 %v6016_v36 }
 0x279   :  { %v1422_v55 = vmin.f32 %v1326_v31, 7.0  ;;  %v2278_v34 = vsel %vm4866_vm6, %v2277_v52, %v6007_v50  ;;  %v2301_v35 = vor.u32 %v2300_v20, %v2299_v17  ;;  %v2223_v13 = vand.u32 2147483647, %v6017_v2 }
 0x27a   :  { %v1322_v12 = vmax.f32 %v2278_v34, -8.0  ;;  %v2235_v44 = vand.u32 2147483647, %v2234_v7  ;;  %v2258_v24 = vcvt.s32.f32 %v2257_v49  ;;  %v2260_v59 = vand.u32 2147483648, %v6016_v36 }
 0x27b   :  { %v1561_v42 = vpack.c.bf16 %v1422_v55, %v1419_v53  ;;  %v2302_v46 = vsel %vm4876_vm7, %v2301_v35, %v6010_v63  ;;  %vm4901_vm9 = vcmp.lt.f32.partialorder %v2255_v41, 8388608.0  ;;  %v2225_v61 = vcvt.f32.s32 %v6017_v2 }
 0x27c   :  { %v1325_v50 = vmax.f32 %v2302_v46, -8.0  ;;  %v1418_v20 = vmin.f32 %v1322_v12, 7.0  ;;  %v2237_v43 = vor.u32 %v2236_v8, %v2235_v44  ;;  %v2259_v31 = vand.u32 2147483647, %v2258_v24  ;;  %v6023_v24 = vld [vmem:[#allocation56_spill] sm:$0xff] }
 0x27d   :  { %1604 = vmatprep.subr.bf16.mxu0 %v1561_v42  ;;  %vm4906_vm10 = vcmp.lt.f32.partialorder %v2223_v13, 8388608.0  ;;  %v2226_v53 = vcvt.s32.f32 %v2225_v61  ;;  %v2228_v17 = vand.u32 2147483648, %v6017_v2  ;;  %v2249_v63 = vcvt.f32.s32 %v6022_v38 }
 0x27e   :  { %v1421_v7 = vmin.f32 %v1325_v50, 7.0  ;;  %v2238_v41 = vsel %vm4887_vm8, %v2237_v43, %v6013_v32  ;;  %v2261_v49 = vor.u32 %v2260_v59, %v2259_v31  ;;  %v2247_v55 = vand.u32 2147483647, %v6022_v38 }
 0x27f   :  { %v1317_v8 = vmax.f32 %v2238_v41, -8.0  ;;  %v2227_v34 = vand.u32 2147483647, %v2226_v53  ;;  %v2250_v35 = vcvt.s32.f32 %v2249_v63  ;;  %v2252_v13 = vand.u32 2147483648, %v6022_v38 }
 0x280   :  { %v1560_v12 = vpack.c.bf16 %v1421_v7, %v1418_v20  ;;  %v2262_v44 = vsel %vm4901_vm9, %v2261_v49, %v6016_v36  ;;  %v2183_v42 = vand.u32 2147483647, %v6023_v24  ;;  %v2185_v46 = vcvt.f32.s32 %v6023_v24 }
 0x281   :  { %v1320_v61 = vmax.f32 %v2262_v44, -8.0  ;;  %v1413_v56 = vmin.f32 %v1317_v8, 7.0  ;;  %v2229_v32 = vor.u32 %v2228_v17, %v2227_v34  ;;  %v2251_v59 = vand.u32 2147483647, %v2250_v35 }
 0x282   :  { %1605 = vmatpush2.bf16.msra.mxu0 %v1560_v12  ;;  %vm4922_vm11 = vcmp.lt.f32.partialorder %v2247_v55, 8388608.0  ;;  %vm4926_vm12 = vcmp.lt.f32.partialorder %v2183_v42, 8388608.0  ;;  %v2186_v20 = vcvt.s32.f32 %v2185_v46  ;;  %v2207_v36 = vand.u32 2147483647, %v6028_v11  ;;  %v6031_v12 = vld [vmem:[#allocation76_spill] sm:$0xff] }
 0x283   :  { %v1416_v31 = vmin.f32 %v1320_v61, 7.0  ;;  %v2230_v53 = vsel %vm4906_vm10, %v2229_v32, %v6017_v2  ;;  %v2253_v63 = vor.u32 %v2252_v13, %v2251_v59  ;;  %v2209_v17 = vcvt.f32.s32 %v6028_v11 }
 0x284   :  { %v1316_v7 = vmax.f32 %v2230_v53, -8.0  ;;  %v2187_v41 = vand.u32 2147483647, %v2186_v20  ;;  %v2188_v49 = vand.u32 2147483648, %v6023_v24  ;;  %vm4936_vm13 = vcmp.lt.f32.partialorder %v2207_v36, 8388608.0 }
 0x285   :  { %v1558_v8 = vpack.c.bf16 %v1416_v31, %v1413_v56  ;;  %v2254_v34 = vsel %vm4922_vm11, %v2253_v63, %v6022_v38  ;;  %v2210_v35 = vcvt.s32.f32 %v2209_v17  ;;  %v2175_v52 = vand.u32 2147483647, %v6031_v12  ;;  %v6034_v56 = vld [vmem:[#allocation78_spill] sm:$0xff] }
 0x286   :  { %v1319_v2 = vmax.f32 %v2254_v34, -8.0  ;;  %v1412_v13 = vmin.f32 %v1316_v7, 7.0  ;;  %v2189_v44 = vor.u32 %v2188_v49, %v2187_v41  ;;  %v2177_v42 = vcvt.f32.s32 %v6031_v12 }
 0x287   :  { %1606 = vmatprep.subr.bf16.mxu0 %v1558_v8  ;;  %v2211_v46 = vand.u32 2147483647, %v2210_v35  ;;  %v2212_v61 = vand.u32 2147483648, %v6028_v11  ;;  %vm4946_vm14 = vcmp.lt.f32.partialorder %v2175_v52, 8388608.0  ;;  %v2199_v59 = vand.u32 2147483647, %v6034_v56 }
 0x288   :  { %v1415_v50 = vmin.f32 %v1319_v2, 7.0  ;;  %v2190_v38 = vsel %vm4926_vm12, %v2189_v44, %v6023_v24  ;;  %v2178_v20 = vcvt.s32.f32 %v2177_v42  ;;  %v2201_v36 = vcvt.f32.s32 %v6034_v56  ;;  %v2645_v8 = vld [vmem:[#allocation2 + $0x8] sm:$0xff]  ;;  %v2646_v52 = vld [vmem:[#allocation2 + $0x18] sm:$0xff] }
 0x289   :  { %v2213_v31 = vor.u32 %v2212_v61, %v2211_v46  ;;  %v1311_v53 = vmax.f32 %v2190_v38, -8.0  ;;  %v2180_v63 = vand.u32 2147483648, %v6031_v12  ;;  %vm4956_vm15 = vcmp.lt.f32.partialorder %v2199_v59, 8388608.0  ;;  %v2647_v38 = vld [vmem:[#allocation2] sm:$0xff] }
 0x28a   :  { %v1557_v7 = vpack.c.bf16 %v1415_v50, %v1412_v13  ;;  %v2179_v41 = vand.u32 2147483647, %v2178_v20  ;;  %v2202_v49 = vcvt.s32.f32 %v2201_v36  ;;  %v1495_v34 = vmul.f32 %v2645_v8, %v4668_v5 }
 0x28b   :  { %v2214_v24 = vsel %vm4936_vm13, %v2213_v31, %v6028_v11  ;;  %v1407_v43 = vmin.f32 %v1311_v53, 7.0  ;;  %v2204_v35 = vand.u32 2147483648, %v6034_v56  ;;  %v1497_v2 = vmul.f32 %v2646_v52, %v4675_v6 }
 0x28c   :  { %1607 = vmatpush2.bf16.msra.mxu0 %v1557_v7  ;;  %v1314_v44 = vmax.f32 %v2214_v24, -8.0  ;;  %v2181_v42 = vor.u32 %v2180_v63, %v2179_v41  ;;  %v2203_v46 = vand.u32 2147483647, %v2202_v49  ;;  %v2567_v13 = vand.u32 2147483647, %v1495_v34  ;;  %v2648_v24 = vld [vmem:[#allocation2 + $0x10] sm:$0xff] }
 0x28d   :  { %v2569_v61 = vcvt.f32.s32 %v1495_v34  ;;  %v2572_v59 = vand.u32 2147483648, %v1495_v34  ;;  %v2585_v50 = vcvt.f32.s32 %v1497_v2  ;;  %v1494_v20 = vmul.f32 %v2647_v38, %v4668_v5  ;;  %v2650_v7 = vld [vmem:[#allocation2 + $0x38] sm:$0xff] }
 0x28e   :  { %v1410_v36 = vmin.f32 %v1314_v44, 7.0  ;;  %v2182_v11 = vsel %vm4946_vm14, %v2181_v42, %v6031_v12  ;;  %v2205_v55 = vor.u32 %v2204_v35, %v2203_v46  ;;  %v2583_v31 = vand.u32 2147483647, %v1497_v2 }
 0x28f   :  { %v1310_v53 = vmax.f32 %v2182_v11, -8.0  ;;  %vm4970_vm0 = vcmp.lt.f32.partialorder %v2567_v13, 8388608.0  ;;  %v2570_v63 = vcvt.s32.f32 %v2569_v61  ;;  %v2586_v41 = vcvt.s32.f32 %v2585_v50 }
 0x290   :  { %v1555_v49 = vpack.c.bf16 %v1410_v36, %v1407_v43  ;;  %v2206_v8 = vsel %vm4956_vm15, %v2205_v55, %v6034_v56  ;;  %v2588_v5 = vand.u32 2147483648, %v1497_v2  ;;  %v1496_v52 = vmul.f32 %v2648_v24, %v4675_v6 }
 0x291   :  { %v1313_v32 = vmax.f32 %v2206_v8, -8.0  ;;  %v1406_v12 = vmin.f32 %v1310_v53, 7.0  ;;  %v2571_v35 = vand.u32 2147483647, %v2570_v63  ;;  %v2587_v44 = vand.u32 2147483647, %v2586_v41 }
 0x292   :  { %1608 = vmatprep.subr.bf16.mxu0 %v1555_v49  ;;  %vm4978_vm1 = vcmp.lt.f32.partialorder %v2583_v31, 8388608.0  ;;  %v2559_v46 = vand.u32 2147483647, %v1494_v20  ;;  %v2561_v13 = vcvt.f32.s32 %v1494_v20  ;;  %v2575_v43 = vand.u32 2147483647, %v1496_v52  ;;  %v2649_v8 = vld [vmem:[#allocation2 + $0x28] sm:$0xff] }
 0x293   :  { %v1409_v61 = vmin.f32 %v1313_v32, 7.0  ;;  %v2573_v50 = vor.u32 %v2572_v59, %v2571_v35  ;;  %v2589_v17 = vor.u32 %v2588_v5, %v2587_v44  ;;  %v2577_v56 = vcvt.f32.s32 %v1496_v52  ;;  %v2651_v44 = vld [vmem:[#allocation2 + $0x20] sm:$0xff] }
 0x294   :  { %v4984_v38 = vmul.f32 %v4437_v3, %v4032_v33  ;;  %v2562_v6 = vcvt.s32.f32 %v2561_v13  ;;  %v2564_v36 = vand.u32 2147483648, %v1494_v20  ;;  %v2580_v11 = vand.u32 2147483648, %v1496_v52 }
 0x295   :  { %v1554_v55 = vpack.c.bf16 %v1409_v61, %v1406_v12  ;;  %v2574_v31 = vsel %vm4970_vm0, %v2573_v50, %v1495_v34  ;;  %v2590_v53 = vsel %vm4978_vm1, %v2589_v17, %v1497_v2  ;;  %v2578_v63 = vcvt.s32.f32 %v2577_v56  ;;  %v2652_v50 = vld [vmem:[#allocation2 + $0x30] sm:$0xff] }
 0x296   :  { %v1511_v41 = vmax.f32 %v2574_v31, -8.0  ;;  %v1513_v49 = vmax.f32 %v2590_v53, -8.0  ;;  %v2563_v59 = vand.u32 2147483647, %v2562_v6  ;;  %v1499_v5 = vmul.f32 %v2649_v8, %v4712_v18 }
 0x297   :  { %1609 = vmatpush2.bf16.msra.mxu0 %v1554_v55  ;;  %vm4991_vm2 = vcmp.lt.f32.partialorder %v2559_v46, 8388608.0  ;;  %vm4995_vm3 = vcmp.lt.f32.partialorder %v2575_v43, 8388608.0  ;;  %v2579_v34 = vand.u32 2147483647, %v2578_v63  ;;  %v1501_v2 = vmul.f32 %v2650_v7, %v4764_v21 }
 0x298   :  { %v1519_v32 = vmin.f32 %v1511_v41, 7.0  ;;  %v1521_v12 = vmin.f32 %v1513_v49, 7.0  ;;  %v2565_v35 = vor.u32 %v2564_v36, %v2563_v59  ;;  %v1498_v42 = vmul.f32 %v2651_v44, %v4712_v18 }
 0x299   :  { %v2581_v13 = vor.u32 %v2580_v11, %v2579_v34  ;;  %v2599_v61 = vand.u32 2147483647, %v1499_v5  ;;  %v2601_v46 = vcvt.f32.s32 %v1499_v5  ;;  %v1500_v17 = vmul.f32 %v2652_v50, %v4764_v21 }
 0x29a   :  { %v1527_v43 = vpack.c.bf16 %v1521_v12, %v1519_v32  ;;  %v2566_v56 = vsel %vm4991_vm2, %v2565_v35, %v1494_v20  ;;  %v2615_v6 = vand.u32 2147483647, %v1501_v2  ;;  %v2617_v55 = vcvt.f32.s32 %v1501_v2 }
 0x29b   :  { %v2582_v31 = vsel %vm4995_vm3, %v2581_v13, %v1496_v52  ;;  %v1510_v53 = vmax.f32 %v2566_v56, -8.0  ;;  %v2602_v36 = vcvt.s32.f32 %v2601_v46  ;;  %v2604_v63 = vand.u32 2147483648, %v1499_v5 }
 0x29c   :  { %1610 = vmatprep.mubr.bf16.mxu0 %v1527_v43  ;;  %v1512_v18 = vmax.f32 %v2582_v31, -8.0  ;;  %v2618_v11 = vcvt.s32.f32 %v2617_v55  ;;  %v2620_v41 = vand.u32 2147483648, %v1501_v2  ;;  %v2591_v49 = vand.u32 2147483647, %v1498_v42  ;;  %1663 = vmatprep.mubr.bf16.mxu1 %v1527_v43 }
 0x29d   :  { %v1518_v59 = vmin.f32 %v1510_v53, 7.0  ;;  %vm5006_vm4 = vcmp.lt.f32.partialorder %v2599_v61, 8388608.0  ;;  %v2603_v20 = vand.u32 2147483647, %v2602_v36  ;;  %v2593_v8 = vcvt.f32.s32 %v1498_v42 }
 0x29e   :  { %v1520_v33 = vmin.f32 %v1512_v18, 7.0  ;;  %vm5010_vm5 = vcmp.lt.f32.partialorder %v2615_v6, 8388608.0  ;;  %v2619_v52 = vand.u32 2147483647, %v2618_v11  ;;  %v2607_v34 = vand.u32 2147483647, %v1500_v17 }
 0x29f   :  { %v2605_v7 = vor.u32 %v2604_v63, %v2603_v20  ;;  %v2594_v32 = vcvt.s32.f32 %v2593_v8  ;;  %v2596_v12 = vand.u32 2147483648, %v1498_v42  ;;  %v2609_v35 = vcvt.f32.s32 %v1500_v17 }
 0x2a0   :  { %v5014_v44 = vpack.c.bf16 %v1520_v33, %v1518_v59  ;;  %v2621_v13 = vor.u32 %v2620_v41, %v2619_v52  ;;  %vm5016_vm6 = vcmp.lt.f32.partialorder %v2591_v49, 8388608.0  ;;  %v2612_v46 = vand.u32 2147483648, %v1500_v17 }
 0x2a1   :  { %v2606_v50 = vsel %vm5006_vm4, %v2605_v7, %v1499_v5  ;;  %v2595_v43 = vand.u32 2147483647, %v2594_v32  ;;  %v2610_v56 = vcvt.s32.f32 %v2609_v35  ;;  %v2529_v6 = vcvt.f32.s32 %v4984_v38 }
 0x2a2   :  { %1611 = vmatmul.mubr.bf16.vlgmr.msra.gmra.mxu0 %v5014_v44  ;;  %v2622_v55 = vsel %vm5010_vm5, %v2621_v13, %v1501_v2  ;;  %v1515_v31 = vmax.f32 %v2606_v50, -8.0  ;;  %vm5026_vm7 = vcmp.lt.f32.partialorder %v2607_v34, 8388608.0  ;;  %v2527_v36 = vand.u32 2147483647, %v4984_v38 }
 0x2a3   :  { %v1517_v63 = vmax.f32 %v2622_v55, -8.0  ;;  %v2597_v18 = vor.u32 %v2596_v12, %v2595_v43  ;;  %v2611_v11 = vand.u32 2147483647, %v2610_v56  ;;  %v2530_v5 = vcvt.s32.f32 %v2529_v6 }
 0x2a4   :  { %v1523_v41 = vmin.f32 %v1515_v31, 7.0  ;;  %v2532_v49 = vand.u32 2147483648, %v4984_v38  ;;  %v2551_v59 = vand.u32 2147483647, %v4448_v48  ;;  %v2553_v21 = vcvt.f32.s32 %v4448_v48 }
 0x2a5   :  { %v1525_v20 = vmin.f32 %v1517_v63, 7.0  ;;  %v2598_v2 = vsel %vm5016_vm6, %v2597_v18, %v1498_v42  ;;  %v2613_v8 = vor.u32 %v2612_v46, %v2611_v11  ;;  %v2531_v33 = vand.u32 2147483647, %v2530_v5 }
 0x2a6   :  { %v1514_v24 = vmax.f32 %v2598_v2, -8.0  ;;  %vm5036_vm8 = vcmp.lt.f32.partialorder %v2527_v36, 8388608.0  ;;  %v2554_v34 = vcvt.s32.f32 %v2553_v21  ;;  %v2143_v7 = vand.u32 2147483647, %v4508_v4 }
 0x2a7   :  { %v5041_v32 = vpack.c.bf16 %v1525_v20, %v1523_v41  ;;  %v2614_v12 = vsel %vm5026_vm7, %v2613_v8, %v1500_v17  ;;  %v2533_v35 = vor.u32 %v2532_v49, %v2531_v33  ;;  %v2145_v13 = vcvt.f32.s32 %v4508_v4 }
 0x2a8   :  { %v1516_v61 = vmax.f32 %v2614_v12, -8.0  ;;  %v1522_v42 = vmin.f32 %v1514_v24, 7.0  ;;  %v2555_v46 = vand.u32 2147483647, %v2554_v34  ;;  %v2556_v50 = vand.u32 2147483648, %v4448_v48 }
 0x2a9   :  { %1620 = vmatprep.mubr.bf16.mxu0 %v5041_v32  ;;  %v2534_v43 = vsel %vm5036_vm8, %v2533_v35, %v4984_v38  ;;  %vm2552_vm9 = vcmp.lt.f32.partialorder %v2551_v59, 8388608.0  ;;  %v2146_v56 = vcvt.s32.f32 %v2145_v13  ;;  %v2167_v6 = vand.u32 2147483647, %v4512_v62 }
 0x2aa   :  { %v1524_v55 = vmin.f32 %v1516_v61, 7.0  ;;  %v2557_v17 = vor.u32 %v2556_v50, %v2555_v46  ;;  %v1354_v31 = vmax.f32 %v2534_v43, -8.0  ;;  %v2169_v53 = vcvt.f32.s32 %v4512_v62 }
 0x2ab   :  { %vm5053_vm10 = vcmp.lt.f32.partialorder %v2143_v7, 8388608.0  ;;  %v2147_v63 = vand.u32 2147483647, %v2146_v56  ;;  %v2148_v18 = vand.u32 2147483648, %v4508_v4  ;;  %v2479_v11 = vand.u32 2147483647, %v4564_v58 }
 0x2ac   :  { %v5059_v5 = vpack.c.bf16 %v1524_v55, %v1522_v42  ;;  %v2558_v38 = vsel %vm2552_vm9, %v2557_v17, %v4448_v48  ;;  %vm5062_vm11 = vcmp.lt.f32.partialorder %v2167_v6, 8388608.0  ;;  %v2170_v49 = vcvt.s32.f32 %v2169_v53 }
 0x2ad   :  { %v1357_v59 = vmax.f32 %v2558_v38, -8.0  ;;  %v1450_v21 = vmin.f32 %v1354_v31, 7.0  ;;  %v2149_v20 = vor.u32 %v2148_v18, %v2147_v63  ;;  %v2481_v2 = vcvt.f32.s32 %v4564_v58 }
 0x2ae   :  { %1621 = vmatmul.mubr.bf16.gmra.mxu0 %v5059_v5  ;;  %v2171_v8 = vand.u32 2147483647, %v2170_v49  ;;  %v2172_v33 = vand.u32 2147483648, %v4512_v62  ;;  %v2503_v24 = vand.u32 2147483647, %v4571_v39  ;;  %v2505_v52 = vcvt.f32.s32 %v4571_v39 }
 0x2af   :  { %v1453_v48 = vmin.f32 %v1357_v59, 7.0  ;;  %v2150_v34 = vsel %vm5053_vm10, %v2149_v20, %v4508_v4  ;;  %vm5074_vm12 = vcmp.lt.f32.partialorder %v2479_v11, 8388608.0  ;;  %v2482_v12 = vcvt.s32.f32 %v2481_v2 }
 0x2b0   :  { %v2173_v35 = vor.u32 %v2172_v33, %v2171_v8  ;;  %v1306_v13 = vmax.f32 %v2150_v34, -8.0  ;;  %v2484_v61 = vand.u32 2147483648, %v4564_v58  ;;  %v2506_v42 = vcvt.s32.f32 %v2505_v52 }
 0x2b1   :  { %v1577_v46 = vpack.c.bf16 %v1453_v48, %v1450_v21  ;;  %v2483_v50 = vand.u32 2147483647, %v2482_v12  ;;  %v2095_v43 = vand.u32 2147483647, %v4500_v14  ;;  %v2097_v56 = vcvt.f32.s32 %v4500_v14 }
 0x2b2   :  { %v2174_v4 = vsel %vm5062_vm11, %v2173_v35, %v4512_v62  ;;  %vm5084_vm13 = vcmp.lt.f32.partialorder %v2503_v24, 8388608.0  ;;  %v2507_v55 = vand.u32 2147483647, %v2506_v42  ;;  %v2508_v17 = vand.u32 2147483648, %v4571_v39 }
 0x2b3   :  { %1763 = vmatprep.subr.bf16.mxu1 %v1577_v46  ;;  %v1309_v31 = vmax.f32 %v2174_v4, -8.0  ;;  %v1402_v53 = vmin.f32 %v1306_v13, 7.0  ;;  %v2485_v36 = vor.u32 %v2484_v61, %v2483_v50  ;;  %v2098_v63 = vcvt.s32.f32 %v2097_v56 }
 0x2b4   :  { %v2509_v18 = vor.u32 %v2508_v17, %v2507_v55  ;;  %v2100_v11 = vand.u32 2147483648, %v4500_v14  ;;  %v2119_v38 = vand.u32 2147483647, %v4504_v54  ;;  %v2121_v41 = vcvt.f32.s32 %v4504_v54 }
 0x2b5   :  { %v1405_v62 = vmin.f32 %v1309_v31, 7.0  ;;  %v2486_v49 = vsel %vm5074_vm12, %v2485_v36, %v4564_v58  ;;  %vm5095_vm14 = vcmp.lt.f32.partialorder %v2095_v43, 8388608.0  ;;  %v2099_v21 = vand.u32 2147483647, %v2098_v63 }
 0x2b6   :  { %v2510_v20 = vsel %vm5084_vm13, %v2509_v18, %v4571_v39  ;;  %v1348_v2 = vmax.f32 %v2486_v49, -8.0  ;;  %v2122_v8 = vcvt.s32.f32 %v2121_v41  ;;  %v2431_v33 = vand.u32 2147483647, %v4556_v1 }
 0x2b7   :  { %v1553_v24 = vpack.c.bf16 %v1405_v62, %v1402_v53  ;;  %v1351_v52 = vmax.f32 %v2510_v20, -8.0  ;;  %v2101_v48 = vor.u32 %v2100_v11, %v2099_v21  ;;  %v2124_v34 = vand.u32 2147483648, %v4504_v54 }
 0x2b8   :  { %v1444_v7 = vmin.f32 %v1348_v2, 7.0  ;;  %vm5104_vm15 = vcmp.lt.f32.partialorder %v2119_v38, 8388608.0  ;;  %v2123_v12 = vand.u32 2147483647, %v2122_v8  ;;  %v2433_v35 = vcvt.f32.s32 %v4556_v1 }
 0x2b9   :  { %1764 = vmatpush3.bf16.msra.mxu1 %v1553_v24  ;;  %v1447_v13 = vmin.f32 %v1351_v52, 7.0  ;;  %v2102_v39 = vsel %vm5095_vm14, %v2101_v48, %v4500_v14  ;;  %v2455_v61 = vand.u32 2147483647, %v4560_v19  ;;  %v2457_v42 = vcvt.f32.s32 %v4560_v19 }
 0x2ba   :  { %v2125_v46 = vor.u32 %v2124_v34, %v2123_v12  ;;  %v1300_v50 = vmax.f32 %v2102_v39, -8.0  ;;  %vm5114_vm0 = vcmp.lt.f32.partialorder %v2431_v33, 8388608.0  ;;  %v2434_v56 = vcvt.s32.f32 %v2433_v35 }
 0x2bb   :  { %v1574_v4 = vpack.c.bf16 %v1447_v13, %v1444_v7  ;;  %v2436_v6 = vand.u32 2147483648, %v4556_v1  ;;  %v2458_v55 = vcvt.s32.f32 %v2457_v42  ;;  %v2047_v17 = vand.u32 2147483647, %v4492_v57 }
 0x2bc   :  { %v2126_v14 = vsel %vm5104_vm15, %v2125_v46, %v4504_v54  ;;  %v2435_v31 = vand.u32 2147483647, %v2434_v56  ;;  %v2460_v53 = vand.u32 2147483648, %v4560_v19  ;;  %v2049_v36 = vcvt.f32.s32 %v4492_v57 }
 0x2bd   :  { %1765 = vmatprep.subr.bf16.mxu1 %v1574_v4  ;;  %v1303_v63 = vmax.f32 %v2126_v14, -8.0  ;;  %v1396_v18 = vmin.f32 %v1300_v50, 7.0  ;;  %vm5125_vm1 = vcmp.lt.f32.partialorder %v2455_v61, 8388608.0  ;;  %v2459_v38 = vand.u32 2147483647, %v2458_v55 }
 0x2be   :  { %v2437_v41 = vor.u32 %v2436_v6, %v2435_v31  ;;  %vm5129_vm2 = vcmp.lt.f32.partialorder %v2047_v17, 8388608.0  ;;  %v2050_v49 = vcvt.s32.f32 %v2049_v36  ;;  %v2073_v54 = vcvt.f32.s32 %v4496_v22 }
 0x2bf   :  { %v1399_v59 = vmin.f32 %v1303_v63, 7.0  ;;  %v2461_v21 = vor.u32 %v2460_v53, %v2459_v38  ;;  %v2052_v20 = vand.u32 2147483648, %v4492_v57  ;;  %v2071_v2 = vand.u32 2147483647, %v4496_v22 }
 0x2c0   :  { %v2438_v8 = vsel %vm5114_vm0, %v2437_v41, %v4556_v1  ;;  %v2051_v33 = vand.u32 2147483647, %v2050_v49  ;;  %v2074_v24 = vcvt.s32.f32 %v2073_v54  ;;  %v2076_v52 = vand.u32 2147483648, %v4496_v22 }
 0x2c1   :  { %v1550_v48 = vpack.c.bf16 %v1399_v59, %v1396_v18  ;;  %v2462_v34 = vsel %vm5125_vm1, %v2461_v21, %v4560_v19  ;;  %v1342_v7 = vmax.f32 %v2438_v8, -8.0  ;;  %v2383_v58 = vand.u32 2147483647, %v4548_v37 }
 0x2c2   :  { %v1345_v12 = vmax.f32 %v2462_v34, -8.0  ;;  %v2053_v35 = vor.u32 %v2052_v20, %v2051_v33  ;;  %v2075_v13 = vand.u32 2147483647, %v2074_v24  ;;  %v2385_v39 = vcvt.f32.s32 %v4548_v37 }
 0x2c3   :  { %1766 = vmatpush3.bf16.msra.mxu1 %v1550_v48  ;;  %v1438_v61 = vmin.f32 %v1342_v7, 7.0  ;;  %vm2072_vm3 = vcmp.lt.f32.partialorder %v2071_v2, 8388608.0  ;;  %v2407_v1 = vand.u32 2147483647, %v4552_v26  ;;  %v2409_v42 = vcvt.f32.s32 %v4552_v26 }
 0x2c4   :  { %v1441_v46 = vmin.f32 %v1345_v12, 7.0  ;;  %v2054_v19 = vsel %vm5129_vm2, %v2053_v35, %v4492_v57  ;;  %v2077_v50 = vor.u32 %v2076_v52, %v2075_v13  ;;  %v2386_v43 = vcvt.s32.f32 %v2385_v39 }
 0x2c5   :  { %v1294_v56 = vmax.f32 %v2054_v19, -8.0  ;;  %v2388_v4 = vand.u32 2147483648, %v4548_v37  ;;  %v2410_v6 = vcvt.s32.f32 %v2409_v42  ;;  %v2412_v55 = vand.u32 2147483648, %v4552_v26 }
 0x2c6   :  { %v1571_v17 = vpack.c.bf16 %v1441_v46, %v1438_v61  ;;  %v2078_v14 = vsel %vm2072_vm3, %v2077_v50, %v4496_v22  ;;  %v2387_v31 = vand.u32 2147483647, %v2386_v43  ;;  %v1999_v53 = vand.u32 2147483647, %v4484_v23 }
 0x2c7   :  { %v1297_v36 = vmax.f32 %v2078_v14, -8.0  ;;  %v1390_v63 = vmin.f32 %v1294_v56, 7.0  ;;  %v2411_v18 = vand.u32 2147483647, %v2410_v6  ;;  %v2001_v11 = vcvt.f32.s32 %v4484_v23 }
 0x2c8   :  { %1767 = vmatprep.subr.bf16.mxu1 %v1571_v17  ;;  %vm2384_vm4 = vcmp.lt.f32.partialorder %v2383_v58, 8388608.0  ;;  %v2389_v57 = vor.u32 %v2388_v4, %v2387_v31  ;;  %vm2408_vm5 = vcmp.lt.f32.partialorder %v2407_v1, 8388608.0  ;;  %v2023_v38 = vand.u32 2147483647, %v4488_v47 }
 0x2c9   :  { %v1393_v41 = vmin.f32 %v1297_v36, 7.0  ;;  %v2413_v62 = vor.u32 %v2412_v55, %v2411_v18  ;;  %v2002_v49 = vcvt.s32.f32 %v2001_v11  ;;  %v2025_v54 = vcvt.f32.s32 %v4488_v47 }
 0x2ca   :  { %v2390_v22 = vsel %vm2384_vm4, %v2389_v57, %v4548_v37  ;;  %vm5158_vm6 = vcmp.lt.f32.partialorder %v1999_v53, 8388608.0  ;;  %v2004_v21 = vand.u32 2147483648, %v4484_v23  ;;  %v2335_v20 = vand.u32 2147483647, %v4540_v51 }
 0x2cb   :  { %v1547_v2 = vpack.c.bf16 %v1393_v41, %v1390_v63  ;;  %v2414_v8 = vsel %vm2408_vm5, %v2413_v62, %v4552_v26  ;;  %v1336_v33 = vmax.f32 %v2390_v22, -8.0  ;;  %v2003_v24 = vand.u32 2147483647, %v2002_v49 }
 0x2cc   :  { %v1339_v52 = vmax.f32 %v2414_v8, -8.0  ;;  %vm5165_vm7 = vcmp.lt.f32.partialorder %v2023_v38, 8388608.0  ;;  %v2026_v34 = vcvt.s32.f32 %v2025_v54  ;;  %v2337_v37 = vcvt.f32.s32 %v4540_v51 }
 0x2cd   :  { %1768 = vmatpush3.bf16.msra.mxu1 %v1547_v2  ;;  %v1432_v7 = vmin.f32 %v1336_v33, 7.0  ;;  %v2005_v58 = vor.u32 %v2004_v21, %v2003_v24  ;;  %v2028_v12 = vand.u32 2147483648, %v4488_v47  ;;  %v2359_v35 = vand.u32 2147483647, %v4544_v60 }
 0x2ce   :  { %v1435_v13 = vmin.f32 %v1339_v52, 7.0  ;;  %v2027_v39 = vand.u32 2147483647, %v2026_v34  ;;  %v2338_v26 = vcvt.s32.f32 %v2337_v37  ;;  %v2361_v61 = vcvt.f32.s32 %v4544_v60 }
 0x2cf   :  { %v2006_v1 = vsel %vm5158_vm6, %v2005_v58, %v4484_v23  ;;  %vm5176_vm8 = vcmp.lt.f32.partialorder %v2335_v20, 8388608.0  ;;  %v2340_v46 = vand.u32 2147483648, %v4540_v51  ;;  %v1951_v19 = vand.u32 2147483647, %v4476_v16 }
 0x2d0   :  { %v1568_v50 = vpack.c.bf16 %v1435_v13, %v1432_v7  ;;  %v2029_v43 = vor.u32 %v2028_v12, %v2027_v39  ;;  %v1288_v56 = vmax.f32 %v2006_v1, -8.0  ;;  %v2339_v4 = vand.u32 2147483647, %v2338_v26 }
 0x2d1   :  { %vm5182_vm9 = vcmp.lt.f32.partialorder %v2359_v35, 8388608.0  ;;  %v2362_v55 = vcvt.s32.f32 %v2361_v61  ;;  %v2364_v17 = vand.u32 2147483648, %v4544_v60  ;;  %v1953_v23 = vcvt.f32.s32 %v4476_v16 }
 0x2d2   :  { %1769 = vmatprep.subr.bf16.mxu1 %v1568_v50  ;;  %v2030_v14 = vsel %vm5165_vm7, %v2029_v43, %v4488_v47  ;;  %v1384_v31 = vmin.f32 %v1288_v56, 7.0  ;;  %v2341_v53 = vor.u32 %v2340_v46, %v2339_v4  ;;  %v1975_v36 = vand.u32 2147483647, %v4480_v30 }
 0x2d3   :  { %v1291_v63 = vmax.f32 %v2030_v14, -8.0  ;;  %v2363_v18 = vand.u32 2147483647, %v2362_v55  ;;  %v1954_v11 = vcvt.s32.f32 %v1953_v23  ;;  %v1977_v57 = vcvt.f32.s32 %v4480_v30 }
 0x2d4   :  { %v2342_v38 = vsel %vm5176_vm8, %v2341_v53, %v4540_v51  ;;  %vm5196_vm10 = vcmp.lt.f32.partialorder %v1951_v19, 8388608.0  ;;  %v1956_v62 = vand.u32 2147483648, %v4476_v16  ;;  %vm5201_vm11 = vcmp.lt.f32.partialorder %v1975_v36, 8388608.0 }
 0x2d5   :  { %v1387_v49 = vmin.f32 %v1291_v63, 7.0  ;;  %v2365_v54 = vor.u32 %v2364_v17, %v2363_v18  ;;  %v1330_v22 = vmax.f32 %v2342_v38, -8.0  ;;  %v1955_v59 = vand.u32 2147483647, %v1954_v11 }
 0x2d6   :  { %v1978_v21 = vcvt.s32.f32 %v1977_v57  ;;  %v1980_v20 = vand.u32 2147483648, %v4480_v30  ;;  %v2287_v2 = vand.u32 2147483647, %v4528_v15  ;;  %v2289_v51 = vcvt.f32.s32 %v4528_v15 }
 0x2d7   :  { %v1544_v8 = vpack.c.bf16 %v1387_v49, %v1384_v31  ;;  %v2366_v33 = vsel %vm5182_vm9, %v2365_v54, %v4544_v60  ;;  %v1426_v24 = vmin.f32 %v1330_v22, 7.0  ;;  %v1957_v52 = vor.u32 %v1956_v62, %v1955_v59 }
 0x2d8   :  { %v1333_v48 = vmax.f32 %v2366_v33, -8.0  ;;  %v1979_v34 = vand.u32 2147483647, %v1978_v21  ;;  %v2290_v37 = vcvt.s32.f32 %v2289_v51  ;;  %v2311_v7 = vand.u32 2147483647, %v4536_v29 }
 0x2d9   :  { %1770 = vmatpush3.bf16.msra.mxu1 %v1544_v8  ;;  %v1958_v58 = vsel %vm5196_vm10, %v1957_v52, %v4476_v16  ;;  %v2292_v12 = vand.u32 2147483648, %v4528_v15  ;;  %v2313_v35 = vcvt.f32.s32 %v4536_v29  ;;  %v1903_v13 = vand.u32 2147483647, %v4468_v9 }
 0x2da   :  { %v1429_v39 = vmin.f32 %v1333_v48, 7.0  ;;  %v1981_v60 = vor.u32 %v1980_v20, %v1979_v34  ;;  %v1282_v26 = vmax.f32 %v1958_v58, -8.0  ;;  %v2291_v61 = vand.u32 2147483647, %v2290_v37 }
 0x2db   :  { %vm5218_vm12 = vcmp.lt.f32.partialorder %v2287_v2, 8388608.0  ;;  %v2314_v42 = vcvt.s32.f32 %v2313_v35  ;;  %v2316_v46 = vand.u32 2147483648, %v4536_v29  ;;  %v1905_v19 = vcvt.f32.s32 %v4468_v9 }
 0x2dc   :  { %v1565_v16 = vpack.c.bf16 %v1429_v39, %v1426_v24  ;;  %v1982_v50 = vsel %vm5201_vm11, %v1981_v60, %v4480_v30  ;;  %v2293_v43 = vor.u32 %v2292_v12, %v2291_v61  ;;  %vm5227_vm13 = vcmp.lt.f32.partialorder %v2311_v7, 8388608.0  ;;  %v6093_v61 = vld [vmem:[#allocation27_spill] sm:$0xff] }
 0x2dd   :  { %v1285_v4 = vmax.f32 %v1982_v50, -8.0  ;;  %v1378_v6 = vmin.f32 %v1282_v26, 7.0  ;;  %v2315_v55 = vand.u32 2147483647, %v2314_v42  ;;  %v1906_v17 = vcvt.s32.f32 %v1905_v19  ;;  %v6094_v50 = vld [vmem:[#allocation61_spill] sm:$0xff] }
 0x2de   :  { %1771 = vmatprep.subr.bf16.mxu1 %v1565_v16  ;;  %v2294_v23 = vsel %vm5218_vm12, %v2293_v43, %v4528_v15  ;;  %vm5234_vm14 = vcmp.lt.f32.partialorder %v1903_v13, 8388608.0  ;;  %v1908_v30 = vand.u32 2147483648, %v4468_v9  ;;  %v1929_v31 = vcvt.f32.s32 %v4472_v28 }
 0x2df   :  { %v1381_v53 = vmin.f32 %v1285_v4, 7.0  ;;  %v2317_v36 = vor.u32 %v2316_v46, %v2315_v55  ;;  %v1324_v63 = vmax.f32 %v2294_v23, -8.0  ;;  %v1907_v18 = vand.u32 2147483647, %v1906_v17 }
 0x2e0   :  { %v1927_v11 = vand.u32 2147483647, %v4472_v28  ;;  %v1930_v57 = vcvt.s32.f32 %v1929_v31  ;;  %v1932_v38 = vand.u32 2147483648, %v4472_v28  ;;  %v2241_v41 = vcvt.f32.s32 %v4520_v25  ;;  %v6095_v31 = vld [vmem:[#allocation28_spill] sm:$0xff] }
 0x2e1   :  { %v1541_v15 = vpack.c.bf16 %v1381_v53, %v1378_v6  ;;  %v2318_v62 = vsel %vm5227_vm13, %v2317_v36, %v4536_v29  ;;  %v1909_v47 = vor.u32 %v1908_v30, %v1907_v18  ;;  %v2239_v49 = vand.u32 2147483647, %v4520_v25 }
 0x2e2   :  { %v1327_v54 = vmax.f32 %v2318_v62, -8.0  ;;  %v1420_v22 = vmin.f32 %v1324_v63, 7.0  ;;  %v1931_v59 = vand.u32 2147483647, %v1930_v57  ;;  %v2242_v21 = vcvt.s32.f32 %v2241_v41 }
 0x2e3   :  { %v5249_v20 = vmul.f32 %v4437_v3, %v3994_v40  ;;  %1772 = vmatpush3.bf16.msra.mxu1 %v1541_v15  ;;  %v1910_v2 = vsel %vm5234_vm14, %v1909_v47, %v4468_v9  ;;  %v2244_v51 = vand.u32 2147483648, %v4520_v25  ;;  %v2265_v29 = vcvt.f32.s32 %v4524_v0 }
 0x2e4   :  { %v1423_v8 = vmin.f32 %v1327_v54, 7.0  ;;  %v1933_v33 = vor.u32 %v1932_v38, %v1931_v59  ;;  %v1276_v24 = vmax.f32 %v1910_v2, -8.0  ;;  %v2243_v52 = vand.u32 2147483647, %v2242_v21  ;;  %v6096_v2 = vld [vmem:[#allocation26_spill] sm:$0xff] }
 0x2e5   :  { %vm1928_vm15 = vcmp.lt.f32.partialorder %v1927_v11, 8388608.0  ;;  %vm5256_vm0 = vcmp.lt.f32.partialorder %v2239_v49, 8388608.0  ;;  %v2263_v40 = vand.u32 2147483647, %v4524_v0  ;;  %v2266_v34 = vcvt.s32.f32 %v2265_v29 }
 0x2e6   :  { %v1562_v37 = vpack.c.bf16 %v1423_v8, %v1420_v22  ;;  %v1934_v7 = vsel %vm1928_vm15, %v1933_v33, %v4472_v28  ;;  %v2245_v9 = vor.u32 %v2244_v51, %v2243_v52  ;;  %v2268_v58 = vand.u32 2147483648, %v4524_v0 }
 0x2e7   :  { %v1279_v12 = vmax.f32 %v1934_v7, -8.0  ;;  %v1372_v35 = vmin.f32 %v1276_v24, 7.0  ;;  %v2267_v13 = vand.u32 2147483647, %v2266_v34  ;;  %v1857_v39 = vcvt.f32.s32 %v4456_v27 }
 0x2e8   :  { %1773 = vmatprep.subr.bf16.mxu1 %v1562_v37  ;;  %v2246_v60 = vsel %vm5256_vm0, %v2245_v9, %v4520_v25  ;;  %v1855_v26 = vand.u32 2147483647, %v4456_v27  ;;  %v1879_v1 = vand.u32 2147483647, %v6093_v61  ;;  %v1881_v42 = vcvt.f32.s32 %v6093_v61 }
 0x2e9   :  { %v1375_v28 = vmin.f32 %v1279_v12, 7.0  ;;  %v2269_v46 = vor.u32 %v2268_v58, %v2267_v13  ;;  %v1318_v19 = vmax.f32 %v2246_v60, -8.0  ;;  %v1858_v16 = vcvt.s32.f32 %v1857_v39 }
 0x2ea   :  { %v5272_v43 = vmul.f32 %v4437_v3, %v6094_v50  ;;  %vm2264_vm1 = vcmp.lt.f32.partialorder %v2263_v40, 8388608.0  ;;  %v1860_v56 = vand.u32 2147483648, %v4456_v27  ;;  %v1882_v4 = vcvt.s32.f32 %v1881_v42 }
 0x2eb   :  { %v1538_v6 = vpack.c.bf16 %v1375_v28, %v1372_v35  ;;  %v2270_v25 = vsel %vm2264_vm1, %v2269_v46, %v4524_v0  ;;  %v1859_v55 = vand.u32 2147483647, %v1858_v16  ;;  %v1884_v17 = vand.u32 2147483648, %v6093_v61 }
 0x2ec   :  { %v1321_v23 = vmax.f32 %v2270_v25, -8.0  ;;  %v1414_v14 = vmin.f32 %v1318_v19, 7.0  ;;  %v1883_v30 = vand.u32 2147483647, %v1882_v4  ;;  %v2193_v53 = vcvt.f32.s32 %v6095_v31 }
 0x2ed   :  { %1774 = vmatpush3.bf16.msra.mxu1 %v1538_v6  ;;  %vm1856_vm2 = vcmp.lt.f32.partialorder %v1855_v26, 8388608.0  ;;  %v1861_v36 = vor.u32 %v1860_v56, %v1859_v55  ;;  %vm1880_vm3 = vcmp.lt.f32.partialorder %v1879_v1, 8388608.0  ;;  %v2217_v3 = vcvt.f32.s32 %v5249_v20  ;;  %v1704_v6 = vld [vmem:[%s5335_s4] sm:$0x7]  ;;  %s2744_s4 = smov [#allocation8]  }
 0x2ee   :  { %v1417_v63 = vmin.f32 %v1321_v23, 7.0  ;;  %v1885_v18 = vor.u32 %v1884_v17, %v1883_v30  ;;  %v2191_v11 = vand.u32 2147483647, %v6095_v31  ;;  %v2194_v57 = vcvt.s32.f32 %v2193_v53  ;;  %v6097_v17 = vld [vmem:[#allocation43_spill] sm:$0xff]  ;;  %v6099_v53 = vld [vmem:[#allocation44_spill] sm:$0xff]  ;;  %s1750_s11 = sshll.u32 %s2744_s4, 4  ;;  %s1751_s11 = int_to_ptr.vmem [resolvable:$true] %s1750_s11 }
 0x2ef   :  { %v1862_v0 = vsel %vm1856_vm2, %v1861_v36, %v4456_v27  ;;  %v2196_v38 = vand.u32 2147483648, %v6095_v31  ;;  %v2215_v41 = vand.u32 2147483647, %v5249_v20  ;;  %v2218_v15 = vcvt.s32.f32 %v2217_v3  ;;  %v6100_v3 = vld [vmem:[#allocation49_spill] sm:$0xff]  ;;  %s2713_s12 = scalar_lea.vmem %s1751_s11, 1536  ;;  %p2718_p2 = scmp.lt.s32.totalorder %s1751_s11, %s1751_s11 }
 0x2f0   :  { %v1559_v62 = vpack.c.bf16 %v1417_v63, %v1414_v14  ;;  %v1886_v47 = vsel %vm1880_vm3, %v1885_v18, %v6093_v61  ;;  %v1270_v49 = vmax.f32 %v1862_v0, -8.0  ;;  %v2195_v54 = vand.u32 2147483647, %v2194_v57  ;;  %v6098_v14 = vld [vmem:[#allocation58_spill] sm:$0xff]  ;;  %p2714_p1 = scmp.ne.s32.totalorder %s1751_s11, %s2713_s12  ;;  %p2719_p3 = scmp.lt.s32.totalorder %s2713_s12, %s2713_s12 }
 0x2f1   :  { %v1273_v22 = vmax.f32 %v1886_v47, -8.0  ;;  %v2219_v59 = vand.u32 2147483647, %v2218_v15  ;;  %v2220_v21 = vand.u32 2147483648, %v5249_v20  ;;  %v1809_v51 = vcvt.f32.s32 %v6096_v2  ;;  %v6101_v47 = vld [vmem:[#allocation29_spill] sm:$0xff] }
 0x2f2   :  { %1775 = vmatprep.subr.bf16.mxu1 %v1559_v62  ;;  %v1366_v29 = vmin.f32 %v1270_v49, 7.0  ;;  %vm2192_vm4 = vcmp.lt.f32.partialorder %v2191_v11, 8388608.0  ;;  %v2197_v27 = vor.u32 %v2196_v38, %v2195_v54  ;;  %v1833_v52 = vcvt.f32.s32 %v5272_v43  ;;  %p2720_p4 = por %p2719_p3, %p2718_p2 }
 0x2f3   :  { %v1369_v8 = vmin.f32 %v1273_v22, 7.0  ;;  %v2221_v33 = vor.u32 %v2220_v21, %v2219_v59  ;;  %v1810_v24 = vcvt.s32.f32 %v1809_v51  ;;  %vm2216_vm5 = vcmp.lt.f32.partialorder %v2215_v41, 8388608.0 }
 0x2f4   :  { %v2198_v48 = vsel %vm2192_vm4, %v2197_v27, %v6095_v31  ;;  %v1807_v40 = vand.u32 2147483647, %v6096_v2  ;;  %v1812_v34 = vand.u32 2147483648, %v6096_v2  ;;  %v1834_v35 = vcvt.s32.f32 %v1833_v52  ;;  %p2721_p5 = pnand %p2720_p4, %p2714_p1 }
 0x2f5   :  { %v1535_v37 = vpack.c.bf16 %v1369_v8, %v1366_v29  ;;  %v2222_v7 = vsel %vm2216_vm5, %v2221_v33, %v5249_v20  ;;  %v1312_v9 = vmax.f32 %v2198_v48, -8.0  ;;  %v1811_v58 = vand.u32 2147483647, %v1810_v24  ;;  %v6102_v29 = vld [vmem:[#allocation30_spill] sm:$0xff] }
 0x2f6   :  { %v1315_v12 = vmax.f32 %v2222_v7, -8.0  ;;  %v1831_v60 = vand.u32 2147483647, %v5272_v43  ;;  %vm1808_vm6 = vcmp.lt.f32.partialorder %v1807_v40, 8388608.0  ;;  %v1835_v61 = vand.u32 2147483647, %v1834_v35 }
 0x2f7   :  { %1776 = vmatpush3.bf16.msra.mxu1 %v1535_v37  ;;  %v1408_v13 = vmin.f32 %v1312_v9, 7.0  ;;  %v1813_v39 = vor.u32 %v1812_v34, %v1811_v58  ;;  %v1836_v1 = vand.u32 2147483648, %v5272_v43  ;;  %v6103_v35 = vld [vmem:[#allocation45_spill] sm:$0xff] }
 0x2f8   :  { %v1411_v26 = vmin.f32 %v1315_v12, 7.0  ;;  %vm1832_vm7 = vcmp.lt.f32.partialorder %v1831_v60, 8388608.0  ;;  %v6104_v60 = vld [vmem:[#allocation25_spill] sm:$0xff] }
 0x2f9   :  { %v1814_v42 = vsel %vm1808_vm6, %v1813_v39, %v6096_v2  ;;  %v1837_v46 = vor.u32 %v1836_v1, %v1835_v61 }
 0x2fa   :  { %v1556_v28 = vpack.c.bf16 %v1411_v26, %v1408_v13  ;;  %v1264_v19 = vmax.f32 %v1814_v42, -8.0  ;;  %v1717_v13 = vrot.slane %v1704_v6, %v6103_v35 }
 0x2fb   :  { %v1838_v20 = vsel %vm1832_vm7, %v1837_v46, %v5272_v43  ;;  %v1709_v43 = vrot.slane %v1704_v6, %v6097_v17 }
 0x2fc   :  { %1777 = vmatprep.subr.bf16.mxu1 %v1556_v28  ;;  %v1267_v16 = vmax.f32 %v1838_v20, -8.0  ;;  %v1360_v50 = vmin.f32 %v1264_v19, 7.0 }
 0x2fe   :  { %v1363_v56 = vmin.f32 %v1267_v16, 7.0 }
 0x300   :  { %v1532_v4 = vpack.c.bf16 %v1363_v56, %v1360_v50 }
 0x302   :  { %1778 = vmatpush3.bf16.msra.mxu1 %v1532_v4 }
 0x305   :  { %1664 = vmatmul.mubr.bf16.vlgmr.msra.gmra.mxu1 %v5014_v44  ;;  %v1713_v44 = vrot.slane %v1704_v6, %v6099_v53 }
 0x306   :  { %1671 = vmatprep.mubr.bf16.mxu1 %v5041_v32 }
 0x30d   :  { %1672 = vmatmul.mubr.bf16.gmra.mxu1 %v5059_v5 }
 0x362   :  { %v1612_v25 = vpop.f32.mrf.mxu0 }
 0x363   :  { %v1680_v55 = vmul.f32 %v1612_v25, %v4602_v10 }
 0x364   :  { %v1614_v23 = vpop.f32.mrf.mxu0 }
 0x365   :  { %v1692_v30 = vmul.f32 %v1680_v55, %v6098_v14  ;;  %v1681_v31 = vmul.f32 %v1614_v23, %v4602_v10 }
 0x366   :  { %v1616_v36 = vpop.f32.mrf.mxu0 }
 0x367   :  { %v1721_v32 = vadd.f32 %v1709_v43, %v1692_v30  ;;  %v1693_v5 = vmul.f32 %v1681_v31, %v6100_v3  ;;  %v1683_v63 = vmul.f32 %v1616_v36, %v4608_v45 }
 0x368   :  { %v1618_v18 = vpop.f32.mrf.mxu0 }
 0x369   :  { %1733 = vst [vmem:[#allocation8] sm:$0xff] %v1721_v32  ;;  %v1722_v11 = vadd.f32 %v1713_v44, %v1693_v5  ;;  %v1695_v57 = vmul.f32 %v1683_v63, %v6098_v14  ;;  %v1684_v0 = vmul.f32 %v1618_v18, %v4608_v45 }
 0x36b   :  { %1734 = vst [vmem:[#allocation8 + $0x8] sm:$0xff] %v1722_v11  ;;  %v1724_v38 = vadd.f32 %v1709_v43, %v1695_v57  ;;  %v1696_v41 = vmul.f32 %v1684_v0, %v6100_v3 }
 0x36d   :  { %1736 = vst [vmem:[#allocation8 + $0x18] sm:$0xff] %v1724_v38  ;;  %v1725_v15 = vadd.f32 %v1713_v44, %v1696_v41 }
 0x36e   :  { %v1622_v62 = vpop.f32.mrf.mxu0 }
 0x36f   :  { %1737 = vst [vmem:[#allocation8 + $0x20] sm:$0xff] %v1725_v15  ;;  %v1686_v49 = vmul.f32 %v1622_v62, %v6101_v47 }
 0x370   :  { %v1624_v54 = vpop.f32.mrf.mxu0 }
 0x371   :  { %v1698_v22 = vmul.f32 %v1686_v49, %v6098_v14  ;;  %v1687_v59 = vmul.f32 %v1624_v54, %v6101_v47 }
 0x372   :  { %v1626_v21 = vpop.f32.mrf.mxu0 }
 0x373   :  { %v1727_v2 = vadd.f32 %v1709_v43, %v1698_v22  ;;  %v1699_v51 = vmul.f32 %v1687_v59, %v6100_v3  ;;  %v1689_v27 = vmul.f32 %v1626_v21, %v6102_v29 }
 0x374   :  { %v1628_v8 = vpop.f32.mrf.mxu0 }
 0x375   :  { %1739 = vst [vmem:[#allocation8 + $0x30] sm:$0xff] %v1727_v2  ;;  %v1728_v33 = vadd.f32 %v1713_v44, %v1699_v51  ;;  %v1701_v24 = vmul.f32 %v1689_v27, %v6098_v14  ;;  %v1690_v52 = vmul.f32 %v1628_v8, %v6102_v29 }
 0x377   :  { %1740 = vst [vmem:[#allocation8 + $0x38] sm:$0xff] %v1728_v33  ;;  %v1730_v48 = vadd.f32 %v1709_v43, %v1701_v24  ;;  %v1702_v40 = vmul.f32 %v1690_v52, %v6100_v3 }
 0x379   :  { %1742 = vst [vmem:[#allocation8 + $0x48] sm:$0xff] %v1730_v48  ;;  %v1731_v34 = vadd.f32 %v1713_v44, %v1702_v40 }
 0x37b   :  { %1743 = vst [vmem:[#allocation8 + $0x50] sm:$0xff] %v1731_v34 }
 0x3c5   :  { %v1779_v37 = vpop.f32.mrf.mxu1 }
 0x3c7   :  { %v1780_v7 = vpop.f32.mrf.mxu1 }
 0x3c8   :  { %v1781_v9 = vadd.f32 %v1780_v7, %v1779_v37 }
 0x3c9   :  { %v1782_v58 = vpop.f32.mrf.mxu1 }
 0x3ca   :  { %v1682_v12 = vmul.f32 %v1781_v9, %v4602_v10 }
 0x3cb   :  { %v1783_v39 = vpop.f32.mrf.mxu1 }
 0x3cc   :  { %v1694_v26 = vmul.f32 %v1682_v12, %v6104_v60  ;;  %v1784_v61 = vadd.f32 %v1783_v39, %v1782_v58 }
 0x3cd   :  { %v1785_v1 = vpop.f32.mrf.mxu1 }
 0x3ce   :  { %v1723_v42 = vadd.f32 %v1717_v13, %v1694_v26  ;;  %v1685_v28 = vmul.f32 %v1784_v61, %v4608_v45 }
 0x3cf   :  { %v1786_v46 = vpop.f32.mrf.mxu1 }
 0x3d0   :  { %1735 = vst [vmem:[#allocation8 + $0x10] sm:$0xff] %v1723_v42  ;;  %v1697_v19 = vmul.f32 %v1685_v28, %v6104_v60  ;;  %v1787_v20 = vadd.f32 %v1786_v46, %v1785_v1 }
 0x3d1   :  { %v1788_v16 = vpop.f32.mrf.mxu1 }
 0x3d2   :  { %v1726_v50 = vadd.f32 %v1717_v13, %v1697_v19  ;;  %v1688_v56 = vmul.f32 %v1787_v20, %v6101_v47 }
 0x3d3   :  { %v1789_v10 = vpop.f32.mrf.mxu1 }
 0x3d4   :  { %1738 = vst [vmem:[#allocation8 + $0x28] sm:$0xff] %v1726_v50  ;;  %v1700_v4 = vmul.f32 %v1688_v56, %v6104_v60  ;;  %v1790_v6 = vadd.f32 %v1789_v10, %v1788_v16 }
 0x3d6   :  { %v1729_v25 = vadd.f32 %v1717_v13, %v1700_v4  ;;  %v1691_v55 = vmul.f32 %v1790_v6, %v6102_v29 }
 0x3d8   :  { %1741 = vst [vmem:[#allocation8 + $0x40] sm:$0xff] %v1729_v25  ;;  %v1703_v45 = vmul.f32 %v1691_v55, %v6104_v60 }
 0x3da   :  { %v1732_v17 = vadd.f32 %v1717_v13, %v1703_v45 }
 0x3dc   :  { %1744 = vst [vmem:[#allocation8 + $0x58] sm:$0xff] %v1732_v17 }
 0x3dd   :  { %2724 = shalt.err (!%p2721_p5)
}
 0x3de   :  { %s2745_s13 = smov 384   ;;  %s2746_s14 = smov 24  }
 0x3df   :  { %1756 = dma.vmem_to_hbm [thread:$0]  %s1751_s11, 1536, %s5336_s5, [#allocation4], %s2745_s13, %s2745_s13, %s2746_s14  }
 0x3e0   :  { %2737 = dma.done.wait [#allocation4], 1536  }
 0x3e1   :  { %2738 = vsyncadd [#allocation4], 4294965760 }
 0x3e2   :  { %1760 = vsyncpa [#allocation3], 1 }
 0x3e3   :  { %1761 = vsyncpa [#allocation6], 1 }
 0x3e4   :  { %1762 = vsyncpa [#allocation4], 1 }

</bundles_post_ra>
